<compile_context>
chip_gen: v5e
topology: v5e:2x2
jax: 0.10.0
libtpu: 0.0.40
codegen_flags: <defaults>
</compile_context>

<pallas_src>
import jax
import jax.numpy as jnp
import numpy as np
from jax import lax
from jax.experimental import pallas as pl
from jax.experimental.pallas import tpu as pltpu

INPUT_DIM  = 64
NUM_LATENT = 16                                        # == flow_latent (dim of z)
HIDDEN     = 400                                       # fixed by the module (fc1 -> 400)
FLOW_LEN   = 2                                         # K
NUM_HIDDEN = 20                                        # M (NormalizingFlowNet default)
N_PARAMS   = NUM_HIDDEN * NUM_HIDDEN + 2 * NUM_HIDDEN  # params per flow step (440)
ROWS_PER_STEP = N_PARAMS // NUM_HIDDEN                 # 22 = 20 RR rows + v row + b row
ROW_STRIDE = 24                                        # 22 rounded to a sublane multiple
PAD        = NUM_HIDDEN - NUM_LATENT                   # 4 zero-padding columns
HEADS_W    = 2 * NUM_HIDDEN                            # 40 = [mu|pad|logvar|pad]
OUT_W      = 128                                       # lane-dense combined output width


# ------------------------------ fused forward kernel ------------------------------

def _vaenf_kernel(x_ref, eps_ref, w1_ref, b1_ref, wh_ref, bh_ref,
                  w23_ref, b23_ref, w3_ref, b3_ref, w4_ref, b4_ref,
                  out_ref, pmean_ref, rvb_ref):
    f32 = jnp.float32
    n = x_ref.shape[0]

    # ---- encode: h = relu(fc1(x)) --------------------------------------------------
    h = jnp.dot(x_ref[...], w1_ref[...], preferred_element_type=f32) + b1_ref[...]
    h = jnp.maximum(h, 0.0)

    # one lane-concatenated head matmul: [mu | 0pad | logvar | 0pad]  -> (N, 40)
    heads = jnp.dot(h, wh_ref[...], preferred_element_type=f32) + bh_ref[...]

    # fc23(h).mean(dim=0) == mean(h, 0) @ w23 + b23  (exact, by linearity of the mean)
    h_mean = jnp.mean(h, axis=0, keepdims=True)                              # (1, 400)
    pmean_ref[...] = (jnp.dot(h_mean, w23_ref[...], preferred_element_type=f32)
                      + b23_ref[...])                                        # (1, 880)

    # ---- unwrap flow params: re-lay the 880-wide row as (2*24, 20) in VMEM ---------
    # step k occupies rows [24k, 24k+22): rows 0..19 -> RR_k, 20 -> v_k, 21 -> b_k.
    # (row stride 24 keeps every per-step block aligned to a sublane multiple of 8)
    for k in range(FLOW_LEN):
        for a in range(ROWS_PER_STEP):
            src = (k * ROWS_PER_STEP + a) * NUM_HIDDEN
            dst = k * ROW_STRIDE + a
            rvb_ref[dst:dst + 1, :] = pmean_ref[0:1, src:src + NUM_HIDDEN]

    # ---- reparameterize in the zero-padded 20-wide flow space ----------------------
    mu_p = heads[:, 0:NUM_HIDDEN]                          # (N, 20), cols 16..19 are 0
    lv_p = heads[:, NUM_HIDDEN:2 * NUM_HIDDEN]             # (N, 20), cols 16..19 are 0
    zp = mu_p + eps_ref[...] * jnp.exp(0.5 * lv_p)         # (N, 20), cols 16..19 stay 0

    ri = lax.broadcasted_iota(jnp.int32, (NUM_HIDDEN, NUM_HIDDEN), 0)
    ci = lax.broadcasted_iota(jnp.int32, (NUM_HIDDEN, NUM_HIDDEN), 1)
    col_keep = (lax.broadcasted_iota(jnp.int32, (1, NUM_HIDDEN), 1)
                < NUM_LATENT).astype(f32)                  # keep only the 16 latent cols

    # ---- K sequential Sylvester steps, unrolled in Python (K = 2) ------------------
    # z' = z + tanh(z @ Q @ R_hat^T + b) @ (Q @ R)^T, with Q = eye(16, 20) folded into
    # the zero-padded zp.  M1 = diag(v) + strict_tril(RR) and M2 = triu(RR) cover both
    # the permute=True (even k) and permute=False (odd k) cases by flipping which side
    # of the contraction is transposed.
    for k in range(FLOW_LEN):
        base = k * ROW_STRIDE
        RR = rvb_ref[base:base + NUM_HIDDEN, :]                                # (20, 20)
        v = jnp.broadcast_to(rvb_ref[base + NUM_HIDDEN:base + NUM_HIDDEN + 1, :],
                             (NUM_HIDDEN, NUM_HIDDEN))
        bf = rvb_ref[base + NUM_HIDDEN + 1:base + NUM_HIDDEN + 2, :]           # (1, 20)

        m1 = jnp.where(ri == ci, v, jnp.where(ri > ci, RR, 0.0))   # diag(v) + strict_tril
        m2 = jnp.where(ci >= ri, RR, 0.0)                          # triu(RR)

        if k % 2 == 0:
            # permute=True: R_hat = diag(v)+strict_tril(RR), R = triu(RR)^T
            pre = lax.dot_general(zp, m1, (((1,), (1,)), ((), ())),
                                  preferred_element_type=f32) + bf       # zp @ R_hat^T
            upd = lax.dot_general(jnp.tanh(pre), m2, (((1,), (0,)), ((), ())),
                                  preferred_element_type=f32)            # t @ R^T
        else:
            # permute=False: R_hat^T = diag(v)+strict_tril(RR), R = triu(RR)
            pre = lax.dot_general(zp, m1, (((1,), (0,)), ((), ())),
                                  preferred_element_type=f32) + bf       # zp @ R_hat^T
            upd = lax.dot_general(jnp.tanh(pre), m2, (((1,), (1,)), ((), ())),
                                  preferred_element_type=f32)            # t @ R^T
        zp = zp + upd * col_keep        # only the first 16 (latent) columns are updated

    # ---- decode: recon = fc4(relu(fc3(z))), fc3 weight zero-padded to 20 rows ------
    hdec = jnp.dot(zp, w3_ref[...], preferred_element_type=f32) + b3_ref[...]
    hdec = jnp.maximum(hdec, 0.0)
    recon = jnp.dot(hdec, w4_ref[...], preferred_element_type=f32) + b4_ref[...]

    # ---- single lane-dense 128-wide output slab: [heads(40) | recon(64) | 0(24)] ---
    out_ref[:, 0:HEADS_W] = heads
    out_ref[:, HEADS_W:HEADS_W + INPUT_DIM] = recon
    out_ref[:, HEADS_W + INPUT_DIM:] = jnp.zeros((n, OUT_W - HEADS_W - INPUT_DIM), f32)


# ----------------------------------- wrapper ---------------------------------------

@jax.jit
def vaenf_forward(x, params, eps):
    xf = x.reshape(-1, INPUT_DIM)                          # x.view(-1, input_dim)
    n = xf.shape[0]

    zc = jnp.zeros((HIDDEN, PAD), jnp.float32)
    zb = jnp.zeros((1, PAD), jnp.float32)
    wh = jnp.concatenate([params['w21'], zc, params['w22'], zc], axis=1)     # (400, 40)
    bh = jnp.concatenate([params['b21'], zb, params['b22'], zb], axis=1)     # (1, 40)
    w3p = jnp.concatenate([params['w3'],
                           jnp.zeros((PAD, HIDDEN), jnp.float32)], axis=0)   # (20, 400)
    eps_p = jnp.pad(eps, ((0, 0), (0, PAD)))                                 # (N, 20)

    out = pl.pallas_call(
        _vaenf_kernel,
        out_shape=jax.ShapeDtypeStruct((n, OUT_W), jnp.float32),
        scratch_shapes=[pltpu.VMEM((1, FLOW_LEN * N_PARAMS), jnp.float32),
                        pltpu.VMEM((FLOW_LEN * ROW_STRIDE, NUM_HIDDEN), jnp.float32)],
    )(xf, eps_p, params['w1'], params['b1'], wh, bh,
      params['w23'], params['b23'], w3p, params['b3'], params['w4'], params['b4'])

    mu = out[:, :NUM_LATENT]
    logvar = out[:, NUM_HIDDEN:NUM_HIDDEN + NUM_LATENT]
    recon = out[:, HEADS_W:HEADS_W + INPUT_DIM]
    # TODO(synk): log_det side-effect of Transformation.forward (training mode) and the
    # MLP_2layer energy head (energy=True path; class not provided) are not computed.
    # TODO(synk): for large batches add a batch-tiled grid axis ("parallel") plus a
    # two-pass structure for the batch-mean flow params; at N=8 one grid-less call is
    # the right shape (the kernel is weight-DMA / latency bound, not compute bound).
    return recon, mu, logvar


# ------------------------- pure-JAX reference (PyTorch-faithful) -------------------

def unwrap_flow_params(pmean):
    M = NUM_HIDDEN
    L = NUM_LATENT
    eye_M = jnp.eye(M, dtype=jnp.float32)
    Q = jnp.eye(L, M, dtype=jnp.float32)
    A_list, C_list, b_list = [], [], []
    for k in range(FLOW_LEN):
        pk = pmean[k * N_PARAMS:(k + 1) * N_PARAMS]
        RR = pk[:M * M].reshape(M, M)
        R = jnp.triu(RR)
        R_hat = jnp.tril(RR)
        if k % 2 == 0:          # permute=True for even k
            R = R.T
        else:
            R_hat = R_hat.T
        v = pk[M * M:M * M + M]
        R_hat = eye_M * jnp.diag(v) + (1.0 - eye_M) * R_hat
        b = pk[M * M + M:]
        A_list.append(Q @ R_hat.T)        # (L, M)
        C_list.append((Q @ R).T)          # (M, L)
        b_list.append(b.reshape(1, M))
    return jnp.stack(A_list), jnp.stack(C_list), jnp.stack(b_list)


def vaenf_reference(x, p, eps):
    xf = x.reshape(-1, INPUT_DIM)
    hp = 'highest'
    h = jax.nn.relu(jnp.dot(xf, p['w1'], precision=hp) + p['b1'][0])
    mu = jnp.dot(h, p['w21'], precision=hp) + p['b21'][0]
    logvar = jnp.dot(h, p['w22'], precision=hp) + p['b22'][0]
    pmean = (jnp.dot(h, p['w23'], precision=hp) + p['b23'][0]).mean(axis=0)
    A, C, bf = unwrap_flow_params(pmean)
    z = mu + eps * jnp.exp(0.5 * logvar)
    for k in range(FLOW_LEN):
        z = z + jnp.dot(jnp.tanh(jnp.dot(z, A[k], precision=hp) + bf[k]), C[k], precision=hp)
    hdec = jax.nn.relu(jnp.dot(z, p['w3'], precision=hp) + p['b3'][0])
    recon = jnp.dot(hdec, p['w4'], precision=hp) + p['b4'][0]
    return recon, mu, logvar


# ----------------------------------- main -------------------------------------------

def _init_linear(key, fan_in, fan_out):
    kw, kb = jax.random.split(key)
    bound = 1.0 / np.sqrt(fan_in)
    w = jax.random.uniform(kw, (fan_in, fan_out), jnp.float32, -bound, bound)
    b = jax.random.uniform(kb, (1, fan_out), jnp.float32, -bound, bound)
    return w, b


if __name__ == "__main__":
    key = jax.random.PRNGKey(0)
    keys = jax.random.split(key, 8)

    params = {}
    params['w1'],  params['b1']  = _init_linear(keys[0], INPUT_DIM, HIDDEN)
    params['w21'], params['b21'] = _init_linear(keys[1], HIDDEN, NUM_LATENT)
    params['w22'], params['b22'] = _init_linear(keys[2], HIDDEN, NUM_LATENT)
    params['w23'], params['b23'] = _init_linear(keys[3], HIDDEN, N_PARAMS * FLOW_LEN)
    params['w3'],  params['b3']  = _init_linear(keys[4], NUM_LATENT, HIDDEN)
    params['w4'],  params['b4']  = _init_linear(keys[5], HIDDEN, INPUT_DIM)

    # input flattens to (8, 64); eps replaces torch.randn_like with a fixed key
    x = jax.random.normal(keys[6], (2, 4, INPUT_DIM), jnp.float32)
    eps = jax.random.normal(keys[7], (2 * 4, NUM_LATENT), jnp.float32)

    recon, mu, logvar = vaenf_forward(x, params, eps)
    jax.block_until_ready((recon, mu, logvar))

    r_ref, mu_ref, lv_ref = vaenf_reference(x, params, eps)
    np.testing.assert_allclose(np.asarray(mu), np.asarray(mu_ref), rtol=1e-2, atol=1e-2)
    np.testing.assert_allclose(np.asarray(logvar), np.asarray(lv_ref), rtol=1e-2, atol=1e-2)
    np.testing.assert_allclose(np.asarray(recon), np.asarray(r_ref), rtol=1e-2, atol=1e-2)

    print("KERNEL_OK")
</pallas_src>

<mosaic_0001>
module attributes {stable_mosaic.version = 11 : i64} {
  func.func @_vaenf_kernel(%arg0: memref<8x64xf32, #tpu.memory_space<vmem>>, %arg1: memref<8x20xf32, #tpu.memory_space<vmem>>, %arg2: memref<64x400xf32, #tpu.memory_space<vmem>>, %arg3: memref<1x400xf32, #tpu.memory_space<vmem>>, %arg4: memref<400x40xf32, #tpu.memory_space<vmem>>, %arg5: memref<1x40xf32, #tpu.memory_space<vmem>>, %arg6: memref<400x880xf32, #tpu.memory_space<vmem>>, %arg7: memref<1x880xf32, #tpu.memory_space<vmem>>, %arg8: memref<20x400xf32, #tpu.memory_space<vmem>>, %arg9: memref<1x400xf32, #tpu.memory_space<vmem>>, %arg10: memref<400x64xf32, #tpu.memory_space<vmem>>, %arg11: memref<1x64xf32, #tpu.memory_space<vmem>>, %arg12: memref<8x128xf32, #tpu.memory_space<vmem>>, %arg13: memref<1x880xf32, #tpu.memory_space<vmem>>, %arg14: memref<48x20xf32, #tpu.memory_space<vmem>>) attributes {dimension_semantics = [], scalar_prefetch = 0 : i64, scratch_operands = 2 : i64, tpu.core_type = #tpu.core_type<tc>} {
    %c0 = arith.constant 0 : index
    %c0_0 = arith.constant 0 : index
    %0 = vector.load %arg0[%c0, %c0_0] : memref<8x64xf32, #tpu.memory_space<vmem>>, vector<8x64xf32>
    %c0_1 = arith.constant 0 : index
    %c0_2 = arith.constant 0 : index
    %1 = vector.load %arg2[%c0_1, %c0_2] : memref<64x400xf32, #tpu.memory_space<vmem>>, vector<64x400xf32>
    %cst = arith.constant dense<0.000000e+00> : vector<8x400xf32>
    %2 = tpu.matmul %0, %1, %cst {dimension_numbers = #tpu.dot_dimension_numbers<[1], [0], [0], [1], [0, 0, 1, 1], [], []>} : vector<8x64xf32>, vector<64x400xf32>, vector<8x400xf32> -> vector<8x400xf32>
    %c0_3 = arith.constant 0 : index
    %c0_4 = arith.constant 0 : index
    %3 = vector.load %arg3[%c0_3, %c0_4] : memref<1x400xf32, #tpu.memory_space<vmem>>, vector<1x400xf32>
    %4 = vector.broadcast %3 : vector<1x400xf32> to vector<8x400xf32>
    %5 = arith.addf %2, %4 : vector<8x400xf32>
    %cst_5 = arith.constant 0.000000e+00 : f32
    %6 = vector.broadcast %cst_5 : f32 to vector<8x400xf32>
    %7 = arith.maximumf %5, %6 : vector<8x400xf32>
    %c0_6 = arith.constant 0 : index
    %c0_7 = arith.constant 0 : index
    %8 = vector.load %arg4[%c0_6, %c0_7] : memref<400x40xf32, #tpu.memory_space<vmem>>, vector<400x40xf32>
    %cst_8 = arith.constant dense<0.000000e+00> : vector<8x40xf32>
    %9 = tpu.matmul %7, %8, %cst_8 {dimension_numbers = #tpu.dot_dimension_numbers<[1], [0], [0], [1], [0, 0, 1, 1], [], []>} : vector<8x400xf32>, vector<400x40xf32>, vector<8x40xf32> -> vector<8x40xf32>
    %c0_9 = arith.constant 0 : index
    %c0_10 = arith.constant 0 : index
    %10 = vector.load %arg5[%c0_9, %c0_10] : memref<1x40xf32, #tpu.memory_space<vmem>>, vector<1x40xf32>
    %11 = vector.broadcast %10 : vector<1x40xf32> to vector<8x40xf32>
    %12 = arith.addf %9, %11 : vector<8x40xf32>
    %cst_11 = arith.constant dense<0.000000e+00> : vector<400xf32>
    %13 = vector.multi_reduction <add>, %7, %cst_11 [0] : vector<8x400xf32> to vector<400xf32>
    %14 = vector.shape_cast %13 : vector<400xf32> to vector<1x400xf32>
    %cst_12 = arith.constant 8.000000e+00 : f32
    %15 = vector.broadcast %cst_12 : f32 to vector<1x400xf32>
    %16 = arith.divf %14, %15 : vector<1x400xf32>
    %c0_13 = arith.constant 0 : index
    %c0_14 = arith.constant 0 : index
    %17 = vector.load %arg6[%c0_13, %c0_14] : memref<400x880xf32, #tpu.memory_space<vmem>>, vector<400x880xf32>
    %cst_15 = arith.constant dense<0.000000e+00> : vector<1x880xf32>
    %18 = tpu.matmul %16, %17, %cst_15 {dimension_numbers = #tpu.dot_dimension_numbers<[1], [0], [0], [1], [0, 0, 1, 1], [], []>} : vector<1x400xf32>, vector<400x880xf32>, vector<1x880xf32> -> vector<1x880xf32>
    %c0_16 = arith.constant 0 : index
    %c0_17 = arith.constant 0 : index
    %19 = vector.load %arg7[%c0_16, %c0_17] : memref<1x880xf32, #tpu.memory_space<vmem>>, vector<1x880xf32>
    %20 = arith.addf %18, %19 : vector<1x880xf32>
    %c0_18 = arith.constant 0 : index
    %c0_19 = arith.constant 0 : index
    %21 = vector.load %arg13[%c0_18, %c0_19] : memref<1x880xf32, #tpu.memory_space<vmem>>, vector<1x880xf32>
    tpu.vector_store %arg13[%c0_18, %c0_19], %20 {strides = array<i32>} : memref<1x880xf32, #tpu.memory_space<vmem>>, vector<1x880xf32>,
    %c0_20 = arith.constant 0 : index
    %c0_21 = arith.constant 0 : index
    %22 = vector.load %arg13[%c0_20, %c0_21] : memref<1x880xf32, #tpu.memory_space<vmem>>, vector<1x20xf32>
    %c0_22 = arith.constant 0 : index
    %c0_23 = arith.constant 0 : index
    %23 = vector.load %arg14[%c0_22, %c0_23] : memref<48x20xf32, #tpu.memory_space<vmem>>, vector<1x20xf32>
    tpu.vector_store %arg14[%c0_22, %c0_23], %22 {strides = array<i32>} : memref<48x20xf32, #tpu.memory_space<vmem>>, vector<1x20xf32>,
    %c0_24 = arith.constant 0 : index
    %c20 = arith.constant 20 : index
    %24 = vector.load %arg13[%c0_24, %c20] : memref<1x880xf32, #tpu.memory_space<vmem>>, vector<1x20xf32>
    %c1 = arith.constant 1 : index
    %c0_25 = arith.constant 0 : index
    %25 = vector.load %arg14[%c1, %c0_25] : memref<48x20xf32, #tpu.memory_space<vmem>>, vector<1x20xf32>
    tpu.vector_store %arg14[%c1, %c0_25], %24 {strides = array<i32>} : memref<48x20xf32, #tpu.memory_space<vmem>>, vector<1x20xf32>,
    %c0_26 = arith.constant 0 : index
    %c40 = arith.constant 40 : index
    %26 = vector.load %arg13[%c0_26, %c40] : memref<1x880xf32, #tpu.memory_space<vmem>>, vector<1x20xf32>
    %c2 = arith.constant 2 : index
    %c0_27 = arith.constant 0 : index
    %27 = vector.load %arg14[%c2, %c0_27] : memref<48x20xf32, #tpu.memory_space<vmem>>, vector<1x20xf32>
    tpu.vector_store %arg14[%c2, %c0_27], %26 {strides = array<i32>} : memref<48x20xf32, #tpu.memory_space<vmem>>, vector<1x20xf32>,
    %c0_28 = arith.constant 0 : index
    %c60 = arith.constant 60 : index
    %28 = vector.load %arg13[%c0_28, %c60] : memref<1x880xf32, #tpu.memory_space<vmem>>, vector<1x20xf32>
    %c3 = arith.constant 3 : index
    %c0_29 = arith.constant 0 : index
    %29 = vector.load %arg14[%c3, %c0_29] : memref<48x20xf32, #tpu.memory_space<vmem>>, vector<1x20xf32>
    tpu.vector_store %arg14[%c3, %c0_29], %28 {strides = array<i32>} : memref<48x20xf32, #tpu.memory_space<vmem>>, vector<1x20xf32>,
    %c0_30 = arith.constant 0 : index
    %c80 = arith.constant 80 : index
    %30 = vector.load %arg13[%c0_30, %c80] : memref<1x880xf32, #tpu.memory_space<vmem>>, vector<1x20xf32>
    %c4 = arith.constant 4 : index
    %c0_31 = arith.constant 0 : index
    %31 = vector.load %arg14[%c4, %c0_31] : memref<48x20xf32, #tpu.memory_space<vmem>>, vector<1x20xf32>
    tpu.vector_store %arg14[%c4, %c0_31], %30 {strides = array<i32>} : memref<48x20xf32, #tpu.memory_space<vmem>>, vector<1x20xf32>,
    %c0_32 = arith.constant 0 : index
    %c100 = arith.constant 100 : index
    %32 = vector.load %arg13[%c0_32, %c100] : memref<1x880xf32, #tpu.memory_space<vmem>>, vector<1x20xf32>
    %c5 = arith.constant 5 : index
    %c0_33 = arith.constant 0 : index
    %33 = vector.load %arg14[%c5, %c0_33] : memref<48x20xf32, #tpu.memory_space<vmem>>, vector<1x20xf32>
    tpu.vector_store %arg14[%c5, %c0_33], %32 {strides = array<i32>} : memref<48x20xf32, #tpu.memory_space<vmem>>, vector<1x20xf32>,
    %c0_34 = arith.constant 0 : index
    %c120 = arith.constant 120 : index
    %34 = vector.load %arg13[%c0_34, %c120] : memref<1x880xf32, #tpu.memory_space<vmem>>, vector<1x20xf32>
    %c6 = arith.constant 6 : index
    %c0_35 = arith.constant 0 : index
    %35 = vector.load %arg14[%c6, %c0_35] : memref<48x20xf32, #tpu.memory_space<vmem>>, vector<1x20xf32>
    tpu.vector_store %arg14[%c6, %c0_35], %34 {strides = array<i32>} : memref<48x20xf32, #tpu.memory_space<vmem>>, vector<1x20xf32>,
    %c0_36 = arith.constant 0 : index
    %c140 = arith.constant 140 : index
    %36 = vector.load %arg13[%c0_36, %c140] : memref<1x880xf32, #tpu.memory_space<vmem>>, vector<1x20xf32>
    %c7 = arith.constant 7 : index
    %c0_37 = arith.constant 0 : index
    %37 = vector.load %arg14[%c7, %c0_37] : memref<48x20xf32, #tpu.memory_space<vmem>>, vector<1x20xf32>
    tpu.vector_store %arg14[%c7, %c0_37], %36 {strides = array<i32>} : memref<48x20xf32, #tpu.memory_space<vmem>>, vector<1x20xf32>,
    %c0_38 = arith.constant 0 : index
    %c160 = arith.constant 160 : index
    %38 = vector.load %arg13[%c0_38, %c160] : memref<1x880xf32, #tpu.memory_space<vmem>>, vector<1x20xf32>
    %c8 = arith.constant 8 : index
    %c0_39 = arith.constant 0 : index
    %39 = vector.load %arg14[%c8, %c0_39] : memref<48x20xf32, #tpu.memory_space<vmem>>, vector<1x20xf32>
    tpu.vector_store %arg14[%c8, %c0_39], %38 {strides = array<i32>} : memref<48x20xf32, #tpu.memory_space<vmem>>, vector<1x20xf32>,
    %c0_40 = arith.constant 0 : index
    %c180 = arith.constant 180 : index
    %40 = vector.load %arg13[%c0_40, %c180] : memref<1x880xf32, #tpu.memory_space<vmem>>, vector<1x20xf32>
    %c9 = arith.constant 9 : index
    %c0_41 = arith.constant 0 : index
    %41 = vector.load %arg14[%c9, %c0_41] : memref<48x20xf32, #tpu.memory_space<vmem>>, vector<1x20xf32>
    tpu.vector_store %arg14[%c9, %c0_41], %40 {strides = array<i32>} : memref<48x20xf32, #tpu.memory_space<vmem>>, vector<1x20xf32>,
    %c0_42 = arith.constant 0 : index
    %c200 = arith.constant 200 : index
    %42 = vector.load %arg13[%c0_42, %c200] : memref<1x880xf32, #tpu.memory_space<vmem>>, vector<1x20xf32>
    %c10 = arith.constant 10 : index
    %c0_43 = arith.constant 0 : index
    %43 = vector.load %arg14[%c10, %c0_43] : memref<48x20xf32, #tpu.memory_space<vmem>>, vector<1x20xf32>
    tpu.vector_store %arg14[%c10, %c0_43], %42 {strides = array<i32>} : memref<48x20xf32, #tpu.memory_space<vmem>>, vector<1x20xf32>,
    %c0_44 = arith.constant 0 : index
    %c220 = arith.constant 220 : index
    %44 = vector.load %arg13[%c0_44, %c220] : memref<1x880xf32, #tpu.memory_space<vmem>>, vector<1x20xf32>
    %c11 = arith.constant 11 : index
    %c0_45 = arith.constant 0 : index
    %45 = vector.load %arg14[%c11, %c0_45] : memref<48x20xf32, #tpu.memory_space<vmem>>, vector<1x20xf32>
    tpu.vector_store %arg14[%c11, %c0_45], %44 {strides = array<i32>} : memref<48x20xf32, #tpu.memory_space<vmem>>, vector<1x20xf32>,
    %c0_46 = arith.constant 0 : index
    %c240 = arith.constant 240 : index
    %46 = vector.load %arg13[%c0_46, %c240] : memref<1x880xf32, #tpu.memory_space<vmem>>, vector<1x20xf32>
    %c12 = arith.constant 12 : index
    %c0_47 = arith.constant 0 : index
    %47 = vector.load %arg14[%c12, %c0_47] : memref<48x20xf32, #tpu.memory_space<vmem>>, vector<1x20xf32>
    tpu.vector_store %arg14[%c12, %c0_47], %46 {strides = array<i32>} : memref<48x20xf32, #tpu.memory_space<vmem>>, vector<1x20xf32>,
    %c0_48 = arith.constant 0 : index
    %c260 = arith.constant 260 : index
    %48 = vector.load %arg13[%c0_48, %c260] : memref<1x880xf32, #tpu.memory_space<vmem>>, vector<1x20xf32>
    %c13 = arith.constant 13 : index
    %c0_49 = arith.constant 0 : index
    %49 = vector.load %arg14[%c13, %c0_49] : memref<48x20xf32, #tpu.memory_space<vmem>>, vector<1x20xf32>
    tpu.vector_store %arg14[%c13, %c0_49], %48 {strides = array<i32>} : memref<48x20xf32, #tpu.memory_space<vmem>>, vector<1x20xf32>,
    %c0_50 = arith.constant 0 : index
    %c280 = arith.constant 280 : index
    %50 = vector.load %arg13[%c0_50, %c280] : memref<1x880xf32, #tpu.memory_space<vmem>>, vector<1x20xf32>
    %c14 = arith.constant 14 : index
    %c0_51 = arith.constant 0 : index
    %51 = vector.load %arg14[%c14, %c0_51] : memref<48x20xf32, #tpu.memory_space<vmem>>, vector<1x20xf32>
    tpu.vector_store %arg14[%c14, %c0_51], %50 {strides = array<i32>} : memref<48x20xf32, #tpu.memory_space<vmem>>, vector<1x20xf32>,
    %c0_52 = arith.constant 0 : index
    %c300 = arith.constant 300 : index
    %52 = vector.load %arg13[%c0_52, %c300] : memref<1x880xf32, #tpu.memory_space<vmem>>, vector<1x20xf32>
    %c15 = arith.constant 15 : index
    %c0_53 = arith.constant 0 : index
    %53 = vector.load %arg14[%c15, %c0_53] : memref<48x20xf32, #tpu.memory_space<vmem>>, vector<1x20xf32>
    tpu.vector_store %arg14[%c15, %c0_53], %52 {strides = array<i32>} : memref<48x20xf32, #tpu.memory_space<vmem>>, vector<1x20xf32>,
    %c0_54 = arith.constant 0 : index
    %c320 = arith.constant 320 : index
    %54 = vector.load %arg13[%c0_54, %c320] : memref<1x880xf32, #tpu.memory_space<vmem>>, vector<1x20xf32>
    %c16 = arith.constant 16 : index
    %c0_55 = arith.constant 0 : index
    %55 = vector.load %arg14[%c16, %c0_55] : memref<48x20xf32, #tpu.memory_space<vmem>>, vector<1x20xf32>
    tpu.vector_store %arg14[%c16, %c0_55], %54 {strides = array<i32>} : memref<48x20xf32, #tpu.memory_space<vmem>>, vector<1x20xf32>,
    %c0_56 = arith.constant 0 : index
    %c340 = arith.constant 340 : index
    %56 = vector.load %arg13[%c0_56, %c340] : memref<1x880xf32, #tpu.memory_space<vmem>>, vector<1x20xf32>
    %c17 = arith.constant 17 : index
    %c0_57 = arith.constant 0 : index
    %57 = vector.load %arg14[%c17, %c0_57] : memref<48x20xf32, #tpu.memory_space<vmem>>, vector<1x20xf32>
    tpu.vector_store %arg14[%c17, %c0_57], %56 {strides = array<i32>} : memref<48x20xf32, #tpu.memory_space<vmem>>, vector<1x20xf32>,
    %c0_58 = arith.constant 0 : index
    %c360 = arith.constant 360 : index
    %58 = vector.load %arg13[%c0_58, %c360] : memref<1x880xf32, #tpu.memory_space<vmem>>, vector<1x20xf32>
    %c18 = arith.constant 18 : index
    %c0_59 = arith.constant 0 : index
    %59 = vector.load %arg14[%c18, %c0_59] : memref<48x20xf32, #tpu.memory_space<vmem>>, vector<1x20xf32>
    tpu.vector_store %arg14[%c18, %c0_59], %58 {strides = array<i32>} : memref<48x20xf32, #tpu.memory_space<vmem>>, vector<1x20xf32>,
    %c0_60 = arith.constant 0 : index
    %c380 = arith.constant 380 : index
    %60 = vector.load %arg13[%c0_60, %c380] : memref<1x880xf32, #tpu.memory_space<vmem>>, vector<1x20xf32>
    %c19 = arith.constant 19 : index
    %c0_61 = arith.constant 0 : index
    %61 = vector.load %arg14[%c19, %c0_61] : memref<48x20xf32, #tpu.memory_space<vmem>>, vector<1x20xf32>
    tpu.vector_store %arg14[%c19, %c0_61], %60 {strides = array<i32>} : memref<48x20xf32, #tpu.memory_space<vmem>>, vector<1x20xf32>,
    %c0_62 = arith.constant 0 : index
    %c400 = arith.constant 400 : index
    %62 = vector.load %arg13[%c0_62, %c400] : memref<1x880xf32, #tpu.memory_space<vmem>>, vector<1x20xf32>
    %c20_63 = arith.constant 20 : index
    %c0_64 = arith.constant 0 : index
    %63 = vector.load %arg14[%c20_63, %c0_64] : memref<48x20xf32, #tpu.memory_space<vmem>>, vector<1x20xf32>
    tpu.vector_store %arg14[%c20_63, %c0_64], %62 {strides = array<i32>} : memref<48x20xf32, #tpu.memory_space<vmem>>, vector<1x20xf32>,
    %c0_65 = arith.constant 0 : index
    %c420 = arith.constant 420 : index
    %64 = vector.load %arg13[%c0_65, %c420] : memref<1x880xf32, #tpu.memory_space<vmem>>, vector<1x20xf32>
    %c21 = arith.constant 21 : index
    %c0_66 = arith.constant 0 : index
    %65 = vector.load %arg14[%c21, %c0_66] : memref<48x20xf32, #tpu.memory_space<vmem>>, vector<1x20xf32>
    tpu.vector_store %arg14[%c21, %c0_66], %64 {strides = array<i32>} : memref<48x20xf32, #tpu.memory_space<vmem>>, vector<1x20xf32>,
    %c0_67 = arith.constant 0 : index
    %c440 = arith.constant 440 : index
    %66 = vector.load %arg13[%c0_67, %c440] : memref<1x880xf32, #tpu.memory_space<vmem>>, vector<1x20xf32>
    %c24 = arith.constant 24 : index
    %c0_68 = arith.constant 0 : index
    %67 = vector.load %arg14[%c24, %c0_68] : memref<48x20xf32, #tpu.memory_space<vmem>>, vector<1x20xf32>
    tpu.vector_store %arg14[%c24, %c0_68], %66 {strides = array<i32>} : memref<48x20xf32, #tpu.memory_space<vmem>>, vector<1x20xf32>,
    %c0_69 = arith.constant 0 : index
    %c460 = arith.constant 460 : index
    %68 = vector.load %arg13[%c0_69, %c460] : memref<1x880xf32, #tpu.memory_space<vmem>>, vector<1x20xf32>
    %c25 = arith.constant 25 : index
    %c0_70 = arith.constant 0 : index
    %69 = vector.load %arg14[%c25, %c0_70] : memref<48x20xf32, #tpu.memory_space<vmem>>, vector<1x20xf32>
    tpu.vector_store %arg14[%c25, %c0_70], %68 {strides = array<i32>} : memref<48x20xf32, #tpu.memory_space<vmem>>, vector<1x20xf32>,
    %c0_71 = arith.constant 0 : index
    %c480 = arith.constant 480 : index
    %70 = vector.load %arg13[%c0_71, %c480] : memref<1x880xf32, #tpu.memory_space<vmem>>, vector<1x20xf32>
    %c26 = arith.constant 26 : index
    %c0_72 = arith.constant 0 : index
    %71 = vector.load %arg14[%c26, %c0_72] : memref<48x20xf32, #tpu.memory_space<vmem>>, vector<1x20xf32>
    tpu.vector_store %arg14[%c26, %c0_72], %70 {strides = array<i32>} : memref<48x20xf32, #tpu.memory_space<vmem>>, vector<1x20xf32>,
    %c0_73 = arith.constant 0 : index
    %c500 = arith.constant 500 : index
    %72 = vector.load %arg13[%c0_73, %c500] : memref<1x880xf32, #tpu.memory_space<vmem>>, vector<1x20xf32>
    %c27 = arith.constant 27 : index
    %c0_74 = arith.constant 0 : index
    %73 = vector.load %arg14[%c27, %c0_74] : memref<48x20xf32, #tpu.memory_space<vmem>>, vector<1x20xf32>
    tpu.vector_store %arg14[%c27, %c0_74], %72 {strides = array<i32>} : memref<48x20xf32, #tpu.memory_space<vmem>>, vector<1x20xf32>,
    %c0_75 = arith.constant 0 : index
    %c520 = arith.constant 520 : index
    %74 = vector.load %arg13[%c0_75, %c520] : memref<1x880xf32, #tpu.memory_space<vmem>>, vector<1x20xf32>
    %c28 = arith.constant 28 : index
    %c0_76 = arith.constant 0 : index
    %75 = vector.load %arg14[%c28, %c0_76] : memref<48x20xf32, #tpu.memory_space<vmem>>, vector<1x20xf32>
    tpu.vector_store %arg14[%c28, %c0_76], %74 {strides = array<i32>} : memref<48x20xf32, #tpu.memory_space<vmem>>, vector<1x20xf32>,
    %c0_77 = arith.constant 0 : index
    %c540 = arith.constant 540 : index
    %76 = vector.load %arg13[%c0_77, %c540] : memref<1x880xf32, #tpu.memory_space<vmem>>, vector<1x20xf32>
    %c29 = arith.constant 29 : index
    %c0_78 = arith.constant 0 : index
    %77 = vector.load %arg14[%c29, %c0_78] : memref<48x20xf32, #tpu.memory_space<vmem>>, vector<1x20xf32>
    tpu.vector_store %arg14[%c29, %c0_78], %76 {strides = array<i32>} : memref<48x20xf32, #tpu.memory_space<vmem>>, vector<1x20xf32>,
    %c0_79 = arith.constant 0 : index
    %c560 = arith.constant 560 : index
    %78 = vector.load %arg13[%c0_79, %c560] : memref<1x880xf32, #tpu.memory_space<vmem>>, vector<1x20xf32>
    %c30 = arith.constant 30 : index
    %c0_80 = arith.constant 0 : index
    %79 = vector.load %arg14[%c30, %c0_80] : memref<48x20xf32, #tpu.memory_space<vmem>>, vector<1x20xf32>
    tpu.vector_store %arg14[%c30, %c0_80], %78 {strides = array<i32>} : memref<48x20xf32, #tpu.memory_space<vmem>>, vector<1x20xf32>,
    %c0_81 = arith.constant 0 : index
    %c580 = arith.constant 580 : index
    %80 = vector.load %arg13[%c0_81, %c580] : memref<1x880xf32, #tpu.memory_space<vmem>>, vector<1x20xf32>
    %c31 = arith.constant 31 : index
    %c0_82 = arith.constant 0 : index
    %81 = vector.load %arg14[%c31, %c0_82] : memref<48x20xf32, #tpu.memory_space<vmem>>, vector<1x20xf32>
    tpu.vector_store %arg14[%c31, %c0_82], %80 {strides = array<i32>} : memref<48x20xf32, #tpu.memory_space<vmem>>, vector<1x20xf32>,
    %c0_83 = arith.constant 0 : index
    %c600 = arith.constant 600 : index
    %82 = vector.load %arg13[%c0_83, %c600] : memref<1x880xf32, #tpu.memory_space<vmem>>, vector<1x20xf32>
    %c32 = arith.constant 32 : index
    %c0_84 = arith.constant 0 : index
    %83 = vector.load %arg14[%c32, %c0_84] : memref<48x20xf32, #tpu.memory_space<vmem>>, vector<1x20xf32>
    tpu.vector_store %arg14[%c32, %c0_84], %82 {strides = array<i32>} : memref<48x20xf32, #tpu.memory_space<vmem>>, vector<1x20xf32>,
    %c0_85 = arith.constant 0 : index
    %c620 = arith.constant 620 : index
    %84 = vector.load %arg13[%c0_85, %c620] : memref<1x880xf32, #tpu.memory_space<vmem>>, vector<1x20xf32>
    %c33 = arith.constant 33 : index
    %c0_86 = arith.constant 0 : index
    %85 = vector.load %arg14[%c33, %c0_86] : memref<48x20xf32, #tpu.memory_space<vmem>>, vector<1x20xf32>
    tpu.vector_store %arg14[%c33, %c0_86], %84 {strides = array<i32>} : memref<48x20xf32, #tpu.memory_space<vmem>>, vector<1x20xf32>,
    %c0_87 = arith.constant 0 : index
    %c640 = arith.constant 640 : index
    %86 = vector.load %arg13[%c0_87, %c640] : memref<1x880xf32, #tpu.memory_space<vmem>>, vector<1x20xf32>
    %c34 = arith.constant 34 : index
    %c0_88 = arith.constant 0 : index
    %87 = vector.load %arg14[%c34, %c0_88] : memref<48x20xf32, #tpu.memory_space<vmem>>, vector<1x20xf32>
    tpu.vector_store %arg14[%c34, %c0_88], %86 {strides = array<i32>} : memref<48x20xf32, #tpu.memory_space<vmem>>, vector<1x20xf32>,
    %c0_89 = arith.constant 0 : index
    %c660 = arith.constant 660 : index
    %88 = vector.load %arg13[%c0_89, %c660] : memref<1x880xf32, #tpu.memory_space<vmem>>, vector<1x20xf32>
    %c35 = arith.constant 35 : index
    %c0_90 = arith.constant 0 : index
    %89 = vector.load %arg14[%c35, %c0_90] : memref<48x20xf32, #tpu.memory_space<vmem>>, vector<1x20xf32>
    tpu.vector_store %arg14[%c35, %c0_90], %88 {strides = array<i32>} : memref<48x20xf32, #tpu.memory_space<vmem>>, vector<1x20xf32>,
    %c0_91 = arith.constant 0 : index
    %c680 = arith.constant 680 : index
    %90 = vector.load %arg13[%c0_91, %c680] : memref<1x880xf32, #tpu.memory_space<vmem>>, vector<1x20xf32>
    %c36 = arith.constant 36 : index
    %c0_92 = arith.constant 0 : index
    %91 = vector.load %arg14[%c36, %c0_92] : memref<48x20xf32, #tpu.memory_space<vmem>>, vector<1x20xf32>
    tpu.vector_store %arg14[%c36, %c0_92], %90 {strides = array<i32>} : memref<48x20xf32, #tpu.memory_space<vmem>>, vector<1x20xf32>,
    %c0_93 = arith.constant 0 : index
    %c700 = arith.constant 700 : index
    %92 = vector.load %arg13[%c0_93, %c700] : memref<1x880xf32, #tpu.memory_space<vmem>>, vector<1x20xf32>
    %c37 = arith.constant 37 : index
    %c0_94 = arith.constant 0 : index
    %93 = vector.load %arg14[%c37, %c0_94] : memref<48x20xf32, #tpu.memory_space<vmem>>, vector<1x20xf32>
    tpu.vector_store %arg14[%c37, %c0_94], %92 {strides = array<i32>} : memref<48x20xf32, #tpu.memory_space<vmem>>, vector<1x20xf32>,
    %c0_95 = arith.constant 0 : index
    %c720 = arith.constant 720 : index
    %94 = vector.load %arg13[%c0_95, %c720] : memref<1x880xf32, #tpu.memory_space<vmem>>, vector<1x20xf32>
    %c38 = arith.constant 38 : index
    %c0_96 = arith.constant 0 : index
    %95 = vector.load %arg14[%c38, %c0_96] : memref<48x20xf32, #tpu.memory_space<vmem>>, vector<1x20xf32>
    tpu.vector_store %arg14[%c38, %c0_96], %94 {strides = array<i32>} : memref<48x20xf32, #tpu.memory_space<vmem>>, vector<1x20xf32>,
    %c0_97 = arith.constant 0 : index
    %c740 = arith.constant 740 : index
    %96 = vector.load %arg13[%c0_97, %c740] : memref<1x880xf32, #tpu.memory_space<vmem>>, vector<1x20xf32>
    %c39 = arith.constant 39 : index
    %c0_98 = arith.constant 0 : index
    %97 = vector.load %arg14[%c39, %c0_98] : memref<48x20xf32, #tpu.memory_space<vmem>>, vector<1x20xf32>
    tpu.vector_store %arg14[%c39, %c0_98], %96 {strides = array<i32>} : memref<48x20xf32, #tpu.memory_space<vmem>>, vector<1x20xf32>,
    %c0_99 = arith.constant 0 : index
    %c760 = arith.constant 760 : index
    %98 = vector.load %arg13[%c0_99, %c760] : memref<1x880xf32, #tpu.memory_space<vmem>>, vector<1x20xf32>
    %c40_100 = arith.constant 40 : index
    %c0_101 = arith.constant 0 : index
    %99 = vector.load %arg14[%c40_100, %c0_101] : memref<48x20xf32, #tpu.memory_space<vmem>>, vector<1x20xf32>
    tpu.vector_store %arg14[%c40_100, %c0_101], %98 {strides = array<i32>} : memref<48x20xf32, #tpu.memory_space<vmem>>, vector<1x20xf32>,
    %c0_102 = arith.constant 0 : index
    %c780 = arith.constant 780 : index
    %100 = vector.load %arg13[%c0_102, %c780] : memref<1x880xf32, #tpu.memory_space<vmem>>, vector<1x20xf32>
    %c41 = arith.constant 41 : index
    %c0_103 = arith.constant 0 : index
    %101 = vector.load %arg14[%c41, %c0_103] : memref<48x20xf32, #tpu.memory_space<vmem>>, vector<1x20xf32>
    tpu.vector_store %arg14[%c41, %c0_103], %100 {strides = array<i32>} : memref<48x20xf32, #tpu.memory_space<vmem>>, vector<1x20xf32>,
    %c0_104 = arith.constant 0 : index
    %c800 = arith.constant 800 : index
    %102 = vector.load %arg13[%c0_104, %c800] : memref<1x880xf32, #tpu.memory_space<vmem>>, vector<1x20xf32>
    %c42 = arith.constant 42 : index
    %c0_105 = arith.constant 0 : index
    %103 = vector.load %arg14[%c42, %c0_105] : memref<48x20xf32, #tpu.memory_space<vmem>>, vector<1x20xf32>
    tpu.vector_store %arg14[%c42, %c0_105], %102 {strides = array<i32>} : memref<48x20xf32, #tpu.memory_space<vmem>>, vector<1x20xf32>,
    %c0_106 = arith.constant 0 : index
    %c820 = arith.constant 820 : index
    %104 = vector.load %arg13[%c0_106, %c820] : memref<1x880xf32, #tpu.memory_space<vmem>>, vector<1x20xf32>
    %c43 = arith.constant 43 : index
    %c0_107 = arith.constant 0 : index
    %105 = vector.load %arg14[%c43, %c0_107] : memref<48x20xf32, #tpu.memory_space<vmem>>, vector<1x20xf32>
    tpu.vector_store %arg14[%c43, %c0_107], %104 {strides = array<i32>} : memref<48x20xf32, #tpu.memory_space<vmem>>, vector<1x20xf32>,
    %c0_108 = arith.constant 0 : index
    %c840 = arith.constant 840 : index
    %106 = vector.load %arg13[%c0_108, %c840] : memref<1x880xf32, #tpu.memory_space<vmem>>, vector<1x20xf32>
    %c44 = arith.constant 44 : index
    %c0_109 = arith.constant 0 : index
    %107 = vector.load %arg14[%c44, %c0_109] : memref<48x20xf32, #tpu.memory_space<vmem>>, vector<1x20xf32>
    tpu.vector_store %arg14[%c44, %c0_109], %106 {strides = array<i32>} : memref<48x20xf32, #tpu.memory_space<vmem>>, vector<1x20xf32>,
    %c0_110 = arith.constant 0 : index
    %c860 = arith.constant 860 : index
    %108 = vector.load %arg13[%c0_110, %c860] : memref<1x880xf32, #tpu.memory_space<vmem>>, vector<1x20xf32>
    %c45 = arith.constant 45 : index
    %c0_111 = arith.constant 0 : index
    %109 = vector.load %arg14[%c45, %c0_111] : memref<48x20xf32, #tpu.memory_space<vmem>>, vector<1x20xf32>
    tpu.vector_store %arg14[%c45, %c0_111], %108 {strides = array<i32>} : memref<48x20xf32, #tpu.memory_space<vmem>>, vector<1x20xf32>,
    %110 = vector.extract_strided_slice %12 {offsets = [0, 0], sizes = [8, 20], strides = [1, 1]} : vector<8x40xf32> to vector<8x20xf32>
    %111 = vector.extract_strided_slice %12 {offsets = [0, 20], sizes = [8, 20], strides = [1, 1]} : vector<8x40xf32> to vector<8x20xf32>
    %c0_112 = arith.constant 0 : index
    %c0_113 = arith.constant 0 : index
    %112 = vector.load %arg1[%c0_112, %c0_113] : memref<8x20xf32, #tpu.memory_space<vmem>>, vector<8x20xf32>
    %cst_114 = arith.constant 5.000000e-01 : f32
    %113 = vector.broadcast %cst_114 : f32 to vector<8x20xf32>
    %114 = arith.mulf %113, %111 : vector<8x20xf32>
    %115 = math.exp %114 : vector<8x20xf32>
    %116 = arith.mulf %112, %115 : vector<8x20xf32>
    %117 = arith.addf %110, %116 : vector<8x20xf32>
    %118 = tpu.iota {dimensions = array<i32: 0>} : vector<20x20xi32>
    %119 = tpu.iota {dimensions = array<i32: 1>} : vector<20x20xi32>
    %120 = tpu.iota {dimensions = array<i32: 1>} : vector<1x20xi32>
    %c16_i32 = arith.constant 16 : i32
    %121 = vector.broadcast %c16_i32 : i32 to vector<1x20xi32>
    %122 = arith.cmpi slt, %120, %121 : vector<1x20xi32>
    %123 = arith.extui %122 : vector<1x20xi1> to vector<1x20xi32>
    %124 = arith.sitofp %123 : vector<1x20xi32> to vector<1x20xf32>
    %c0_115 = arith.constant 0 : index
    %c0_116 = arith.constant 0 : index
    %125 = vector.load %arg14[%c0_115, %c0_116] : memref<48x20xf32, #tpu.memory_space<vmem>>, vector<20x20xf32>
    %c20_117 = arith.constant 20 : index
    %c0_118 = arith.constant 0 : index
    %126 = vector.load %arg14[%c20_117, %c0_118] : memref<48x20xf32, #tpu.memory_space<vmem>>, vector<1x20xf32>
    %127 = vector.shape_cast %126 : vector<1x20xf32> to vector<1x20xf32>
    %128 = vector.broadcast %127 : vector<1x20xf32> to vector<20x20xf32>
    %c21_119 = arith.constant 21 : index
    %c0_120 = arith.constant 0 : index
    %129 = vector.load %arg14[%c21_119, %c0_120] : memref<48x20xf32, #tpu.memory_space<vmem>>, vector<1x20xf32>
    %130 = arith.cmpi eq, %118, %119 : vector<20x20xi32>
    %131 = arith.cmpi sgt, %118, %119 : vector<20x20xi32>
    %cst_121 = arith.constant 0.000000e+00 : f32
    %132 = vector.broadcast %cst_121 : f32 to vector<20x20xf32>
    %133 = arith.select %131, %125, %132 : vector<20x20xi1>, vector<20x20xf32>
    %134 = arith.select %130, %128, %133 : vector<20x20xi1>, vector<20x20xf32>
    %135 = arith.cmpi sge, %119, %118 : vector<20x20xi32>
    %cst_122 = arith.constant 0.000000e+00 : f32
    %136 = vector.broadcast %cst_122 : f32 to vector<20x20xf32>
    %137 = arith.select %135, %125, %136 : vector<20x20xi1>, vector<20x20xf32>
    %cst_123 = arith.constant dense<0.000000e+00> : vector<8x20xf32>
    %138 = tpu.matmul %117, %134, %cst_123 {dimension_numbers = #tpu.dot_dimension_numbers<[1], [1], [0], [0], [0, 0, 1, 0], [], []>} : vector<8x20xf32>, vector<20x20xf32>, vector<8x20xf32> -> vector<8x20xf32>
    %139 = vector.broadcast %129 : vector<1x20xf32> to vector<8x20xf32>
    %140 = arith.addf %138, %139 : vector<8x20xf32>
    %141 = math.tanh %140 : vector<8x20xf32>
    %cst_124 = arith.constant dense<0.000000e+00> : vector<8x20xf32>
    %142 = tpu.matmul %141, %137, %cst_124 {dimension_numbers = #tpu.dot_dimension_numbers<[1], [0], [0], [1], [0, 0, 1, 1], [], []>} : vector<8x20xf32>, vector<20x20xf32>, vector<8x20xf32> -> vector<8x20xf32>
    %143 = vector.broadcast %124 : vector<1x20xf32> to vector<8x20xf32>
    %144 = arith.mulf %142, %143 : vector<8x20xf32>
    %145 = arith.addf %117, %144 : vector<8x20xf32>
    %c24_125 = arith.constant 24 : index
    %c0_126 = arith.constant 0 : index
    %146 = vector.load %arg14[%c24_125, %c0_126] : memref<48x20xf32, #tpu.memory_space<vmem>>, vector<20x20xf32>
    %c44_127 = arith.constant 44 : index
    %c0_128 = arith.constant 0 : index
    %147 = vector.load %arg14[%c44_127, %c0_128] : memref<48x20xf32, #tpu.memory_space<vmem>>, vector<1x20xf32>
    %148 = vector.shape_cast %147 : vector<1x20xf32> to vector<1x20xf32>
    %149 = vector.broadcast %148 : vector<1x20xf32> to vector<20x20xf32>
    %c45_129 = arith.constant 45 : index
    %c0_130 = arith.constant 0 : index
    %150 = vector.load %arg14[%c45_129, %c0_130] : memref<48x20xf32, #tpu.memory_space<vmem>>, vector<1x20xf32>
    %151 = arith.cmpi eq, %118, %119 : vector<20x20xi32>
    %152 = arith.cmpi sgt, %118, %119 : vector<20x20xi32>
    %cst_131 = arith.constant 0.000000e+00 : f32
    %153 = vector.broadcast %cst_131 : f32 to vector<20x20xf32>
    %154 = arith.select %152, %146, %153 : vector<20x20xi1>, vector<20x20xf32>
    %155 = arith.select %151, %149, %154 : vector<20x20xi1>, vector<20x20xf32>
    %156 = arith.cmpi sge, %119, %118 : vector<20x20xi32>
    %cst_132 = arith.constant 0.000000e+00 : f32
    %157 = vector.broadcast %cst_132 : f32 to vector<20x20xf32>
    %158 = arith.select %156, %146, %157 : vector<20x20xi1>, vector<20x20xf32>
    %cst_133 = arith.constant dense<0.000000e+00> : vector<8x20xf32>
    %159 = tpu.matmul %145, %155, %cst_133 {dimension_numbers = #tpu.dot_dimension_numbers<[1], [0], [0], [1], [0, 0, 1, 1], [], []>} : vector<8x20xf32>, vector<20x20xf32>, vector<8x20xf32> -> vector<8x20xf32>
    %160 = vector.broadcast %150 : vector<1x20xf32> to vector<8x20xf32>
    %161 = arith.addf %159, %160 : vector<8x20xf32>
    %162 = math.tanh %161 : vector<8x20xf32>
    %cst_134 = arith.constant dense<0.000000e+00> : vector<8x20xf32>
    %163 = tpu.matmul %162, %158, %cst_134 {dimension_numbers = #tpu.dot_dimension_numbers<[1], [1], [0], [0], [0, 0, 1, 0], [], []>} : vector<8x20xf32>, vector<20x20xf32>, vector<8x20xf32> -> vector<8x20xf32>
    %164 = vector.broadcast %124 : vector<1x20xf32> to vector<8x20xf32>
    %165 = arith.mulf %163, %164 : vector<8x20xf32>
    %166 = arith.addf %145, %165 : vector<8x20xf32>
    %c0_135 = arith.constant 0 : index
    %c0_136 = arith.constant 0 : index
    %167 = vector.load %arg8[%c0_135, %c0_136] : memref<20x400xf32, #tpu.memory_space<vmem>>, vector<20x400xf32>
    %cst_137 = arith.constant dense<0.000000e+00> : vector<8x400xf32>
    %168 = tpu.matmul %166, %167, %cst_137 {dimension_numbers = #tpu.dot_dimension_numbers<[1], [0], [0], [1], [0, 0, 1, 1], [], []>} : vector<8x20xf32>, vector<20x400xf32>, vector<8x400xf32> -> vector<8x400xf32>
    %c0_138 = arith.constant 0 : index
    %c0_139 = arith.constant 0 : index
    %169 = vector.load %arg9[%c0_138, %c0_139] : memref<1x400xf32, #tpu.memory_space<vmem>>, vector<1x400xf32>
    %170 = vector.broadcast %169 : vector<1x400xf32> to vector<8x400xf32>
    %171 = arith.addf %168, %170 : vector<8x400xf32>
    %cst_140 = arith.constant 0.000000e+00 : f32
    %172 = vector.broadcast %cst_140 : f32 to vector<8x400xf32>
    %173 = arith.maximumf %171, %172 : vector<8x400xf32>
    %c0_141 = arith.constant 0 : index
    %c0_142 = arith.constant 0 : index
    %174 = vector.load %arg10[%c0_141, %c0_142] : memref<400x64xf32, #tpu.memory_space<vmem>>, vector<400x64xf32>
    %cst_143 = arith.constant dense<0.000000e+00> : vector<8x64xf32>
    %175 = tpu.matmul %173, %174, %cst_143 {dimension_numbers = #tpu.dot_dimension_numbers<[1], [0], [0], [1], [0, 0, 1, 1], [], []>} : vector<8x400xf32>, vector<400x64xf32>, vector<8x64xf32> -> vector<8x64xf32>
    %c0_144 = arith.constant 0 : index
    %c0_145 = arith.constant 0 : index
    %176 = vector.load %arg11[%c0_144, %c0_145] : memref<1x64xf32, #tpu.memory_space<vmem>>, vector<1x64xf32>
    %177 = vector.broadcast %176 : vector<1x64xf32> to vector<8x64xf32>
    %178 = arith.addf %175, %177 : vector<8x64xf32>
    %c0_146 = arith.constant 0 : index
    %c0_147 = arith.constant 0 : index
    %179 = vector.load %arg12[%c0_146, %c0_147] : memref<8x128xf32, #tpu.memory_space<vmem>>, vector<8x40xf32>
    tpu.vector_store %arg12[%c0_146, %c0_147], %12 {strides = array<i32>} : memref<8x128xf32, #tpu.memory_space<vmem>>, vector<8x40xf32>,
    %c0_148 = arith.constant 0 : index
    %c40_149 = arith.constant 40 : index
    %180 = vector.load %arg12[%c0_148, %c40_149] : memref<8x128xf32, #tpu.memory_space<vmem>>, vector<8x64xf32>
    tpu.vector_store %arg12[%c0_148, %c40_149], %178 {strides = array<i32>} : memref<8x128xf32, #tpu.memory_space<vmem>>, vector<8x64xf32>,
    %cst_150 = arith.constant 0.000000e+00 : f32
    %181 = vector.broadcast %cst_150 : f32 to vector<8x24xf32>
    %c0_151 = arith.constant 0 : index
    %c104 = arith.constant 104 : index
    %182 = vector.load %arg12[%c0_151, %c104] : memref<8x128xf32, #tpu.memory_space<vmem>>, vector<8x24xf32>
    tpu.vector_store %arg12[%c0_151, %c104], %181 {strides = array<i32>} : memref<8x128xf32, #tpu.memory_space<vmem>>, vector<8x24xf32>,
    return
  }
}

</mosaic_0001>

<bundles_post_ra>
// kernel: vaenf_forward.1
= control target key start
LH: loop header
LB: loop body
LE: loop exit
PB: predicated region body
PF: predicated region fallthrough
CT: control target
= control target key end

     0   :  { %17 = vsyncpa [#allocation5], 0  ;;  %s3225_s0 = inlined_call_operand.hbm [shape: f32[8,64], index: 0, kind: input, shape index: {}]   ;;  %s3226_s1 = inlined_call_operand.vmem [shape: f32[8,20], index: 1, kind: input, shape index: {}]   ;;  %s3227_s2 = inlined_call_operand.hbm [shape: f32[64,400], index: 2, kind: input, shape index: {}]   ;;  %s3228_s3 = inlined_call_operand.hbm [shape: f32[1,400], index: 3, kind: input, shape index: {}]   ;;  %s3229_s4 = inlined_call_operand.vmem [shape: f32[400,40], index: 4, kind: input, shape index: {}]   ;;  %s3230_s5 = inlined_call_operand.vmem [shape: f32[1,40], index: 5, kind: input, shape index: {}]   ;;  %s3231_s6 = inlined_call_operand.hbm [shape: f32[400,880], index: 6, kind: input, shape index: {}]   ;;  %s3232_s7 = inlined_call_operand.hbm [shape: f32[1,880], index: 7, kind: input, shape index: {}]   ;;  %s3233_s8 = inlined_call_operand.vmem [shape: f32[20,400], index: 8, kind: input, shape index: {}]   ;;  %s3234_s9 = inlined_call_operand.hbm [shape: f32[1,400], index: 9, kind: input, shape index: {}]   ;;  %s3235_s10 = inlined_call_operand.vmem [shape: f32[400,64], index: 10, kind: input, shape index: {}]   ;;  %s3236_s11 = inlined_call_operand.hbm [shape: f32[1,64], index: 11, kind: input, shape index: {}]   ;;  %s3237_s12 = inlined_call_operand.vmem [shape: f32[8,128], index: 12, kind: output, shape index: {}]  }
   0x1   :  { %18 = vsyncpa [#allocation7], 0 }
   0x2   :  { %19 = vsyncpa [#allocation10], 0  ;;  %s38_s23 = sshll.u32 %s3227_s2, 4  ;;  %s39_s23 = int_to_ptr.hbm [resolvable:$true] %s38_s23 }
   0x3   :  { %20 = vsyncpa [#allocation13], 0  ;;  %s2491_s24 = smov [#allocation6]   ;;  %s66_s28 = sshll.u32 %s3231_s6, 4  ;;  %s67_s28 = int_to_ptr.hbm [resolvable:$true] %s66_s28 }
   0x4   :  { %s40_s25 = sshll.u32 %s2491_s24, 4  ;;  %s2492_s29 = smov 512   ;;  %s41_s25 = int_to_ptr.vmem [resolvable:$true] %s40_s25 }
   0x5   :  { %s2493_s30 = smov 32   ;;  %s2494_s13 = smov [#allocation9]  }
   0x6   :  { %46 = dma.hbm_to_vmem [thread:$0]  %s39_s23, 4096, %s41_s25, [#allocation7], %s2492_s29, %s2492_s29, %s2493_s30  }
   0x7   :  { %s68_s14 = sshll.u32 %s2494_s13, 4  ;;  %s2495_s15 = smov 896   ;;  %s69_s14 = int_to_ptr.vmem [resolvable:$true] %s68_s14 }
   0x8   :  { %s2496_s16 = smov 56   ;;  %s93_s18 = sshll.u32 %s3234_s9, 4  ;;  %s94_s18 = int_to_ptr.hbm [resolvable:$true] %s93_s18 }
   0x9   :  { %74 = dma.hbm_to_vmem [thread:$0]  %s67_s28, 44800, %s69_s14, [#allocation10], %s2495_s15, %s2495_s15, %s2496_s16  }
   0xa   :  { %s2497_s19 = smov [#allocation12]   ;;  %s26_s22 = sshll.u32 %s3225_s0, 4  ;;  %s27_s22 = int_to_ptr.hbm [resolvable:$true] %s26_s22 }
   0xb   :  { %s95_s20 = sshll.u32 %s2497_s19, 4  ;;  %s2498_s23 = smov [#allocation4]   ;;  %s96_s20 = int_to_ptr.vmem [resolvable:$true] %s95_s20 }
   0xc   :  { %98 = dma.hbm_to_vmem [thread:$0]  %s94_s18, 64, %s96_s20, [#allocation13]  }
   0xd   :  { %s28_s24 = sshll.u32 %s2498_s23, 4  ;;  %s52_s27 = sshll.u32 %s3228_s3, 4  ;;  %s29_s24 = int_to_ptr.vmem [resolvable:$true] %s28_s24  ;;  %s53_s27 = int_to_ptr.hbm [resolvable:$true] %s52_s27 }
   0xe   :  { %31 = dma.hbm_to_vmem [thread:$0]  %s27_s22, 128, %s29_s24, [#allocation5]  }
   0xf   :  { %s80_s29 = sshll.u32 %s3232_s7, 4  ;;  %s2499_s13 = smov [#allocation8]   ;;  %s81_s29 = int_to_ptr.hbm [resolvable:$true] %s80_s29 }
  0x10   :  { %s54_s14 = sshll.u32 %s2499_s13, 4  ;;  %s2500_s0 = smov [#allocation11]   ;;  %s55_s14 = int_to_ptr.vmem [resolvable:$true] %s54_s14 }
  0x11   :  { %57 = dma.hbm_to_vmem [thread:$0]  %s53_s27, 64, %s55_s14, [#allocation7]  }
  0x12   :  { %s82_s15 = sshll.u32 %s2500_s0, 4  ;;  %s106_s18 = sshll.u32 %s3236_s11, 4  ;;  %s83_s15 = int_to_ptr.vmem [resolvable:$true] %s82_s15  ;;  %s107_s18 = int_to_ptr.hbm [resolvable:$true] %s106_s18 }
  0x13   :  { %85 = dma.hbm_to_vmem [thread:$0]  %s81_s29, 112, %s83_s15, [#allocation10]  }
  0x14   :  { %s2501_s3 = smov [#allocation14]  }
  0x15   :  { %s108_s19 = sshll.u32 %s2501_s3, 4  ;;  %s109_s19 = int_to_ptr.vmem [resolvable:$true] %s108_s19 }
  0x16   :  { %111 = dma.hbm_to_vmem [thread:$0]  %s107_s18, 16, %s109_s19, [#allocation13]  }
  0x17   :  { %2483 = dma.done.wait [#allocation5], 128  }
  0x18   :  { %2484 = vsyncadd [#allocation5], 4294967168 }
  0x19   :  { %2485 = dma.done.wait [#allocation7], 4160  }
  0x1a   :  { %2486 = vsyncadd [#allocation7], 4294963136 }
  0x1b   :  { %2487 = dma.done.wait [#allocation10], 44912  }
  0x1c   :  { %2488 = vsyncadd [#allocation10], 4294922384 }
  0x1d   :  { %2489 = dma.done.wait [#allocation13], 80  }
  0x1e   :  { %2490 = vsyncadd [#allocation13], 4294967216  ;;  %v169_v0 = vld [vmem:[#allocation6 + $0xe0] sm:$0xff]  ;;  %v171_v1 = vld [vmem:[#allocation6 + $0xf0] sm:$0xff]  ;;  %vm183_vm0 = vcmask 523264   ;;  %vm325_vm1 = vcmask 130048  }
  0x1f   :  { %v172_v2 = vld [vmem:[#allocation6 + $0xf8] sm:$0xff]  ;;  %195 = vmatpush.msra.mxu0 %v169_v0  ;;  %235 = vmatpush.msra.mxu2 %v171_v1  ;;  %v165_v3 = vld [vmem:[#allocation6 + $0xc0] sm:$0xff]  ;;  %v167_v4 = vld [vmem:[#allocation6 + $0xd0] sm:$0xff]  ;;  %vm2168_vm3 = vcmask 326656   ;;  %vm1389_vm4 = vcmask 1042434   ;;  %vm1387_vm5 = vcmask 1040384  }
  0x20   :  { %v168_v5 = vld [vmem:[#allocation6 + $0xd8] sm:$0xff]  ;;  %255 = vmatpush.msra.mxu3 %v172_v2  ;;  %v161_v6 = vld [vmem:[#allocation6 + $0xa0] sm:$0xff]  ;;  %v163_v7 = vld [vmem:[#allocation6 + $0xb0] sm:$0xff]  ;;  %vm1393_vm6 = vcmask 1044484   ;;  %vm1391_vm7 = vcmask 1041408   ;;  %vm1395_vm8 = vcmask 1045508  }
  0x21   :  { %196 = vmatpush.msra.mxu0 %v165_v3  ;;  %236 = vmatpush.msra.mxu2 %v167_v4  ;;  %v164_v8 = vld [vmem:[#allocation6 + $0xb8] sm:$0xff]  ;;  %v157_v9 = vld [vmem:[#allocation6 + $0x80] sm:$0xff]  ;;  %v159_v10 = vld [vmem:[#allocation6 + $0x90] sm:$0xff]  ;;  %vm1397_vm9 = vcmask 1043456   ;;  %s2503_s27 = smov 112   ;;  %s2504_s9 = smov 4  }
  0x22   :  { %256 = vmatpush.msra.mxu3 %v168_v5  ;;  %v170_v11 = vld [vmem:[#allocation6 + $0xe8] sm:$0xff]  ;;  %v160_v12 = vld [vmem:[#allocation6 + $0x98] sm:$0xff]  ;;  %v153_v14 = vld [vmem:[#allocation6 + $0x60] sm:$0xff]  ;;  %s2505_s28 = smov 44   ;;  %s2506_s29 = smov 64   ;;  %vm1406_vm11 = vcmask 155648  }
  0x23   :  { %197 = vmatpush.msra.mxu0 %v161_v6  ;;  %237 = vmatpush.msra.mxu2 %v163_v7  ;;  %v166_v13 = vld [vmem:[#allocation6 + $0xc8] sm:$0xff]  ;;  %v155_v15 = vld [vmem:[#allocation6 + $0x70] sm:$0xff]  ;;  %v156_v16 = vld [vmem:[#allocation6 + $0x78] sm:$0xff]  ;;  %s2507_s13 = smov 24   ;;  %s2508_s14 = smov 16   ;;  %vm1551_vm12 = vcmask 31744  }
  0x24   :  { %257 = vmatpush.msra.mxu3 %v164_v8  ;;  %215 = vmatpush.msra.mxu1 %v170_v11  ;;  %v162_v17 = vld [vmem:[#allocation6 + $0xa8] sm:$0xff]  ;;  %v149_v18 = vld [vmem:[#allocation6 + $0x40] sm:$0xff]  ;;  %v151_v19 = vld [vmem:[#allocation6 + $0x50] sm:$0xff]  ;;  %s2509_s0 = smov 96   ;;  %s2510_s15 = smov 76  }
  0x25   :  { %198 = vmatpush.msra.mxu0 %v157_v9  ;;  %238 = vmatpush.msra.mxu2 %v159_v10  ;;  %v152_v20 = vld [vmem:[#allocation6 + $0x58] sm:$0xff]  ;;  %v158_v21 = vld [vmem:[#allocation6 + $0x88] sm:$0xff]  ;;  %v145_v22 = vld [vmem:[#allocation6 + $0x20] sm:$0xff]  ;;  %s2511_s2 = smov 36   ;;  %s2512_s17 = smov 104  }
  0x26   :  { %258 = vmatpush.msra.mxu3 %v160_v12  ;;  %216 = vmatpush.msra.mxu1 %v166_v13  ;;  %v147_v23 = vld [vmem:[#allocation6 + $0x30] sm:$0xff]  ;;  %v148_v24 = vld [vmem:[#allocation6 + $0x38] sm:$0xff]  ;;  %v154_v25 = vld [vmem:[#allocation6 + $0x68] sm:$0xff]  ;;  %s2513_s18 = smov 124   ;;  %s2514_s3 = smov 84  }
  0x27   :  { %199 = vmatpush.msra.mxu0 %v153_v14  ;;  %239 = vmatpush.msra.mxu2 %v155_v15  ;;  %v141_v26 = vld [vmem:[#allocation6] sm:$0xff]  ;;  %v143_v27 = vld [vmem:[#allocation6 + $0x10] sm:$0xff]  ;;  %v144_v28 = vld [vmem:[#allocation6 + $0x18] sm:$0xff]  ;;  %s2515_s19 = smov 8   ;;  %s2516_s7 = smov 108  }
  0x28   :  { %259 = vmatpush.msra.mxu3 %v156_v16  ;;  %217 = vmatpush.msra.mxu1 %v162_v17  ;;  %v140_v29 = vld [vmem:[#allocation4] sm:$0xff]  ;;  %v150_v30 = vld [vmem:[#allocation6 + $0x48] sm:$0xff]  ;;  %s2517_s11 = smov 68   ;;  %s2518_s20 = smov 88  }
  0x29   :  { %200 = vmatpush.msra.mxu0 %v149_v18  ;;  %240 = vmatpush.msra.mxu2 %v151_v19  ;;  %v286_v31 = vld [vmem:[%s3229_s4 + $0x78] sm:$0xff]  ;;  %v146_v32 = vld [vmem:[#allocation6 + $0x28] sm:$0xff]  ;;  %v285_v33 = vld [vmem:[%s3229_s4 + $0x70] sm:$0xff]  ;;  %s2519_s6 = smov 48   ;;  %s2520_s21 = smov 116  }
  0x2a   :  { %260 = vmatpush.msra.mxu3 %v152_v20  ;;  %218 = vmatpush.msra.mxu1 %v158_v21  ;;  %v142_v34 = vld [vmem:[#allocation6 + $0x8] sm:$0xff]  ;;  %v318_v36 = vld [vmem:[%s3229_s4 + $0x178] sm:$0xff]  ;;  %v317_v40 = vld [vmem:[%s3229_s4 + $0x170] sm:$0xff]  ;;  %s2521_s22 = smov 28   ;;  %s2522_s23 = smov 92  }
  0x2b   :  { %201 = vmatpush.msra.mxu0 %v145_v22  ;;  %241 = vmatpush.msra.mxu2 %v147_v23  ;;  %v284_v35 = vld [vmem:[%s3229_s4 + $0x68] sm:$0xff]  ;;  %v283_v38 = vld [vmem:[%s3229_s4 + $0x60] sm:$0xff]  ;;  %v302_v39 = vld [vmem:[%s3229_s4 + $0xf8] sm:$0xff]  ;;  %s2523_s24 = smov 40   ;;  %s2526_s25 = smov 72  }
  0x2c   :  { %261 = vmatpush.msra.mxu3 %v148_v24  ;;  %219 = vmatpush.msra.mxu1 %v154_v25  ;;  %v320_v37 = vld [vmem:[%s3229_s4 + $0x188] sm:$0xff]  ;;  %v319_v41 = vld [vmem:[%s3229_s4 + $0x180] sm:$0xff]  ;;  %v282_v42 = vld [vmem:[%s3229_s4 + $0x58] sm:$0xff]  ;;  %s2528_s26 = smov 120  }
  0x2d   :  { %202 = vmatpush.msra.mxu0 %v141_v26  ;;  %242 = vmatpush.msra.mxu2 %v143_v27  ;;  %v301_v43 = vld [vmem:[%s3229_s4 + $0xf0] sm:$0xff]  ;;  %v316_v44 = vld [vmem:[%s3229_s4 + $0x168] sm:$0xff]  ;;  %v315_v48 = vld [vmem:[%s3229_s4 + $0x160] sm:$0xff] }
  0x2e   :  { %262 = vmatpush.msra.mxu3 %v144_v28  ;;  %2186 = vmatmul.msk.f32.vlgmr.msra.gmra.mxu0 %vm183_vm0, %v140_v29  ;;  %v550_v45 = vld [vmem:[#allocation9 + $0x348] sm:$0xff]  ;;  %v543_v49 = vld [vmem:[#allocation9 + $0x310] sm:$0xff]  ;;  %v299_v51 = vld [vmem:[%s3229_s4 + $0xe0] sm:$0xff] }
  0x2f   :  { %2188 = vmatmul.msk.f32.vlgmr.msra.gmra.mxu2 %vm183_vm0, %v140_v29  ;;  %2189 = vmatmul.msk.f32.vlgmr.msra.gmra.mxu3 %vm183_vm0, %v140_v29  ;;  %v281_v46 = vld [vmem:[%s3229_s4 + $0x50] sm:$0xff]  ;;  %v300_v47 = vld [vmem:[%s3229_s4 + $0xe8] sm:$0xff]  ;;  %v314_v52 = vld [vmem:[%s3229_s4 + $0x158] sm:$0xff] }
  0x30   :  { %220 = vmatpush.msra.mxu1 %v150_v30  ;;  %329 = vmatpush.msrb.mxu0 %v286_v31  ;;  %v280_v50 = vld [vmem:[%s3229_s4 + $0x48] sm:$0xff]  ;;  %v536_v53 = vld [vmem:[#allocation9 + $0x2d8] sm:$0xff]  ;;  %v313_v56 = vld [vmem:[%s3229_s4 + $0x150] sm:$0xff] }
  0x31   :  { %369 = vmatpush.msrb.mxu2 %v318_v36  ;;  %403 = vmatpush.msrb.mxu3 %v320_v37  ;;  %v279_v54 = vld [vmem:[%s3229_s4 + $0x40] sm:$0xff]  ;;  %v298_v55 = vld [vmem:[%s3229_s4 + $0xd8] sm:$0xff]  ;;  %v297_v59 = vld [vmem:[%s3229_s4 + $0xd0] sm:$0xff] }
  0x32   :  { %221 = vmatpush.msra.mxu1 %v146_v32  ;;  %330 = vmatpush.msrb.mxu0 %v285_v33  ;;  %v529_v57 = vld [vmem:[#allocation9 + $0x2a0] sm:$0xff]  ;;  %v278_v58 = vld [vmem:[%s3229_s4 + $0x38] sm:$0xff]  ;;  %v522_v61 = vld [vmem:[#allocation9 + $0x268] sm:$0xff] }
  0x33   :  { %370 = vmatpush.msrb.mxu2 %v317_v40  ;;  %404 = vmatpush.msrb.mxu3 %v319_v41  ;;  %v312_v60 = vld [vmem:[%s3229_s4 + $0x148] sm:$0xff]  ;;  %v277_v62 = vld [vmem:[%s3229_s4 + $0x30] sm:$0xff]  ;;  %v311_v0 = vld [vmem:[%s3229_s4 + $0x140] sm:$0xff] }
  0x34   :  { %222 = vmatpush.msra.mxu1 %v142_v34  ;;  %331 = vmatpush.msrb.mxu0 %v284_v35  ;;  %v296_v63 = vld [vmem:[%s3229_s4 + $0xc8] sm:$0xff]  ;;  %v515_v1 = vld [vmem:[#allocation9 + $0x230] sm:$0xff]  ;;  %v295_v3 = vld [vmem:[%s3229_s4 + $0xc0] sm:$0xff] }
  0x35   :  { %2187 = vmatmul.msk.f32.vlgmr.msra.gmra.mxu1 %vm183_vm0, %v140_v29  ;;  %371 = vmatpush.msrb.mxu2 %v316_v44  ;;  %v276_v2 = vld [vmem:[%s3229_s4 + $0x28] sm:$0xff]  ;;  %v310_v4 = vld [vmem:[%s3229_s4 + $0x138] sm:$0xff]  ;;  %v275_v6 = vld [vmem:[%s3229_s4 + $0x20] sm:$0xff]  ;;  %vm1771_vm0 = vcmask 162816  }
  0x36   :  { %332 = vmatpush.msrb.mxu0 %v283_v38  ;;  %349 = vmatpush.msrb.mxu1 %v302_v39  ;;  %v508_v5 = vld [vmem:[#allocation9 + $0x1f8] sm:$0xff]  ;;  %v309_v8 = vld [vmem:[%s3229_s4 + $0x130] sm:$0xff]  ;;  %v501_v9 = vld [vmem:[#allocation9 + $0x1c0] sm:$0xff] }
  0x37   :  { %814 = vmatpush.msra.mxu3 %v550_v45  ;;  %372 = vmatpush.msrb.mxu2 %v315_v48  ;;  %v294_v7 = vld [vmem:[%s3229_s4 + $0xb8] sm:$0xff]  ;;  %v293_v11 = vld [vmem:[%s3229_s4 + $0xb0] sm:$0xff]  ;;  %v308_v12 = vld [vmem:[%s3229_s4 + $0x128] sm:$0xff] }
  0x38   :  { %333 = vmatpush.msrb.mxu0 %v282_v42  ;;  %350 = vmatpush.msrb.mxu1 %v301_v43  ;;  %v274_v10 = vld [vmem:[%s3229_s4 + $0x18] sm:$0xff]  ;;  %v494_v13 = vld [vmem:[#allocation9 + $0x188] sm:$0xff]  ;;  %v307_v16 = vld [vmem:[%s3229_s4 + $0x120] sm:$0xff] }
  0x39   :  { %815 = vmatpush.msra.mxu3 %v543_v49  ;;  %373 = vmatpush.msrb.mxu2 %v314_v52  ;;  %v273_v14 = vld [vmem:[%s3229_s4 + $0x10] sm:$0xff]  ;;  %v292_v15 = vld [vmem:[%s3229_s4 + $0xa8] sm:$0xff]  ;;  %v291_v19 = vld [vmem:[%s3229_s4 + $0xa0] sm:$0xff] }
  0x3a   :  { %334 = vmatpush.msrb.mxu0 %v281_v46  ;;  %351 = vmatpush.msrb.mxu1 %v300_v47  ;;  %v487_v17 = vld [vmem:[#allocation9 + $0x150] sm:$0xff]  ;;  %v272_v18 = vld [vmem:[%s3229_s4 + $0x8] sm:$0xff]  ;;  %v271_v20 = vld [vmem:[%s3229_s4] sm:$0xff] }
  0x3b   :  { %816 = vmatpush.msra.mxu3 %v536_v53  ;;  %374 = vmatpush.msrb.mxu2 %v313_v56  ;;  %v290_v21 = vld [vmem:[%s3229_s4 + $0x98] sm:$0xff]  ;;  %v662_v22 = vld [vmem:[#allocation9 + $0x6c8] sm:$0xff]  ;;  %v287_v27 = vld [vmem:[%s3229_s4 + $0x80] sm:$0xff] }
  0x3c   :  { %335 = vmatpush.msrb.mxu0 %v280_v50  ;;  %352 = vmatpush.msrb.mxu1 %v299_v51  ;;  %v289_v23 = vld [vmem:[%s3229_s4 + $0x90] sm:$0xff]  ;;  %v288_v25 = vld [vmem:[%s3229_s4 + $0x88] sm:$0xff]  ;;  %v648_v26 = vld [vmem:[#allocation9 + $0x658] sm:$0xff] }
  0x3d   :  { %817 = vmatpush.msra.mxu3 %v529_v57  ;;  %375 = vmatpush.msrb.mxu2 %v312_v60  ;;  %v655_v24 = vld [vmem:[#allocation9 + $0x690] sm:$0xff]  ;;  %v641_v28 = vld [vmem:[#allocation9 + $0x620] sm:$0xff]  ;;  %v774_v29 = vld [vmem:[#allocation9 + $0xa48] sm:$0xff] }
  0x3e   :  { %336 = vmatpush.msrb.mxu0 %v279_v54  ;;  %353 = vmatpush.msrb.mxu1 %v298_v55  ;;  %v634_v30 = vld [vmem:[#allocation9 + $0x5e8] sm:$0xff]  ;;  %v767_v31 = vld [vmem:[#allocation9 + $0xa10] sm:$0xff]  ;;  %v760_v33 = vld [vmem:[#allocation9 + $0x9d8] sm:$0xff] }
  0x3f   :  { %818 = vmatpush.msra.mxu3 %v522_v61  ;;  %376 = vmatpush.msrb.mxu2 %v311_v0  ;;  %v627_v32 = vld [vmem:[#allocation9 + $0x5b0] sm:$0xff]  ;;  %v620_v34 = vld [vmem:[#allocation9 + $0x578] sm:$0xff]  ;;  %v753_v35 = vld [vmem:[#allocation9 + $0x9a0] sm:$0xff] }
  0x40   :  { %337 = vmatpush.msrb.mxu0 %v278_v58  ;;  %354 = vmatpush.msrb.mxu1 %v297_v59  ;;  %v613_v36 = vld [vmem:[#allocation9 + $0x540] sm:$0xff]  ;;  %v746_v37 = vld [vmem:[#allocation9 + $0x968] sm:$0xff]  ;;  %v599_v39 = vld [vmem:[#allocation9 + $0x4d0] sm:$0xff] }
  0x41   :  { %819 = vmatpush.msra.mxu3 %v515_v1  ;;  %377 = vmatpush.msrb.mxu2 %v310_v4  ;;  %v606_v38 = vld [vmem:[#allocation9 + $0x508] sm:$0xff]  ;;  %v592_v40 = vld [vmem:[#allocation9 + $0x498] sm:$0xff]  ;;  %v585_v41 = vld [vmem:[#allocation9 + $0x460] sm:$0xff] }
  0x42   :  { %338 = vmatpush.msrb.mxu0 %v277_v62  ;;  %355 = vmatpush.msrb.mxu1 %v296_v63  ;;  %v578_v42 = vld [vmem:[#allocation9 + $0x428] sm:$0xff]  ;;  %v480_v43 = vld [vmem:[#allocation9 + $0x118] sm:$0xff]  ;;  %v571_v44 = vld [vmem:[#allocation9 + $0x3f0] sm:$0xff] }
  0x43   :  { %820 = vmatpush.msra.mxu3 %v508_v5  ;;  %378 = vmatpush.msrb.mxu2 %v309_v8  ;;  %v306_v45 = vld [vmem:[%s3229_s4 + $0x118] sm:$0xff]  ;;  %v473_v47 = vld [vmem:[#allocation9 + $0xe0] sm:$0xff]  ;;  %v305_v49 = vld [vmem:[%s3229_s4 + $0x110] sm:$0xff] }
  0x44   :  { %339 = vmatpush.msrb.mxu0 %v276_v2  ;;  %356 = vmatpush.msrb.mxu1 %v295_v3  ;;  %v739_v46 = vld [vmem:[#allocation9 + $0x930] sm:$0xff]  ;;  %v564_v48 = vld [vmem:[#allocation9 + $0x3b8] sm:$0xff]  ;;  %v466_v51 = vld [vmem:[#allocation9 + $0xa8] sm:$0xff]  ;;  %v2502_v3 = vmov 8.0  }
  0x45   :  { %821 = vmatpush.msra.mxu3 %v501_v9  ;;  %379 = vmatpush.msrb.mxu2 %v308_v12  ;;  %v732_v50 = vld [vmem:[#allocation9 + $0x8f8] sm:$0xff]  ;;  %v557_v52 = vld [vmem:[#allocation9 + $0x380] sm:$0xff]  ;;  %v459_v55 = vld [vmem:[#allocation9 + $0x70] sm:$0xff]  ;;  %2307 = vrcp.f32 %v2502_v3 }
  0x46   :  { %340 = vmatpush.msrb.mxu0 %v275_v6  ;;  %357 = vmatpush.msrb.mxu1 %v294_v7  ;;  %v304_v53 = vld [vmem:[%s3229_s4 + $0x108] sm:$0xff]  ;;  %v303_v56 = vld [vmem:[%s3229_s4 + $0x100] sm:$0xff]  ;;  %v711_v60 = vld [vmem:[#allocation9 + $0x850] sm:$0xff]  ;;  %s2524_s4 = smov 20  }
  0x47   :  { %822 = vmatpush.msra.mxu3 %v494_v13  ;;  %380 = vmatpush.msrb.mxu2 %v307_v16  ;;  %v725_v54 = vld [vmem:[#allocation9 + $0x8c0] sm:$0xff]  ;;  %v718_v57 = vld [vmem:[#allocation9 + $0x888] sm:$0xff]  ;;  %v452_v58 = vld [vmem:[#allocation9 + $0x38] sm:$0xff] }
  0x48   :  { %341 = vmatpush.msrb.mxu0 %v274_v10  ;;  %358 = vmatpush.msrb.mxu1 %v293_v11  ;;  %v788_v59 = vld [vmem:[#allocation9 + $0xab8] sm:$0xff]  ;;  %v445_v61 = vld [vmem:[#allocation9] sm:$0xff]  ;;  %v690_v1 = vld [vmem:[#allocation9 + $0x7a8] sm:$0xff] }
  0x49   :  { %823 = vmatpush.msra.mxu3 %v487_v17  ;;  %381 = vmatpush.msrb.mxu2 %v306_v45  ;;  %v781_v62 = vld [vmem:[#allocation9 + $0xa80] sm:$0xff]  ;;  %v704_v63 = vld [vmem:[#allocation9 + $0x818] sm:$0xff]  ;;  %v683_v2 = vld [vmem:[#allocation9 + $0x770] sm:$0xff] }
  0x4a   :  { %342 = vmatpush.msrb.mxu0 %v273_v14  ;;  %359 = vmatpush.msrb.mxu1 %v292_v15  ;;  %v697_v0 = vld [vmem:[#allocation9 + $0x7e0] sm:$0xff]  ;;  %v676_v4 = vld [vmem:[#allocation9 + $0x738] sm:$0xff]  ;;  %v775_v14 = vld [vmem:[#allocation9 + $0xa50] sm:$0xff] }
  0x4b   :  { %824 = vmatpush.msra.mxu3 %v480_v43  ;;  %382 = vmatpush.msrb.mxu2 %v305_v49  ;;  %v669_v5 = vld [vmem:[#allocation9 + $0x700] sm:$0xff]  ;;  %v173_v6 = vld [vmem:[#allocation8] sm:$0xf]  ;;  %v2308_v7 = vpop.eup %2307  ;;  %v747_v45 = vld [vmem:[#allocation9 + $0x970] sm:$0xff] }
  0x4c   :  { %343 = vmatpush.msrb.mxu0 %v272_v18  ;;  %360 = vmatpush.msrb.mxu1 %v291_v19  ;;  %v175_v8 = vperm.slane %v173_v6, 0  ;;  %v435_v9 = vmul.f32 8.0, %v2308_v7  ;;  %v177_v15 = vperm.slane %v173_v6, 2  ;;  %v178_v16 = vperm.slane %v173_v6, 3  ;;  %v768_v18 = vld [vmem:[#allocation9 + $0xa18] sm:$0xff]  ;;  %v537_v49 = vld [vmem:[#allocation9 + $0x2e0] sm:$0xff] }
  0x4d   :  { %825 = vmatpush.msra.mxu3 %v473_v47  ;;  %383 = vmatpush.msrb.mxu2 %v304_v53  ;;  %v176_v19 = vperm.slane %v173_v6, 1  ;;  %vm439_vm2 = vweird.f32 %v2308_v7  ;;  %v516_v6 = vld [vmem:[#allocation9 + $0x238] sm:$0xff] }
  0x4e   :  { %344 = vmatpush.msrb.mxu0 %v271_v20  ;;  %361 = vmatpush.msrb.mxu1 %v290_v21  ;;  %v436_v12 = vsub.f32 1.0, %v435_v9 }
  0x4f   :  { %826 = vmatpush.msra.mxu3 %v466_v51  ;;  %384 = vmatpush.msrb.mxu2 %v303_v56 }
  0x50   :  { %834 = vmatpush.msra.mxu0 %v662_v22  ;;  %362 = vmatpush.msrb.mxu1 %v289_v23  ;;  %v437_v20 = vmul.f32 %v2308_v7, %v436_v12  ;;  %v509_v12 = vld [vmem:[#allocation9 + $0x200] sm:$0xff] }
  0x51   :  { %827 = vmatpush.msra.mxu3 %v459_v55  ;;  %888 = vmatpush.msra.mxu2 %v788_v59  ;;  %v782_v55 = vld [vmem:[#allocation9 + $0xa88] sm:$0xff] }
  0x52   :  { %835 = vmatpush.msra.mxu0 %v655_v24  ;;  %363 = vmatpush.msrb.mxu1 %v288_v25  ;;  %v761_v24 = vld [vmem:[#allocation9 + $0x9e0] sm:$0xff] }
  0x53   :  { %828 = vmatpush.msra.mxu3 %v452_v58  ;;  %889 = vmatpush.msra.mxu2 %v781_v62  ;;  %v642_v58 = vld [vmem:[#allocation9 + $0x628] sm:$0xff]  ;;  %v733_v62 = vld [vmem:[#allocation9 + $0x900] sm:$0xff] }
  0x54   :  { %836 = vmatpush.msra.mxu0 %v648_v26  ;;  %364 = vmatpush.msrb.mxu1 %v287_v27 }
  0x55   :  { %829 = vmatpush.msra.mxu3 %v445_v61 }
  0x56   :  { %837 = vmatpush.msra.mxu0 %v641_v28  ;;  %854 = vmatpush.msra.mxu1 %v774_v29 }
  0x58   :  { %838 = vmatpush.msra.mxu0 %v634_v30  ;;  %855 = vmatpush.msra.mxu1 %v767_v31  ;;  %v438_v30 = vadd.f32 %v2308_v7, %v437_v20 }
  0x5a   :  { %839 = vmatpush.msra.mxu0 %v627_v32  ;;  %856 = vmatpush.msra.mxu1 %v760_v33  ;;  %v551_v33 = vld [vmem:[#allocation9 + $0x350] sm:$0xff]  ;;  %v440_v47 = vsel %vm439_vm2, %v2308_v7, %v438_v30  ;;  %v628_v7 = vld [vmem:[#allocation9 + $0x5b8] sm:$0xff]  ;;  %vm1451_vm2 = vcmask 64512  }
  0x5b   :  { %v691_v30 = vld [vmem:[#allocation9 + $0x7b0] sm:$0xff] }
  0x5c   :  { %840 = vmatpush.msra.mxu0 %v620_v34  ;;  %857 = vmatpush.msra.mxu1 %v753_v35  ;;  %v663_v34 = vld [vmem:[#allocation9 + $0x6d0] sm:$0xff] }
  0x5e   :  { %841 = vmatpush.msra.mxu0 %v613_v36  ;;  %858 = vmatpush.msra.mxu1 %v746_v37  ;;  %v754_v37 = vld [vmem:[#allocation9 + $0x9a8] sm:$0xff] }
  0x60   :  { %842 = vmatpush.msra.mxu0 %v606_v38  ;;  %859 = vmatpush.msra.mxu1 %v739_v46  ;;  %v789_v46 = vld [vmem:[#allocation9 + $0xac0] sm:$0xff] }
  0x62   :  { %843 = vmatpush.msra.mxu0 %v599_v39  ;;  %860 = vmatpush.msra.mxu1 %v732_v50  ;;  %v649_v50 = vld [vmem:[#allocation9 + $0x660] sm:$0xff] }
  0x64   :  { %844 = vmatpush.msra.mxu0 %v592_v40  ;;  %861 = vmatpush.msra.mxu1 %v725_v54  ;;  %v544_v40 = vld [vmem:[#allocation9 + $0x318] sm:$0xff] }
  0x65   :  { %v740_v54 = vld [vmem:[#allocation9 + $0x938] sm:$0xff] }
  0x66   :  { %845 = vmatpush.msra.mxu0 %v585_v41  ;;  %862 = vmatpush.msra.mxu1 %v718_v57  ;;  %v656_v41 = vld [vmem:[#allocation9 + $0x698] sm:$0xff]  ;;  %v530_v57 = vld [vmem:[#allocation9 + $0x2a8] sm:$0xff] }
  0x68   :  { %846 = vmatpush.msra.mxu0 %v578_v42  ;;  %863 = vmatpush.msra.mxu1 %v711_v60 }
  0x6a   :  { %847 = vmatpush.msra.mxu0 %v571_v44  ;;  %864 = vmatpush.msra.mxu1 %v704_v63 }
  0x6c   :  { %848 = vmatpush.msra.mxu0 %v564_v48  ;;  %865 = vmatpush.msra.mxu1 %v697_v0  ;;  %v523_v0 = vld [vmem:[#allocation9 + $0x270] sm:$0xff] }
  0x6e   :  { %849 = vmatpush.msra.mxu0 %v557_v52  ;;  %866 = vmatpush.msra.mxu1 %v690_v1  ;;  %v635_v1 = vld [vmem:[#allocation9 + $0x5f0] sm:$0xff] }
  0x70   :  { %867 = vmatpush.msra.mxu1 %v683_v2 }
  0x72   :  { %868 = vmatpush.msra.mxu1 %v676_v4  ;;  %v726_v4 = vld [vmem:[#allocation9 + $0x8c8] sm:$0xff] }
  0x74   :  { %869 = vmatpush.msra.mxu1 %v669_v5 }
  0xab   :  { %v204_v10 = vpop.f32.mrf.mxu0 }
  0xac   :  { %v205_v11 = vadd.f32 %v204_v10, %v175_v8  ;;  %v719_v10 = vld [vmem:[#allocation9 + $0x890] sm:$0xff] }
  0xae   :  { %v267_v13 = vmax.f32 %v205_v11, 0.0 }
  0xb0   :  { %v409_v17 = vrot.slane %v267_v13, 4  ;;  %345 = vmatmul.f32.vlgmr.msrb.gmra.mxu0 %v267_v13 }
  0xb1   :  { %934 = vmatpush.msrb.mxu0 %v775_v14 }
  0xb2   :  { %v410_v21 = vadd.f32 %v409_v17, %v267_v13  ;;  %v244_v22 = vpop.f32.mrf.mxu2  ;;  %v264_v23 = vpop.f32.mrf.mxu3  ;;  %v621_v13 = vld [vmem:[#allocation9 + $0x580] sm:$0xff] }
  0xb3   :  { %v245_v25 = vadd.f32 %v244_v22, %v177_v15  ;;  %v265_v26 = vadd.f32 %v264_v23, %v178_v16  ;;  %935 = vmatpush.msrb.mxu0 %v768_v18  ;;  %v224_v27 = vpop.f32.mrf.mxu1  ;;  %v712_v16 = vld [vmem:[#allocation9 + $0x858] sm:$0xff]  ;;  %v502_v18 = vld [vmem:[#allocation9 + $0x1c8] sm:$0xff]  ;;  %v705_v22 = vld [vmem:[#allocation9 + $0x820] sm:$0xff] }
  0xb4   :  { %v411_v28 = vrot.slane %v410_v21, 2  ;;  %v225_v29 = vadd.f32 %v224_v27, %v176_v19  ;;  %v614_v19 = vld [vmem:[#allocation9 + $0x548] sm:$0xff]  ;;  %v552_v23 = vld [vmem:[#allocation9 + $0x358] sm:$0xff]  ;;  %v545_v27 = vld [vmem:[#allocation9 + $0x320] sm:$0xff] }
  0xb5   :  { %v269_v31 = vmax.f32 %v245_v25, 0.0  ;;  %v270_v32 = vmax.f32 %v265_v26, 0.0  ;;  %936 = vmatpush.msrb.mxu0 %v761_v24  ;;  %v495_v24 = vld [vmem:[#allocation9 + $0x190] sm:$0xff]  ;;  %v698_v26 = vld [vmem:[#allocation9 + $0x7e8] sm:$0xff] }
  0xb6   :  { %v412_v35 = vadd.f32 %v411_v28, %v410_v21  ;;  %v268_v36 = vmax.f32 %v225_v29, 0.0  ;;  %v607_v25 = vld [vmem:[#allocation9 + $0x510] sm:$0xff]  ;;  %v488_v28 = vld [vmem:[#allocation9 + $0x158] sm:$0xff] }
  0xb7   :  { %v421_v38 = vrot.slane %v269_v31, 4  ;;  %v427_v39 = vsel %vm325_vm1, %v270_v32, 0.0  ;;  %385 = vmatmul.f32.vlgmr.msrb.gmra.mxu2 %v269_v31  ;;  %2190 = vmatmul.msk.f32.vlgmr.msrb.gmra.mxu3 %vm325_vm1, %v270_v32  ;;  %v600_v29 = vld [vmem:[#allocation9 + $0x4d8] sm:$0xff]  ;;  %v481_v32 = vld [vmem:[#allocation9 + $0x120] sm:$0xff] }
  0xb8   :  { %v413_v42 = vrot.slane %v412_v35, 1  ;;  %v428_v43 = vrot.slane %v427_v39, 4  ;;  %v415_v44 = vrot.slane %v268_v36, 4  ;;  %894 = vmatpush.msrb.mxu2 %v551_v33  ;;  %914 = vmatpush.msrb.mxu3 %v663_v34  ;;  %v593_v33 = vld [vmem:[#allocation9 + $0x4a0] sm:$0xff]  ;;  %v684_v34 = vld [vmem:[#allocation9 + $0x778] sm:$0xff] }
  0xb9   :  { %v422_v48 = vadd.f32 %v421_v38, %v269_v31  ;;  %937 = vmatpush.msrb.mxu0 %v754_v37  ;;  %365 = vmatmul.f32.vlgmr.msrb.gmra.mxu1 %v268_v36  ;;  %v538_v31 = vld [vmem:[#allocation9 + $0x2e8] sm:$0xff]  ;;  %v677_v38 = vld [vmem:[#allocation9 + $0x740] sm:$0xff] }
  0xba   :  { %v414_v51 = vadd.f32 %v413_v42, %v412_v35  ;;  %v429_v52 = vadd.f32 %v428_v43, %v427_v39  ;;  %v416_v53 = vadd.f32 %v415_v44, %v268_v36  ;;  %895 = vmatpush.msrb.mxu2 %v544_v40  ;;  %915 = vmatpush.msrb.mxu3 %v656_v41  ;;  %v531_v35 = vld [vmem:[#allocation9 + $0x2b0] sm:$0xff]  ;;  %v474_v36 = vld [vmem:[#allocation9 + $0xe8] sm:$0xff]  ;;  %v524_v39 = vld [vmem:[#allocation9 + $0x278] sm:$0xff] }
  0xbb   :  { %v423_v56 = vrot.slane %v422_v48, 2  ;;  %938 = vmatpush.msrb.mxu0 %v747_v45  ;;  %968 = vmatpush.msrb.mxu1 %v789_v46  ;;  %v586_v37 = vld [vmem:[#allocation9 + $0x468] sm:$0xff]  ;;  %v467_v40 = vld [vmem:[#allocation9 + $0xb0] sm:$0xff]  ;;  %v517_v43 = vld [vmem:[#allocation9 + $0x240] sm:$0xff] }
  0xbc   :  { %v2778_v59 = vmul.f32 %v440_v47, %v414_v51  ;;  %v430_v60 = vrot.slane %v429_v52, 2  ;;  %v417_v61 = vrot.slane %v416_v53, 2  ;;  %896 = vmatpush.msrb.mxu2 %v537_v49  ;;  %916 = vmatpush.msrb.mxu3 %v649_v50  ;;  %v579_v41 = vld [vmem:[#allocation9 + $0x430] sm:$0xff]  ;;  %v670_v42 = vld [vmem:[#allocation9 + $0x708] sm:$0xff]  ;;  %v460_v45 = vld [vmem:[#allocation9 + $0x78] sm:$0xff] }
  0xbd   :  { %v424_v63 = vadd.f32 %v423_v56, %v422_v48  ;;  %939 = vmatpush.msrb.mxu0 %v740_v54  ;;  %969 = vmatpush.msrb.mxu1 %v782_v55  ;;  %v790_v44 = vld [vmem:[#allocation9 + $0xac8] sm:$0xff]  ;;  %v572_v46 = vld [vmem:[#allocation9 + $0x3f8] sm:$0xff]  ;;  %v783_v48 = vld [vmem:[#allocation9 + $0xa90] sm:$0xff] }
  0xbe   :  { %v431_v2 = vadd.f32 %v430_v60, %v429_v52  ;;  %v418_v3 = vadd.f32 %v417_v61, %v416_v53  ;;  %897 = vmatpush.msrb.mxu2 %v530_v57  ;;  %917 = vmatpush.msrb.mxu3 %v642_v58  ;;  %v453_v49 = vld [vmem:[#allocation9 + $0x40] sm:$0xff]  ;;  %v503_v51 = vld [vmem:[#allocation9 + $0x1d0] sm:$0xff]  ;;  %v446_v53 = vld [vmem:[#allocation9 + $0x8] sm:$0xff] }
  0xbf   :  { %v425_v5 = vrot.slane %v424_v63, 1  ;;  %940 = vmatpush.msrb.mxu0 %v733_v62  ;;  %830 = vmatmul.f32.vlgmr.msra.gmra.mxu3 %v2778_v59  ;;  %v565_v50 = vld [vmem:[#allocation9 + $0x3c0] sm:$0xff]  ;;  %v558_v54 = vld [vmem:[#allocation9 + $0x388] sm:$0xff]  ;;  %v496_v55 = vld [vmem:[#allocation9 + $0x198] sm:$0xff] }
  0xc0   :  { %v432_v8 = vrot.slane %v431_v2, 1  ;;  %v419_v9 = vrot.slane %v418_v3, 1  ;;  %898 = vmatpush.msrb.mxu2 %v523_v0  ;;  %918 = vmatpush.msrb.mxu3 %v635_v1  ;;  %v553_v52 = vld [vmem:[#allocation9 + $0x360] sm:$0xff]  ;;  %v546_v56 = vld [vmem:[#allocation9 + $0x328] sm:$0xff]  ;;  %v664_v57 = vld [vmem:[#allocation9 + $0x6d8] sm:$0xff] }
  0xc1   :  { %v426_v11 = vadd.f32 %v425_v5, %v424_v63  ;;  %941 = vmatpush.msrb.mxu0 %v726_v4  ;;  %v776_v58 = vld [vmem:[#allocation9 + $0xa58] sm:$0xff]  ;;  %v489_v60 = vld [vmem:[#allocation9 + $0x160] sm:$0xff]  ;;  %v539_v61 = vld [vmem:[#allocation9 + $0x2f0] sm:$0xff] }
  0xc2   :  { %v433_v14 = vadd.f32 %v432_v8, %v431_v2  ;;  %v420_v15 = vadd.f32 %v419_v9, %v418_v3  ;;  %899 = vmatpush.msrb.mxu2 %v516_v6  ;;  %919 = vmatpush.msrb.mxu3 %v628_v7  ;;  %v657_v62 = vld [vmem:[#allocation9 + $0x6a0] sm:$0xff]  ;;  %v482_v0 = vld [vmem:[#allocation9 + $0x128] sm:$0xff]  ;;  %v532_v1 = vld [vmem:[#allocation9 + $0x2b8] sm:$0xff] }
  0xc3   :  { %v2781_v17 = vmul.f32 %v440_v47, %v426_v11  ;;  %942 = vmatpush.msrb.mxu0 %v719_v10  ;;  %v769_v63 = vld [vmem:[#allocation9 + $0xa20] sm:$0xff]  ;;  %v650_v2 = vld [vmem:[#allocation9 + $0x668] sm:$0xff]  ;;  %v475_v4 = vld [vmem:[#allocation9 + $0xf0] sm:$0xff] }
  0xc4   :  { %v2783_v20 = vmul.f32 %v440_v47, %v433_v14  ;;  %v2785_v21 = vmul.f32 %v440_v47, %v420_v15  ;;  %900 = vmatpush.msrb.mxu2 %v509_v12  ;;  %920 = vmatpush.msrb.mxu3 %v621_v13  ;;  %v510_v47 = vld [vmem:[#allocation9 + $0x208] sm:$0xff]  ;;  %v525_v5 = vld [vmem:[#allocation9 + $0x280] sm:$0xff]  ;;  %v643_v6 = vld [vmem:[#allocation9 + $0x630] sm:$0xff] }
  0xc5   :  { %943 = vmatpush.msrb.mxu0 %v712_v16  ;;  %870 = vmatmul.f32.vlgmr.msra.gmra.mxu1 %v2781_v17  ;;  %v762_v3 = vld [vmem:[#allocation9 + $0x9e8] sm:$0xff]  ;;  %v755_v7 = vld [vmem:[#allocation9 + $0x9b0] sm:$0xff]  ;;  %v468_v8 = vld [vmem:[#allocation9 + $0xb8] sm:$0xff] }
  0xc6   :  { %901 = vmatpush.msrb.mxu2 %v502_v18  ;;  %921 = vmatpush.msrb.mxu3 %v614_v19  ;;  %v518_v9 = vld [vmem:[#allocation9 + $0x248] sm:$0xff]  ;;  %v636_v10 = vld [vmem:[#allocation9 + $0x5f8] sm:$0xff]  ;;  %v461_v12 = vld [vmem:[#allocation9 + $0x80] sm:$0xff] }
  0xc7   :  { %944 = vmatpush.msrb.mxu0 %v705_v22  ;;  %974 = vmatpush.msra.mxu1 %v552_v23  ;;  %v748_v11 = vld [vmem:[#allocation9 + $0x978] sm:$0xff]  ;;  %v511_v13 = vld [vmem:[#allocation9 + $0x210] sm:$0xff]  ;;  %v629_v14 = vld [vmem:[#allocation9 + $0x5c0] sm:$0xff] }
  0xc8   :  { %2191 = vmatmul.msk.f32.vlgmr.msra.gmra.mxu2 %vm325_vm1, %v2783_v20  ;;  %850 = vmatmul.f32.vlgmr.msra.gmra.mxu0 %v2785_v21  ;;  %v741_v15 = vld [vmem:[#allocation9 + $0x940] sm:$0xff]  ;;  %v454_v16 = vld [vmem:[#allocation9 + $0x48] sm:$0xff]  ;;  %v504_v18 = vld [vmem:[#allocation9 + $0x1d8] sm:$0xff] }
  0xc9   :  { %902 = vmatpush.msrb.mxu2 %v495_v24  ;;  %922 = vmatpush.msrb.mxu3 %v607_v25  ;;  %v622_v19 = vld [vmem:[#allocation9 + $0x588] sm:$0xff]  ;;  %v447_v23 = vld [vmem:[#allocation9 + $0x10] sm:$0xff]  ;;  %v497_v24 = vld [vmem:[#allocation9 + $0x1a0] sm:$0xff] }
  0xca   :  { %945 = vmatpush.msrb.mxu0 %v698_v26  ;;  %975 = vmatpush.msra.mxu1 %v545_v27  ;;  %v734_v22 = vld [vmem:[#allocation9 + $0x908] sm:$0xff]  ;;  %v615_v25 = vld [vmem:[#allocation9 + $0x550] sm:$0xff]  ;;  %v665_v27 = vld [vmem:[#allocation9 + $0x6e0] sm:$0xff] }
  0xcb   :  { %903 = vmatpush.msrb.mxu2 %v488_v28  ;;  %923 = vmatpush.msrb.mxu3 %v600_v29  ;;  %v727_v26 = vld [vmem:[#allocation9 + $0x8d0] sm:$0xff]  ;;  %v490_v28 = vld [vmem:[#allocation9 + $0x168] sm:$0xff]  ;;  %v608_v29 = vld [vmem:[#allocation9 + $0x518] sm:$0xff] }
  0xcc   :  { %946 = vmatpush.msrb.mxu0 %v691_v30  ;;  %976 = vmatpush.msra.mxu1 %v538_v31  ;;  %v720_v30 = vld [vmem:[#allocation9 + $0x898] sm:$0xff]  ;;  %v658_v31 = vld [vmem:[#allocation9 + $0x6a8] sm:$0xff] }
  0xcd   :  { %904 = vmatpush.msrb.mxu2 %v481_v32  ;;  %924 = vmatpush.msrb.mxu3 %v593_v33  ;;  %v483_v32 = vld [vmem:[#allocation9 + $0x130] sm:$0xff]  ;;  %v601_v33 = vld [vmem:[#allocation9 + $0x4e0] sm:$0xff] }
  0xce   :  { %947 = vmatpush.msrb.mxu0 %v684_v34  ;;  %977 = vmatpush.msra.mxu1 %v531_v35  ;;  %v713_v34 = vld [vmem:[#allocation9 + $0x860] sm:$0xff]  ;;  %v651_v35 = vld [vmem:[#allocation9 + $0x670] sm:$0xff] }
  0xcf   :  { %905 = vmatpush.msrb.mxu2 %v474_v36  ;;  %925 = vmatpush.msrb.mxu3 %v586_v37  ;;  %v476_v36 = vld [vmem:[#allocation9 + $0xf8] sm:$0xff]  ;;  %v594_v37 = vld [vmem:[#allocation9 + $0x4a8] sm:$0xff] }
  0xd0   :  { %948 = vmatpush.msrb.mxu0 %v677_v38  ;;  %2192 = vmatmul.msk.f32.vlgmr.msrb.gmra.mxu1 %vm325_vm1, %v2783_v20  ;;  %v706_v38 = vld [vmem:[#allocation9 + $0x828] sm:$0xff] }
  0xd1   :  { %978 = vmatpush.msra.mxu1 %v524_v39  ;;  %906 = vmatpush.msrb.mxu2 %v467_v40  ;;  %v644_v39 = vld [vmem:[#allocation9 + $0x638] sm:$0xff]  ;;  %v469_v40 = vld [vmem:[#allocation9 + $0xc0] sm:$0xff] }
  0xd2   :  { %926 = vmatpush.msrb.mxu3 %v579_v41  ;;  %949 = vmatpush.msrb.mxu0 %v670_v42  ;;  %v587_v41 = vld [vmem:[#allocation9 + $0x470] sm:$0xff] }
  0xd3   :  { %979 = vmatpush.msra.mxu1 %v517_v43  ;;  %950 = vmatmul.f32.vlgmr.msrb.gmra.mxu0 %v2781_v17  ;;  %v699_v42 = vld [vmem:[#allocation9 + $0x7f0] sm:$0xff]  ;;  %v637_v43 = vld [vmem:[#allocation9 + $0x600] sm:$0xff] }
  0xd4   :  { %1048 = vmatpush.msra.mxu0 %v790_v44  ;;  %907 = vmatpush.msrb.mxu2 %v460_v45  ;;  %v462_v44 = vld [vmem:[#allocation9 + $0x88] sm:$0xff]  ;;  %v580_v45 = vld [vmem:[#allocation9 + $0x438] sm:$0xff] }
  0xd5   :  { %927 = vmatpush.msrb.mxu3 %v572_v46  ;;  %980 = vmatpush.msra.mxu1 %v510_v47  ;;  %v692_v46 = vld [vmem:[#allocation9 + $0x7b8] sm:$0xff]  ;;  %v630_v47 = vld [vmem:[#allocation9 + $0x5c8] sm:$0xff] }
  0xd6   :  { %1049 = vmatpush.msra.mxu0 %v783_v48  ;;  %908 = vmatpush.msrb.mxu2 %v453_v49  ;;  %v455_v48 = vld [vmem:[#allocation9 + $0x50] sm:$0xff]  ;;  %v573_v49 = vld [vmem:[#allocation9 + $0x400] sm:$0xff] }
  0xd7   :  { %928 = vmatpush.msrb.mxu3 %v565_v50  ;;  %981 = vmatpush.msra.mxu1 %v503_v51  ;;  %v685_v50 = vld [vmem:[#allocation9 + $0x780] sm:$0xff]  ;;  %v623_v51 = vld [vmem:[#allocation9 + $0x590] sm:$0xff] }
  0xd8   :  { %1054 = vmatpush.msrb.mxu0 %v553_v52  ;;  %909 = vmatpush.msrb.mxu2 %v446_v53  ;;  %v448_v52 = vld [vmem:[#allocation9 + $0x18] sm:$0xff]  ;;  %v566_v53 = vld [vmem:[#allocation9 + $0x3c8] sm:$0xff] }
  0xd9   :  { %929 = vmatpush.msrb.mxu3 %v558_v54  ;;  %982 = vmatpush.msra.mxu1 %v496_v55  ;;  %v678_v54 = vld [vmem:[#allocation9 + $0x748] sm:$0xff]  ;;  %v616_v55 = vld [vmem:[#allocation9 + $0x558] sm:$0xff] }
  0xda   :  { %1055 = vmatpush.msrb.mxu0 %v546_v56  ;;  %910 = vmatmul.f32.vlgmr.msrb.gmra.mxu2 %v2778_v59  ;;  %v666_v56 = vld [vmem:[#allocation9 + $0x6e8] sm:$0xff] }
  0xdb   :  { %994 = vmatpush.msra.mxu2 %v664_v57  ;;  %1014 = vmatpush.msra.mxu3 %v776_v58  ;;  %v559_v57 = vld [vmem:[#allocation9 + $0x390] sm:$0xff] }
  0xdc   :  { %983 = vmatpush.msra.mxu1 %v489_v60  ;;  %1056 = vmatpush.msrb.mxu0 %v539_v61  ;;  %v671_v58 = vld [vmem:[#allocation9 + $0x710] sm:$0xff]  ;;  %v609_v60 = vld [vmem:[#allocation9 + $0x520] sm:$0xff] }
  0xdd   :  { %930 = vmatmul.f32.vlgmr.msrb.gmra.mxu3 %v2785_v21  ;;  %995 = vmatpush.msra.mxu2 %v657_v62  ;;  %v659_v61 = vld [vmem:[#allocation9 + $0x6b0] sm:$0xff]  ;;  %v777_v62 = vld [vmem:[#allocation9 + $0xa60] sm:$0xff] }
  0xde   :  { %1015 = vmatpush.msra.mxu3 %v769_v63  ;;  %2193 = vmatmul.msk.f32.vlgmr.msra.gmra.mxu0 %vm325_vm1, %v2783_v20  ;;  %v791_v63 = vld [vmem:[#allocation9 + $0xad0] sm:$0xff] }
  0xdf   :  { %984 = vmatpush.msra.mxu1 %v482_v0  ;;  %1057 = vmatpush.msrb.mxu0 %v532_v1  ;;  %v602_v0 = vld [vmem:[#allocation9 + $0x4e8] sm:$0xff]  ;;  %v652_v1 = vld [vmem:[#allocation9 + $0x678] sm:$0xff] }
  0xe0   :  { %996 = vmatpush.msra.mxu2 %v650_v2  ;;  %1016 = vmatpush.msra.mxu3 %v762_v3  ;;  %v770_v2 = vld [vmem:[#allocation9 + $0xa28] sm:$0xff]  ;;  %v784_v3 = vld [vmem:[#allocation9 + $0xa98] sm:$0xff] }
  0xe1   :  { %985 = vmatpush.msra.mxu1 %v475_v4  ;;  %1058 = vmatpush.msrb.mxu0 %v525_v5  ;;  %v595_v4 = vld [vmem:[#allocation9 + $0x4b0] sm:$0xff]  ;;  %v554_v5 = vld [vmem:[#allocation9 + $0x368] sm:$0xff] }
  0xe2   :  { %997 = vmatpush.msra.mxu2 %v643_v6  ;;  %1017 = vmatpush.msra.mxu3 %v755_v7  ;;  %v645_v6 = vld [vmem:[#allocation9 + $0x640] sm:$0xff]  ;;  %v763_v7 = vld [vmem:[#allocation9 + $0x9f0] sm:$0xff] }
  0xe3   :  { %986 = vmatpush.msra.mxu1 %v468_v8  ;;  %1059 = vmatpush.msrb.mxu0 %v518_v9  ;;  %v588_v8 = vld [vmem:[#allocation9 + $0x478] sm:$0xff]  ;;  %v547_v9 = vld [vmem:[#allocation9 + $0x330] sm:$0xff] }
  0xe4   :  { %998 = vmatpush.msra.mxu2 %v636_v10  ;;  %1018 = vmatpush.msra.mxu3 %v748_v11  ;;  %v638_v10 = vld [vmem:[#allocation9 + $0x608] sm:$0xff]  ;;  %v756_v11 = vld [vmem:[#allocation9 + $0x9b8] sm:$0xff] }
  0xe5   :  { %987 = vmatpush.msra.mxu1 %v461_v12  ;;  %1060 = vmatpush.msrb.mxu0 %v511_v13  ;;  %v581_v12 = vld [vmem:[#allocation9 + $0x440] sm:$0xff]  ;;  %v540_v13 = vld [vmem:[#allocation9 + $0x2f8] sm:$0xff] }
  0xe6   :  { %999 = vmatpush.msra.mxu2 %v629_v14  ;;  %1019 = vmatpush.msra.mxu3 %v741_v15  ;;  %v631_v14 = vld [vmem:[#allocation9 + $0x5d0] sm:$0xff]  ;;  %v749_v15 = vld [vmem:[#allocation9 + $0x980] sm:$0xff] }
  0xe7   :  { %988 = vmatpush.msra.mxu1 %v454_v16  ;;  %1061 = vmatpush.msrb.mxu0 %v504_v18  ;;  %v574_v16 = vld [vmem:[#allocation9 + $0x408] sm:$0xff]  ;;  %v533_v18 = vld [vmem:[#allocation9 + $0x2c0] sm:$0xff] }
  0xe8   :  { %1000 = vmatpush.msra.mxu2 %v622_v19  ;;  %1020 = vmatpush.msra.mxu3 %v734_v22  ;;  %v624_v19 = vld [vmem:[#allocation9 + $0x598] sm:$0xff]  ;;  %v742_v22 = vld [vmem:[#allocation9 + $0x948] sm:$0xff] }
  0xe9   :  { %989 = vmatpush.msra.mxu1 %v447_v23  ;;  %1062 = vmatpush.msrb.mxu0 %v497_v24  ;;  %v567_v23 = vld [vmem:[#allocation9 + $0x3d0] sm:$0xff]  ;;  %v526_v24 = vld [vmem:[#allocation9 + $0x288] sm:$0xff] }
  0xea   :  { %990 = vmatmul.f32.vlgmr.msra.gmra.mxu1 %v2778_v59  ;;  %1001 = vmatpush.msra.mxu2 %v615_v25  ;;  %v617_v25 = vld [vmem:[#allocation9 + $0x560] sm:$0xff] }
  0xeb   :  { %1021 = vmatpush.msra.mxu3 %v727_v26  ;;  %1074 = vmatpush.msrb.mxu1 %v665_v27  ;;  %v735_v26 = vld [vmem:[#allocation9 + $0x910] sm:$0xff]  ;;  %v560_v27 = vld [vmem:[#allocation9 + $0x398] sm:$0xff] }
  0xec   :  { %1063 = vmatpush.msrb.mxu0 %v490_v28  ;;  %1002 = vmatpush.msra.mxu2 %v608_v29  ;;  %v519_v28 = vld [vmem:[#allocation9 + $0x250] sm:$0xff]  ;;  %v610_v29 = vld [vmem:[#allocation9 + $0x528] sm:$0xff] }
  0xed   :  { %1022 = vmatpush.msra.mxu3 %v720_v30  ;;  %1075 = vmatpush.msrb.mxu1 %v658_v31  ;;  %v728_v30 = vld [vmem:[#allocation9 + $0x8d8] sm:$0xff]  ;;  %v778_v31 = vld [vmem:[#allocation9 + $0xa68] sm:$0xff] }
  0xee   :  { %1064 = vmatpush.msrb.mxu0 %v483_v32  ;;  %1003 = vmatpush.msra.mxu2 %v601_v33  ;;  %v512_v32 = vld [vmem:[#allocation9 + $0x218] sm:$0xff]  ;;  %v603_v33 = vld [vmem:[#allocation9 + $0x4f0] sm:$0xff] }
  0xef   :  { %1023 = vmatpush.msra.mxu3 %v713_v34  ;;  %1076 = vmatpush.msrb.mxu1 %v651_v35  ;;  %v721_v34 = vld [vmem:[#allocation9 + $0x8a0] sm:$0xff]  ;;  %v771_v35 = vld [vmem:[#allocation9 + $0xa30] sm:$0xff] }
  0xf0   :  { %1065 = vmatpush.msrb.mxu0 %v476_v36  ;;  %1004 = vmatpush.msra.mxu2 %v594_v37  ;;  %v505_v36 = vld [vmem:[#allocation9 + $0x1e0] sm:$0xff]  ;;  %v596_v37 = vld [vmem:[#allocation9 + $0x4b8] sm:$0xff] }
  0xf1   :  { %1024 = vmatpush.msra.mxu3 %v706_v38  ;;  %1077 = vmatpush.msrb.mxu1 %v644_v39  ;;  %v714_v38 = vld [vmem:[#allocation9 + $0x868] sm:$0xff]  ;;  %v764_v39 = vld [vmem:[#allocation9 + $0x9f8] sm:$0xff] }
  0xf2   :  { %1066 = vmatpush.msrb.mxu0 %v469_v40  ;;  %1005 = vmatpush.msra.mxu2 %v587_v41  ;;  %v498_v40 = vld [vmem:[#allocation9 + $0x1a8] sm:$0xff]  ;;  %v589_v41 = vld [vmem:[#allocation9 + $0x480] sm:$0xff] }
  0xf3   :  { %1025 = vmatpush.msra.mxu3 %v699_v42  ;;  %1078 = vmatpush.msrb.mxu1 %v637_v43  ;;  %v707_v42 = vld [vmem:[#allocation9 + $0x830] sm:$0xff]  ;;  %v757_v43 = vld [vmem:[#allocation9 + $0x9c0] sm:$0xff] }
  0xf4   :  { %1067 = vmatpush.msrb.mxu0 %v462_v44  ;;  %1006 = vmatpush.msra.mxu2 %v580_v45  ;;  %v491_v44 = vld [vmem:[#allocation9 + $0x170] sm:$0xff]  ;;  %v582_v45 = vld [vmem:[#allocation9 + $0x448] sm:$0xff] }
  0xf5   :  { %1026 = vmatpush.msra.mxu3 %v692_v46  ;;  %1079 = vmatpush.msrb.mxu1 %v630_v47  ;;  %v700_v46 = vld [vmem:[#allocation9 + $0x7f8] sm:$0xff]  ;;  %v750_v47 = vld [vmem:[#allocation9 + $0x988] sm:$0xff] }
  0xf6   :  { %1068 = vmatpush.msrb.mxu0 %v455_v48  ;;  %1007 = vmatpush.msra.mxu2 %v573_v49  ;;  %v484_v48 = vld [vmem:[#allocation9 + $0x138] sm:$0xff]  ;;  %v575_v49 = vld [vmem:[#allocation9 + $0x410] sm:$0xff] }
  0xf7   :  { %1027 = vmatpush.msra.mxu3 %v685_v50  ;;  %1080 = vmatpush.msrb.mxu1 %v623_v51  ;;  %v693_v50 = vld [vmem:[#allocation9 + $0x7c0] sm:$0xff]  ;;  %v743_v51 = vld [vmem:[#allocation9 + $0x950] sm:$0xff] }
  0xf8   :  { %1069 = vmatpush.msrb.mxu0 %v448_v52  ;;  %1008 = vmatpush.msra.mxu2 %v566_v53  ;;  %v477_v52 = vld [vmem:[#allocation9 + $0x100] sm:$0xff]  ;;  %v568_v53 = vld [vmem:[#allocation9 + $0x3d8] sm:$0xff] }
  0xf9   :  { %1028 = vmatpush.msra.mxu3 %v678_v54  ;;  %1070 = vmatmul.f32.vlgmr.msrb.gmra.mxu0 %v2778_v59  ;;  %v686_v54 = vld [vmem:[#allocation9 + $0x788] sm:$0xff] }
  0xfa   :  { %1081 = vmatpush.msrb.mxu1 %v616_v55  ;;  %1154 = vmatpush.msra.mxu0 %v666_v56  ;;  %v736_v55 = vld [vmem:[#allocation9 + $0x918] sm:$0xff]  ;;  %v470_v56 = vld [vmem:[#allocation9 + $0xc8] sm:$0xff] }
  0xfb   :  { %1009 = vmatpush.msra.mxu2 %v559_v57  ;;  %1029 = vmatpush.msra.mxu3 %v671_v58  ;;  %v561_v57 = vld [vmem:[#allocation9 + $0x3a0] sm:$0xff]  ;;  %v679_v58 = vld [vmem:[#allocation9 + $0x750] sm:$0xff] }
  0xfc   :  { %1082 = vmatpush.msrb.mxu1 %v609_v60  ;;  %1155 = vmatpush.msra.mxu0 %v659_v61  ;;  %v729_v60 = vld [vmem:[#allocation9 + $0x8e0] sm:$0xff]  ;;  %v779_v61 = vld [vmem:[#allocation9 + $0xa70] sm:$0xff] }
  0xfd   :  { %1010 = vmatmul.f32.vlgmr.msra.gmra.mxu2 %v2785_v21  ;;  %1030 = vmatmul.f32.vlgmr.msra.gmra.mxu3 %v2781_v17 }
  0xfe   :  { %1094 = vmatpush.msrb.mxu2 %v777_v62  ;;  %1128 = vmatpush.msrb.mxu3 %v791_v63  ;;  %v463_v62 = vld [vmem:[#allocation9 + $0x90] sm:$0xff]  ;;  %v672_v63 = vld [vmem:[#allocation9 + $0x718] sm:$0xff] }
  0xff   :  { %1083 = vmatpush.msrb.mxu1 %v602_v0  ;;  %1156 = vmatpush.msra.mxu0 %v652_v1  ;;  %v722_v0 = vld [vmem:[#allocation9 + $0x8a8] sm:$0xff]  ;;  %v772_v1 = vld [vmem:[#allocation9 + $0xa38] sm:$0xff] }
 0x100   :  { %1095 = vmatpush.msrb.mxu2 %v770_v2  ;;  %1129 = vmatpush.msrb.mxu3 %v784_v3  ;;  %v456_v2 = vld [vmem:[#allocation9 + $0x58] sm:$0xff] }
 0x101   :  { %1084 = vmatpush.msrb.mxu1 %v595_v4  ;;  %1157 = vmatpush.msra.mxu0 %v645_v6  ;;  %v792_v3 = vld [vmem:[#allocation9 + $0xad8] sm:$0xff]  ;;  %v715_v4 = vld [vmem:[#allocation9 + $0x870] sm:$0xff]  ;;  %v449_v6 = vld [vmem:[#allocation9 + $0x20] sm:$0xff] }
 0x102   :  { %1134 = vmatpush.msra.mxu3 %v554_v5  ;;  %1096 = vmatpush.msrb.mxu2 %v763_v7  ;;  %v765_v5 = vld [vmem:[#allocation9 + $0xa00] sm:$0xff] }
 0x103   :  { %1085 = vmatpush.msrb.mxu1 %v588_v8  ;;  %1158 = vmatpush.msra.mxu0 %v638_v10  ;;  %v785_v7 = vld [vmem:[#allocation9 + $0xaa0] sm:$0xff]  ;;  %v708_v8 = vld [vmem:[#allocation9 + $0x838] sm:$0xff]  ;;  %v667_v10 = vld [vmem:[#allocation9 + $0x6f0] sm:$0xff] }
 0x104   :  { %1135 = vmatpush.msra.mxu3 %v547_v9  ;;  %1097 = vmatpush.msrb.mxu2 %v756_v11  ;;  %v555_v9 = vld [vmem:[#allocation9 + $0x370] sm:$0xff]  ;;  %v758_v11 = vld [vmem:[#allocation9 + $0x9c8] sm:$0xff] }
 0x105   :  { %1086 = vmatpush.msrb.mxu1 %v581_v12  ;;  %1159 = vmatpush.msra.mxu0 %v631_v14  ;;  %v701_v12 = vld [vmem:[#allocation9 + $0x800] sm:$0xff]  ;;  %v660_v14 = vld [vmem:[#allocation9 + $0x6b8] sm:$0xff] }
 0x106   :  { %1136 = vmatpush.msra.mxu3 %v540_v13  ;;  %1098 = vmatpush.msrb.mxu2 %v749_v15  ;;  %v548_v13 = vld [vmem:[#allocation9 + $0x338] sm:$0xff]  ;;  %v751_v15 = vld [vmem:[#allocation9 + $0x990] sm:$0xff] }
 0x107   :  { %2194 = vmatmul.msk.f32.vlgmr.msrb.gmra.mxu3 %vm325_vm1, %v2783_v20  ;;  %1087 = vmatpush.msrb.mxu1 %v574_v16  ;;  %v694_v16 = vld [vmem:[#allocation9 + $0x7c8] sm:$0xff] }
 0x108   :  { %1137 = vmatpush.msra.mxu3 %v533_v18  ;;  %1160 = vmatpush.msra.mxu0 %v624_v19  ;;  %v541_v18 = vld [vmem:[#allocation9 + $0x300] sm:$0xff] }
 0x109   :  { %1099 = vmatpush.msrb.mxu2 %v742_v22  ;;  %1088 = vmatpush.msrb.mxu1 %v567_v23  ;;  %v653_v19 = vld [vmem:[#allocation9 + $0x680] sm:$0xff]  ;;  %v744_v22 = vld [vmem:[#allocation9 + $0x958] sm:$0xff]  ;;  %v687_v23 = vld [vmem:[#allocation9 + $0x790] sm:$0xff] }
 0x10a   :  { %1138 = vmatpush.msra.mxu3 %v526_v24  ;;  %1161 = vmatpush.msra.mxu0 %v617_v25  ;;  %v534_v24 = vld [vmem:[#allocation9 + $0x2c8] sm:$0xff] }
 0x10b   :  { %1100 = vmatpush.msrb.mxu2 %v735_v26  ;;  %1089 = vmatpush.msrb.mxu1 %v560_v27  ;;  %v646_v25 = vld [vmem:[#allocation9 + $0x648] sm:$0xff]  ;;  %v737_v26 = vld [vmem:[#allocation9 + $0x920] sm:$0xff]  ;;  %v680_v27 = vld [vmem:[#allocation9 + $0x758] sm:$0xff] }
 0x10c   :  { %1139 = vmatpush.msra.mxu3 %v519_v28  ;;  %1162 = vmatpush.msra.mxu0 %v610_v29  ;;  %v527_v28 = vld [vmem:[#allocation9 + $0x290] sm:$0xff] }
 0x10d   :  { %1090 = vmatmul.f32.vlgmr.msrb.gmra.mxu1 %v2785_v21  ;;  %1101 = vmatpush.msrb.mxu2 %v728_v30  ;;  %v639_v29 = vld [vmem:[#allocation9 + $0x610] sm:$0xff]  ;;  %v730_v30 = vld [vmem:[#allocation9 + $0x8e8] sm:$0xff] }
 0x10e   :  { %1174 = vmatpush.msra.mxu1 %v778_v31  ;;  %1140 = vmatpush.msra.mxu3 %v512_v32  ;;  %v673_v31 = vld [vmem:[#allocation9 + $0x720] sm:$0xff]  ;;  %v520_v32 = vld [vmem:[#allocation9 + $0x258] sm:$0xff] }
 0x10f   :  { %1163 = vmatpush.msra.mxu0 %v603_v33  ;;  %1102 = vmatpush.msrb.mxu2 %v721_v34  ;;  %v632_v33 = vld [vmem:[#allocation9 + $0x5d8] sm:$0xff]  ;;  %v723_v34 = vld [vmem:[#allocation9 + $0x8b0] sm:$0xff] }
 0x110   :  { %1175 = vmatpush.msra.mxu1 %v771_v35  ;;  %1141 = vmatpush.msra.mxu3 %v505_v36  ;;  %v513_v35 = vld [vmem:[#allocation9 + $0x220] sm:$0xff] }
 0x111   :  { %1164 = vmatpush.msra.mxu0 %v596_v37  ;;  %1103 = vmatpush.msrb.mxu2 %v714_v38  ;;  %v793_v36 = vld [vmem:[#allocation9 + $0xae0] sm:$0xff]  ;;  %v716_v38 = vld [vmem:[#allocation9 + $0x878] sm:$0xff] }
 0x112   :  { %1176 = vmatpush.msra.mxu1 %v764_v39  ;;  %1142 = vmatpush.msra.mxu3 %v498_v40  ;;  %v625_v37 = vld [vmem:[#allocation9 + $0x5a0] sm:$0xff]  ;;  %v506_v39 = vld [vmem:[#allocation9 + $0x1e8] sm:$0xff]  ;;  %v2264_v40 = vld [vmem:[%s3230_s5] ss:$0 sm:$0xff]  ;;  %s2527_s5 = smov 52  }
 0x113   :  { %1165 = vmatpush.msra.mxu0 %v589_v41  ;;  %1104 = vmatpush.msrb.mxu2 %v707_v42  ;;  %v786_v41 = vld [vmem:[#allocation9 + $0xaa8] sm:$0xff] }
 0x114   :  { %1177 = vmatpush.msra.mxu1 %v757_v43  ;;  %1143 = vmatpush.msra.mxu3 %v491_v44  ;;  %v618_v42 = vld [vmem:[#allocation9 + $0x568] sm:$0xff]  ;;  %v709_v44 = vld [vmem:[#allocation9 + $0x840] sm:$0xff] }
 0x115   :  { %1166 = vmatpush.msra.mxu0 %v582_v45  ;;  %1105 = vmatpush.msrb.mxu2 %v700_v46  ;;  %v556_v45 = vld [vmem:[#allocation9 + $0x378] sm:$0xff]  ;;  %v499_v46 = vld [vmem:[#allocation9 + $0x1b0] sm:$0xff] }
 0x116   :  { %1178 = vmatpush.msra.mxu1 %v750_v47  ;;  %1144 = vmatpush.msra.mxu3 %v484_v48  ;;  %v611_v47 = vld [vmem:[#allocation9 + $0x530] sm:$0xff]  ;;  %v702_v48 = vld [vmem:[#allocation9 + $0x808] sm:$0xff] }
 0x117   :  { %1167 = vmatpush.msra.mxu0 %v575_v49  ;;  %1106 = vmatpush.msrb.mxu2 %v693_v50  ;;  %v549_v49 = vld [vmem:[#allocation9 + $0x340] sm:$0xff] }
 0x118   :  { %1179 = vmatpush.msra.mxu1 %v743_v51  ;;  %1145 = vmatpush.msra.mxu3 %v477_v52  ;;  %v492_v51 = vld [vmem:[#allocation9 + $0x178] sm:$0xff] }
 0x119   :  { %1168 = vmatpush.msra.mxu0 %v568_v53  ;;  %1107 = vmatpush.msrb.mxu2 %v686_v54  ;;  %v604_v52 = vld [vmem:[#allocation9 + $0x4f8] sm:$0xff]  ;;  %v695_v53 = vld [vmem:[#allocation9 + $0x7d0] sm:$0xff]  ;;  %v542_v54 = vld [vmem:[#allocation9 + $0x308] sm:$0xff] }
 0x11a   :  { %1180 = vmatpush.msra.mxu1 %v736_v55  ;;  %1146 = vmatpush.msra.mxu3 %v470_v56  ;;  %v485_v55 = vld [vmem:[#allocation9 + $0x140] sm:$0xff] }
 0x11b   :  { %1169 = vmatpush.msra.mxu0 %v561_v57  ;;  %1108 = vmatpush.msrb.mxu2 %v679_v58  ;;  %v597_v57 = vld [vmem:[#allocation9 + $0x4c0] sm:$0xff]  ;;  %v688_v58 = vld [vmem:[#allocation9 + $0x798] sm:$0xff] }
 0x11c   :  { %1170 = vmatmul.f32.vlgmr.msra.gmra.mxu0 %v2785_v21  ;;  %1181 = vmatpush.msra.mxu1 %v729_v60 }
 0x11d   :  { %1254 = vmatpush.msrb.mxu0 %v779_v61  ;;  %1147 = vmatpush.msra.mxu3 %v463_v62  ;;  %v535_v61 = vld [vmem:[#allocation9 + $0x2d0] sm:$0xff]  ;;  %v478_v62 = vld [vmem:[#allocation9 + $0x108] sm:$0xff] }
 0x11e   :  { %1109 = vmatpush.msrb.mxu2 %v672_v63  ;;  %1182 = vmatpush.msra.mxu1 %v722_v0  ;;  %v590_v63 = vld [vmem:[#allocation9 + $0x488] sm:$0xff]  ;;  %v681_v0 = vld [vmem:[#allocation9 + $0x760] sm:$0xff] }
 0x11f   :  { %1255 = vmatpush.msrb.mxu0 %v772_v1  ;;  %1110 = vmatmul.f32.vlgmr.msrb.gmra.mxu2 %v2781_v17  ;;  %v528_v1 = vld [vmem:[#allocation9 + $0x298] sm:$0xff] }
 0x120   :  { %1148 = vmatpush.msra.mxu3 %v456_v2  ;;  %1208 = vmatpush.msra.mxu2 %v792_v3  ;;  %v471_v2 = vld [vmem:[#allocation9 + $0xd0] sm:$0xff] }
 0x121   :  { %1183 = vmatpush.msra.mxu1 %v715_v4  ;;  %1256 = vmatpush.msrb.mxu0 %v765_v5  ;;  %v583_v4 = vld [vmem:[#allocation9 + $0x450] sm:$0xff]  ;;  %v674_v5 = vld [vmem:[#allocation9 + $0x728] sm:$0xff] }
 0x122   :  { %1149 = vmatpush.msra.mxu3 %v449_v6  ;;  %1209 = vmatpush.msra.mxu2 %v785_v7  ;;  %v521_v7 = vld [vmem:[#allocation9 + $0x260] sm:$0xff] }
 0x123   :  { %1150 = vmatmul.f32.vlgmr.msra.gmra.mxu3 %v2778_v59  ;;  %1184 = vmatpush.msra.mxu1 %v708_v8 }
 0x124   :  { %1214 = vmatpush.msrb.mxu2 %v555_v9  ;;  %1234 = vmatpush.msrb.mxu3 %v667_v10  ;;  %v464_v9 = vld [vmem:[#allocation9 + $0x98] sm:$0xff] }
 0x125   :  { %1257 = vmatpush.msrb.mxu0 %v758_v11  ;;  %1185 = vmatpush.msra.mxu1 %v701_v12  ;;  %v576_v10 = vld [vmem:[#allocation9 + $0x418] sm:$0xff]  ;;  %v514_v12 = vld [vmem:[#allocation9 + $0x228] sm:$0xff] }
 0x126   :  { %1215 = vmatpush.msrb.mxu2 %v548_v13  ;;  %1235 = vmatpush.msrb.mxu3 %v660_v14  ;;  %v794_v13 = vld [vmem:[#allocation9 + $0xae8] sm:$0xff]  ;;  %v457_v14 = vld [vmem:[#allocation9 + $0x60] sm:$0xff] }
 0x127   :  { %1258 = vmatpush.msrb.mxu0 %v751_v15  ;;  %1186 = vmatpush.msra.mxu1 %v694_v16  ;;  %v569_v15 = vld [vmem:[#allocation9 + $0x3e0] sm:$0xff]  ;;  %v507_v16 = vld [vmem:[#allocation9 + $0x1f0] sm:$0xff] }
 0x128   :  { %1216 = vmatpush.msrb.mxu2 %v541_v18  ;;  %1236 = vmatpush.msrb.mxu3 %v653_v19  ;;  %v787_v18 = vld [vmem:[#allocation9 + $0xab0] sm:$0xff]  ;;  %v450_v19 = vld [vmem:[#allocation9 + $0x28] sm:$0xff] }
 0x129   :  { %1259 = vmatpush.msrb.mxu0 %v744_v22  ;;  %2195 = vmatmul.msk.f32.vlgmr.msra.gmra.mxu2 %vm325_vm1, %v2783_v20  ;;  %v562_v22 = vld [vmem:[#allocation9 + $0x3a8] sm:$0xff] }
 0x12a   :  { %1187 = vmatpush.msra.mxu1 %v687_v23  ;;  %1217 = vmatpush.msrb.mxu2 %v534_v24  ;;  %v500_v23 = vld [vmem:[#allocation9 + $0x1b8] sm:$0xff] }
 0x12b   :  { %1237 = vmatpush.msrb.mxu3 %v646_v25  ;;  %1260 = vmatpush.msrb.mxu0 %v737_v26  ;;  %v668_v24 = vld [vmem:[#allocation9 + $0x6f8] sm:$0xff]  ;;  %v493_v26 = vld [vmem:[#allocation9 + $0x180] sm:$0xff] }
 0x12c   :  { %1188 = vmatpush.msra.mxu1 %v680_v27  ;;  %1218 = vmatpush.msrb.mxu2 %v527_v28  ;;  %v780_v25 = vld [vmem:[#allocation9 + $0xa78] sm:$0xff]  ;;  %v661_v27 = vld [vmem:[#allocation9 + $0x6c0] sm:$0xff] }
 0x12d   :  { %1238 = vmatpush.msrb.mxu3 %v639_v29  ;;  %1261 = vmatpush.msrb.mxu0 %v730_v30  ;;  %v346_v43 = vpop.f32.mrf.mxu0  ;;  %v773_v28 = vld [vmem:[#allocation9 + $0xa40] sm:$0xff]  ;;  %v486_v29 = vld [vmem:[#allocation9 + $0x148] sm:$0xff] }
 0x12e   :  { %1189 = vmatpush.msra.mxu1 %v673_v31  ;;  %1219 = vmatpush.msrb.mxu2 %v520_v32  ;;  %v347_v50 = vadd.f32 %v2264_v40, %v346_v43  ;;  %v654_v30 = vld [vmem:[#allocation9 + $0x688] sm:$0xff]  ;;  %v479_v32 = vld [vmem:[#allocation9 + $0x110] sm:$0xff]  ;;  %v745_v40 = vld [vmem:[#allocation9 + $0x960] sm:$0xff] }
 0x12f   :  { %1239 = vmatpush.msrb.mxu3 %v632_v33  ;;  %1262 = vmatpush.msrb.mxu0 %v723_v34  ;;  %v766_v31 = vld [vmem:[#allocation9 + $0xa08] sm:$0xff]  ;;  %v647_v33 = vld [vmem:[#allocation9 + $0x650] sm:$0xff] }
 0x130   :  { %1190 = vmatmul.f32.vlgmr.msra.gmra.mxu1 %v2781_v17  ;;  %1220 = vmatpush.msrb.mxu2 %v513_v35  ;;  %v759_v34 = vld [vmem:[#allocation9 + $0x9d0] sm:$0xff]  ;;  %v472_v35 = vld [vmem:[#allocation9 + $0xd8] sm:$0xff] }
 0x131   :  { %1288 = vmatpush.msrb.mxu1 %v793_v36  ;;  %1240 = vmatpush.msrb.mxu3 %v625_v37  ;;  %v640_v36 = vld [vmem:[#allocation9 + $0x618] sm:$0xff]  ;;  %v451_v43 = vld [vmem:[#allocation9 + $0x30] sm:$0xff] }
 0x132   :  { %1263 = vmatpush.msrb.mxu0 %v716_v38  ;;  %1221 = vmatpush.msrb.mxu2 %v506_v39  ;;  %v752_v37 = vld [vmem:[#allocation9 + $0x998] sm:$0xff]  ;;  %v465_v38 = vld [vmem:[#allocation9 + $0xa0] sm:$0xff] }
 0x133   :  { %1289 = vmatpush.msrb.mxu1 %v786_v41  ;;  %1241 = vmatpush.msrb.mxu3 %v618_v42  ;;  %v633_v39 = vld [vmem:[#allocation9 + $0x5e0] sm:$0xff]  ;;  %v626_v41 = vld [vmem:[#allocation9 + $0x5a8] sm:$0xff] }
 0x134   :  { %1264 = vmatpush.msrb.mxu0 %v709_v44  ;;  %1222 = vmatpush.msrb.mxu2 %v499_v46  ;;  %v738_v42 = vld [vmem:[#allocation9 + $0x928] sm:$0xff]  ;;  %v619_v44 = vld [vmem:[#allocation9 + $0x570] sm:$0xff]  ;;  %v612_v46 = vld [vmem:[#allocation9 + $0x538] sm:$0xff] }
 0x135   :  { %1294 = vmatpush.msra.mxu1 %v556_v45  ;;  %1242 = vmatpush.msrb.mxu3 %v611_v47  ;;  %v731_v45 = vld [vmem:[#allocation9 + $0x8f0] sm:$0xff]  ;;  %v724_v47 = vld [vmem:[#allocation9 + $0x8b8] sm:$0xff] }
 0x136   :  { %1265 = vmatpush.msrb.mxu0 %v702_v48  ;;  %v366_v56 = vpop.f32.mrf.mxu1  ;;  %1223 = vmatpush.msrb.mxu2 %v492_v51  ;;  %v605_v48 = vld [vmem:[#allocation9 + $0x500] sm:$0xff]  ;;  %v710_v51 = vld [vmem:[#allocation9 + $0x848] sm:$0xff] }
 0x137   :  { %1295 = vmatpush.msra.mxu1 %v549_v49  ;;  %1243 = vmatpush.msrb.mxu3 %v604_v52  ;;  %v367_v60 = vadd.f32 %v366_v56, %v347_v50  ;;  %v717_v49 = vld [vmem:[#allocation9 + $0x880] sm:$0xff]  ;;  %v598_v50 = vld [vmem:[#allocation9 + $0x4c8] sm:$0xff]  ;;  %v591_v52 = vld [vmem:[#allocation9 + $0x490] sm:$0xff] }
 0x138   :  { %1266 = vmatpush.msrb.mxu0 %v695_v53  ;;  %2196 = vmatmul.msk.f32.vlgmr.msrb.gmra.mxu1 %vm325_vm1, %v2783_v20  ;;  %v703_v53 = vld [vmem:[#allocation9 + $0x810] sm:$0xff]  ;;  %v689_v56 = vld [vmem:[#allocation9 + $0x7a0] sm:$0xff] }
 0x139   :  { %1296 = vmatpush.msra.mxu1 %v542_v54  ;;  %1224 = vmatpush.msrb.mxu2 %v485_v55  ;;  %v584_v54 = vld [vmem:[#allocation9 + $0x458] sm:$0xff] }
 0x13a   :  { %1244 = vmatpush.msrb.mxu3 %v597_v57  ;;  %1267 = vmatpush.msrb.mxu0 %v688_v58  ;;  %v386_v3 = vpop.f32.mrf.mxu2  ;;  %v406_v8 = vpop.f32.mrf.mxu3  ;;  %v696_v55 = vld [vmem:[#allocation9 + $0x7d8] sm:$0xff]  ;;  %v570_v57 = vld [vmem:[#allocation9 + $0x3e8] sm:$0xff] }
 0x13b   :  { %1297 = vmatpush.msra.mxu1 %v535_v61  ;;  %1225 = vmatpush.msrb.mxu2 %v478_v62  ;;  %v387_v6 = vadd.f32 %v386_v3, %v367_v60  ;;  %v682_v58 = vld [vmem:[#allocation9 + $0x768] sm:$0xff]  ;;  %v563_v60 = vld [vmem:[#allocation9 + $0x3b0] sm:$0xff] }
 0x13c   :  { %1245 = vmatpush.msrb.mxu3 %v590_v63  ;;  %1268 = vmatpush.msrb.mxu0 %v681_v0  ;;  %v675_v61 = vld [vmem:[#allocation9 + $0x730] sm:$0xff] }
 0x13d   :  { %1298 = vmatpush.msra.mxu1 %v528_v1  ;;  %1226 = vmatpush.msrb.mxu2 %v471_v2  ;;  %v2816_v11 = vadd.f32 %v406_v8, %v387_v6 }
 0x13e   :  { %1246 = vmatpush.msrb.mxu3 %v583_v4  ;;  %1269 = vmatpush.msrb.mxu0 %v674_v5 }
 0x13f   :  { %1299 = vmatpush.msra.mxu1 %v521_v7  ;;  %1270 = vmatmul.f32.vlgmr.msrb.gmra.mxu0 %v2781_v17  ;;  %2169 = vst.msk [vmem:[%s3237_s12] sm:$0xff] %vm2168_vm3, %v2816_v11 }
 0x140   :  { %1227 = vmatpush.msrb.mxu2 %v464_v9  ;;  %1247 = vmatpush.msrb.mxu3 %v576_v10 }
 0x141   :  { %1300 = vmatpush.msra.mxu1 %v514_v12  ;;  %1368 = vmatpush.msra.mxu0 %v794_v13 }
 0x142   :  { %1228 = vmatpush.msrb.mxu2 %v457_v14  ;;  %1248 = vmatpush.msrb.mxu3 %v569_v15  ;;  %v871_v63 = vpop.f32.mrf.mxu1  ;;  %v831_v0 = vpop.f32.mrf.mxu3 }
 0x143   :  { %1301 = vmatpush.msra.mxu1 %v507_v16  ;;  %1369 = vmatpush.msra.mxu0 %v787_v18 }
 0x144   :  { %1229 = vmatpush.msrb.mxu2 %v450_v19  ;;  %1249 = vmatpush.msrb.mxu3 %v562_v22 }
 0x145   :  { %1302 = vmatpush.msra.mxu1 %v500_v23  ;;  %1230 = vmatmul.f32.vlgmr.msrb.gmra.mxu2 %v2778_v59  ;;  %v851_v1 = vpop.f32.mrf.mxu0 }
 0x146   :  { %1250 = vmatmul.f32.vlgmr.msrb.gmra.mxu3 %v2785_v21  ;;  %1314 = vmatpush.msra.mxu2 %v668_v24 }
 0x147   :  { %1334 = vmatpush.msra.mxu3 %v780_v25  ;;  %1303 = vmatpush.msra.mxu1 %v493_v26 }
 0x148   :  { %1315 = vmatpush.msra.mxu2 %v661_v27  ;;  %2197 = vmatmul.msk.f32.vlgmr.msra.gmra.mxu0 %vm325_vm1, %v2783_v20  ;;  %v458_v20 = vld [vmem:[#allocation9 + $0x68] sm:$0xff] }
 0x149   :  { %1335 = vmatpush.msra.mxu3 %v773_v28  ;;  %1304 = vmatpush.msra.mxu1 %v486_v29 }
 0x14a   :  { %1316 = vmatpush.msra.mxu2 %v654_v30 }
 0x14b   :  { %1336 = vmatpush.msra.mxu3 %v766_v31  ;;  %1305 = vmatpush.msra.mxu1 %v479_v32  ;;  %v2830_v62 = vpop.f32.mrf.mxu2 }
 0x14c   :  { %1317 = vmatpush.msra.mxu2 %v647_v33 }
 0x14d   :  { %1337 = vmatpush.msra.mxu3 %v759_v34  ;;  %1306 = vmatpush.msra.mxu1 %v472_v35  ;;  %v971_v3 = vpop.f32.mrf.mxu1 }
 0x14e   :  { %1318 = vmatpush.msra.mxu2 %v640_v36 }
 0x14f   :  { %1338 = vmatpush.msra.mxu3 %v752_v37  ;;  %1307 = vmatpush.msra.mxu1 %v465_v38 }
 0x150   :  { %1319 = vmatpush.msra.mxu2 %v633_v39  ;;  %v951_v6 = vpop.f32.mrf.mxu0 }
 0x151   :  { %1339 = vmatpush.msra.mxu3 %v745_v40  ;;  %1308 = vmatpush.msra.mxu1 %v458_v20 }
 0x152   :  { %1320 = vmatpush.msra.mxu2 %v626_v41 }
 0x153   :  { %1340 = vmatpush.msra.mxu3 %v738_v42  ;;  %1309 = vmatpush.msra.mxu1 %v451_v43 }
 0x154   :  { %1310 = vmatmul.f32.vlgmr.msra.gmra.mxu1 %v2778_v59  ;;  %1321 = vmatpush.msra.mxu2 %v619_v44  ;;  %v577_v59 = vld [vmem:[#allocation9 + $0x420] sm:$0xff] }
 0x155   :  { %1341 = vmatpush.msra.mxu3 %v731_v45 }
 0x156   :  { %1322 = vmatpush.msra.mxu2 %v612_v46 }
 0x157   :  { %1342 = vmatpush.msra.mxu3 %v724_v47 }
 0x158   :  { %1323 = vmatpush.msra.mxu2 %v605_v48 }
 0x159   :  { %1343 = vmatpush.msra.mxu3 %v717_v49 }
 0x15a   :  { %1324 = vmatpush.msra.mxu2 %v598_v50 }
 0x15b   :  { %1344 = vmatpush.msra.mxu3 %v710_v51  ;;  %v1051_v10 = vpop.f32.mrf.mxu0 }
 0x15c   :  { %1325 = vmatpush.msra.mxu2 %v591_v52 }
 0x15d   :  { %1345 = vmatpush.msra.mxu3 %v703_v53  ;;  %v911_v2 = vpop.f32.mrf.mxu2 }
 0x15e   :  { %1326 = vmatpush.msra.mxu2 %v584_v54 }
 0x15f   :  { %1346 = vmatpush.msra.mxu3 %v696_v55 }
 0x160   :  { %1327 = vmatpush.msra.mxu2 %v577_v59  ;;  %v931_v4 = vpop.f32.mrf.mxu3 }
 0x161   :  { %1347 = vmatpush.msra.mxu3 %v689_v56 }
 0x162   :  { %1328 = vmatpush.msra.mxu2 %v570_v57 }
 0x163   :  { %1348 = vmatpush.msra.mxu3 %v682_v58 }
 0x164   :  { %1329 = vmatpush.msra.mxu2 %v563_v60 }
 0x165   :  { %1349 = vmatpush.msra.mxu3 %v675_v61  ;;  %1330 = vmatmul.f32.vlgmr.msra.gmra.mxu2 %v2785_v21 }
 0x166   :  { %1350 = vmatmul.f32.vlgmr.msra.gmra.mxu3 %v2781_v17  ;;  %v795_v17 = vld [vmem:[#allocation11] sm:$0x7f] }
 0x167   :  { %v991_v7 = vpop.f32.mrf.mxu1  ;;  %v798_v18 = vperm.slane %v795_v17, 1  ;;  %v802_v19 = vperm.slane %v795_v17, 5  ;;  %v799_v23 = vperm.slane %v795_v17, 2  ;;  %v800_v24 = vperm.slane %v795_v17, 3 }
 0x168   :  { %v801_v26 = vperm.slane %v795_v17, 4  ;;  %v797_v30 = vperm.slane %v795_v17, 0  ;;  %v803_v42 = vperm.slane %v795_v17, 6 }
 0x169   :  { %v912_v27 = vadd.f32 %v911_v2, %v798_v18  ;;  %v992_v31 = vadd.f32 %v991_v7, %v799_v23 }
 0x16a   :  { %v832_v39 = vadd.f32 %v831_v0, %v797_v30 }
 0x16b   :  { %v932_v35 = vadd.f32 %v931_v4, %v912_v27 }
 0x16c   :  { %v852_v47 = vadd.f32 %v851_v1, %v832_v39 }
 0x16d   :  { %v952_v43 = vadd.f32 %v951_v6, %v932_v35 }
 0x16e   :  { %v872_v55 = vadd.f32 %v871_v63, %v852_v47 }
 0x16f   :  { %v972_v51 = vadd.f32 %v971_v3, %v952_v43 }
 0x170   :  { %v892_v1 = vadd.f32 %v2830_v62, %v872_v55 }
 0x171   :  { %v1381_v61 = vrot.slane %v972_v51, 7 }
 0x176   :  { %v1071_v21 = vpop.f32.mrf.mxu0 }
 0x177   :  { %v1072_v32 = vadd.f32 %v1071_v21, %v800_v24 }
 0x180   :  { %v1011_v5 = vpop.f32.mrf.mxu2  ;;  %v1031_v8 = vpop.f32.mrf.mxu3 }
 0x181   :  { %v1012_v36 = vadd.f32 %v1011_v5, %v992_v31  ;;  %v1400_v5 = vlaneseq }
 0x183   :  { %v1032_v44 = vadd.f32 %v1031_v8, %v1012_v36  ;;  %v1388_v8 = vsel %vm1387_vm5, %v892_v1, %v1381_v61  ;;  %vm1402_vm10 = vcmp.lt.s32.totalorder %v1400_v5, 880 }
 0x185   :  { %v1052_v52 = vadd.f32 %v1051_v10, %v1032_v44 }
 0x187   :  { %v1382_v0 = vrot.slane %v1052_v52, 6 }
 0x18a   :  { %v1091_v12 = vpop.f32.mrf.mxu1  ;;  %v1131_v13 = vpop.f32.mrf.mxu3 }
 0x18b   :  { %v1092_v37 = vadd.f32 %v1091_v12, %v1072_v32 }
 0x199   :  { %v1171_v25 = vpop.f32.mrf.mxu0 }
 0x1a2   :  { %v1111_v9 = vpop.f32.mrf.mxu2 }
 0x1a3   :  { %v1112_v40 = vadd.f32 %v1111_v9, %v1092_v37  ;;  %v1728_v37 = vmul.f32 0.5, %v2816_v11 }
 0x1a5   :  { %v1132_v48 = vadd.f32 %v1131_v13, %v1112_v40 }
 0x1a6   :  { %v1151_v16 = vpop.f32.mrf.mxu3 }
 0x1a7   :  { %v1152_v33 = vadd.f32 %v1151_v16, %v801_v26  ;;  %v1383_v56 = vrot.slane %v1132_v48, 5 }
 0x1a9   :  { %v1172_v20 = vadd.f32 %v1171_v25, %v1152_v33  ;;  %v1390_v6 = vsel %vm1389_vm4, %v1382_v0, %v1383_v56 }
 0x1aa   :  { %v1392_v10 = vsel %vm1391_vm7, %v1388_v8, %v1390_v6 }
 0x1ac   :  { %v1211_v14 = vpop.f32.mrf.mxu2 }
 0x1ad   :  { %v1191_v15 = vpop.f32.mrf.mxu1 }
 0x1ae   :  { %v1192_v49 = vadd.f32 %v1191_v15, %v1172_v20 }
 0x1b0   :  { %v1212_v57 = vadd.f32 %v1211_v14, %v1192_v49 }
 0x1b2   :  { %v1384_v7 = vrot.slane %v1212_v57, 4 }
 0x1b5   :  { %v1291_v28 = vpop.f32.mrf.mxu1 }
 0x1bc   :  { %v1271_v41 = vpop.f32.mrf.mxu0 }
 0x1c5   :  { %v1371_v2 = vpop.f32.mrf.mxu0 }
 0x1c8   :  { %v1231_v22 = vpop.f32.mrf.mxu2 }
 0x1c9   :  { %v1232_v29 = vadd.f32 %v1231_v22, %v802_v19  ;;  %v1251_v34 = vpop.f32.mrf.mxu3 }
 0x1cb   :  { %v1252_v38 = vadd.f32 %v1251_v34, %v1232_v29 }
 0x1cd   :  { %v1272_v45 = vadd.f32 %v1271_v41, %v1252_v38  ;;  %v1729_v38 = vmul.f32 1.442695, %v1728_v37 }
 0x1cf   :  { %v1292_v53 = vadd.f32 %v1291_v28, %v1272_v45  ;;  %2309 = vpow2.f32 %v1729_v38 }
 0x1d1   :  { %v1311_v46 = vpop.f32.mrf.mxu1  ;;  %v1385_v4 = vrot.slane %v1292_v53, 3 }
 0x1d2   :  { %v1312_v50 = vadd.f32 %v1311_v46, %v803_v42 }
 0x1d3   :  { %v1394_v9 = vsel %vm1393_vm6, %v1384_v7, %v1385_v4 }
 0x1d5   :  { %v2310_v43 = vpop.eup %2309 }
 0x1e8   :  { %v1331_v54 = vpop.f32.mrf.mxu2 }
 0x1e9   :  { %v1332_v59 = vadd.f32 %v1331_v54, %v1312_v50  ;;  %v1351_v58 = vpop.f32.mrf.mxu3 }
 0x1eb   :  { %v1352_v60 = vadd.f32 %v1351_v58, %v1332_v59 }
 0x1ed   :  { %v1372_v3 = vadd.f32 %v1371_v2, %v1352_v60 }
 0x1ef   :  { %v1386_v63 = vrot.slane %v1372_v3, 2 }
 0x1f1   :  { %v1396_v12 = vsel %vm1395_vm8, %v1394_v9, %v1386_v63 }
 0x1f2   :  { %v1398_v13 = vsel %vm1397_vm9, %v1392_v10, %v1396_v12 }
 0x1f3   :  { %1404 = vst.msk [vmem:[#allocation2] sm:$0x7f] %vm1402_vm10, %v1398_v13  ;;  %vm1598_vm10 = vcmask 97280  }
 0x1fa   :  { %v2265_v14 = vld [vmem:[#allocation2 + $0x3] ss:$0 sm:$0xff]  ;;  %v2266_v15 = vld [vmem:[#allocation2 + $0x2] ss:$0 sm:$0xff]  ;;  %v2269_v24 = vld [vmem:[#allocation2 + $0x1] ss:$0 sm:$0xff] }
 0x1fb   :  { %v1543_v62 = vld [vmem:[#allocation2 + $0x2] sm:$0x3]  ;;  %1558 = vrot.lane.b32.xlu1 %v2265_v14, %s2503_s27  ;;  %1532 = vrot.lane.b32.xlu2 %v2266_v15, %s2505_s28  ;;  %v2270_v25 = vld [vmem:[#allocation2 + $0x1] ss:$0 sm:$0xff]  ;;  %v1405_v28 = vld [vmem:[#allocation2] sm:$0x1] }
 0x1fc   :  { %v1545_v21 = vperm.slane %v1543_v62, 0  ;;  %v2268_v17 = vld [vmem:[#allocation2 + $0x2] ss:$0 sm:$0xff]  ;;  %v1546_v16 = vperm.slane %v1543_v62, 1  ;;  %v2271_v26 = vld [vmem:[#allocation2 + $0x1] ss:$0 sm:$0xff] }
 0x1fd   :  { %v2267_v18 = vld [vmem:[#allocation2 + $0x2] ss:$0 sm:$0xff]  ;;  %v2272_v27 = vld [vmem:[#allocation2 + $0x1] ss:$0 sm:$0xff]  ;;  %v1644_v29 = vld [vmem:[#allocation2 + $0x5] sm:$0x1] }
 0x1fe   :  { %1547 = vrot.lane.b32.xlu0 %v1545_v21, %s2504_s9  ;;  %v1490_v19 = vld [vmem:[#allocation2 + $0x1] sm:$0x3]  ;;  %1407 = vst.msk [vmem:[#allocation3] sm:$0x1] %vm1406_vm11, %v1405_v28  ;;  %v2276_v36 = vld [vmem:[#allocation2] ss:$0 sm:$0xff] }
 0x1ff   :  { %v1493_v22 = vperm.slane %v1490_v19, 1  ;;  %v1492_v23 = vperm.slane %v1490_v19, 0  ;;  %1645 = vst.msk [vmem:[#allocation3 + $0x22] sm:$0x1] %vm1406_vm11, %v1644_v29  ;;  %v2273_v30 = vld [vmem:[#allocation2 + $0x2] ss:$0 sm:$0xff] }
 0x200   :  { %v2274_v31 = vld [vmem:[#allocation2 + $0x2] ss:$0 sm:$0xff]  ;;  %v1443_v33 = vld [vmem:[#allocation2] sm:$0x3]  ;;  %v1681_v44 = vld [vmem:[#allocation2 + $0x5] sm:$0x3] }
 0x201   :  { %v2275_v32 = vld [vmem:[#allocation2 + $0x2] ss:$0 sm:$0xff]  ;;  %v1446_v34 = vperm.slane %v1443_v33, 1  ;;  %v1445_v35 = vperm.slane %v1443_v33, 0  ;;  %v2277_v39 = vld [vmem:[#allocation2] ss:$0 sm:$0xff] }
 0x202   :  { %v2278_v40 = vld [vmem:[#allocation2] ss:$0 sm:$0xff]  ;;  %v2280_v41 = vld [vmem:[#allocation2 + $0x1] ss:$0 sm:$0xff]  ;;  %v1683_v45 = vperm.slane %v1681_v44, 0  ;;  %v1684_v47 = vperm.slane %v1681_v44, 1 }
 0x203   :  { %1525 = vrot.lane.b32.xlu1 %v2268_v17, %s2506_s29  ;;  %1539 = vrot.lane.b32.xlu2 %v2267_v18, %s2507_s13  ;;  %v2279_v20 = vld [vmem:[#allocation2] ss:$0 sm:$0xff]  ;;  %v2282_v46 = vld [vmem:[#allocation2 + $0x3] ss:$0 sm:$0xff]  ;;  %v2283_v48 = vld [vmem:[#allocation2 + $0x6] ss:$0 sm:$0xff] }
 0x204   :  { %v2281_v42 = vld [vmem:[#allocation2] ss:$0 sm:$0xff]  ;;  %v2284_v49 = vld [vmem:[#allocation2 + $0x6] ss:$0 sm:$0xff]  ;;  %v2286_v51 = vld [vmem:[#allocation2 + $0x4] ss:$0 sm:$0xff] }
 0x205   :  { %v2285_v50 = vld [vmem:[#allocation2 + $0x6] ss:$0 sm:$0xff]  ;;  %v2288_v53 = vld [vmem:[#allocation2 + $0x4] ss:$0 sm:$0xff]  ;;  %v2289_v54 = vld [vmem:[#allocation2 + $0x5] ss:$0 sm:$0xff] }
 0x206   :  { %1549 = vrot.lane.b32.xlu0 %v1546_v16, %s2504_s9  ;;  %v2287_v52 = vld [vmem:[#allocation2 + $0x6] ss:$0 sm:$0xff]  ;;  %v2290_v55 = vld [vmem:[#allocation2 + $0x5] ss:$0 sm:$0xff]  ;;  %v1590_v57 = vld [vmem:[#allocation2 + $0x3] sm:$0x3] }
 0x207   :  { %v2291_v59 = vld [vmem:[#allocation2 + $0x5] ss:$0 sm:$0xff]  ;;  %v1592_v61 = vperm.slane %v1590_v57, 0  ;;  %v2294_v2 = vld [vmem:[#allocation2 + $0x3] ss:$0 sm:$0xff]  ;;  %v1593_v4 = vperm.slane %v1590_v57, 1 }
 0x208   :  { %v2292_v58 = vld [vmem:[#allocation2 + $0x5] ss:$0 sm:$0xff]  ;;  %v2295_v1 = vld [vmem:[#allocation2 + $0x3] ss:$0 sm:$0xff]  ;;  %v2296_v6 = vld [vmem:[#allocation2 + $0x4] ss:$0 sm:$0xff] }
 0x209   :  { %v2293_v60 = vld [vmem:[#allocation2 + $0x5] ss:$0 sm:$0xff]  ;;  %v2297_v7 = vld [vmem:[#allocation2 + $0x3] ss:$0 sm:$0xff]  ;;  %v2298_v63 = vld [vmem:[#allocation2 + $0x4] ss:$0 sm:$0xff] }
 0x20a   :  { %s2529_s27 = smov 100   ;;  %v2299_v12 = vld [vmem:[#allocation2 + $0x4] ss:$0 sm:$0xff]  ;;  %v2301_v14 = vld [vmem:[#allocation2 + $0x6] ss:$0 sm:$0xff]  ;;  %s2530_s9 = smov 60  }
 0x20b   :  { %1496 = vrot.lane.b32.xlu1 %v1493_v22, %s2508_s14  ;;  %1465 = vrot.lane.b32.xlu2 %v2269_v24, %s2509_s0  ;;  %v2300_v13 = vld [vmem:[#allocation2 + $0x4] ss:$0 sm:$0xff]  ;;  %s2531_s28 = smov 80   ;;  %v2869_v21 = vshrl.u32 %v1400_v5, 7  ;;  %v2875_v18 = vand.u32 127, %v1400_v5 }
 0x20d   :  { %v2878_v19 = vadd.s32 16, %v2869_v21  ;;  %vm1755_vm6 = vcmp.gt.s32.totalorder %v2869_v21, %v2875_v18  ;;  %vm1764_vm7 = vcmp.ge.s32.totalorder %v2875_v18, %v2869_v21  ;;  %vm1752_vm8 = vcmp.eq.s32.totalorder %v2869_v21, %v2875_v18 }
 0x20e   :  { %1494 = vrot.lane.b32.xlu0 %v1492_v23, %s2508_s14 }
 0x20f   :  { %vm1757_vm13 = vcmp.gt.s32.totalorder %v2878_v19, %v2875_v18  ;;  %vm1766_vm14 = vcmp.ge.s32.totalorder %v2875_v18, %v2878_v19  ;;  %vm1754_vm15 = vcmp.eq.s32.totalorder %v2878_v19, %v2875_v18 }
 0x213   :  { %1479 = vrot.lane.b32.xlu1 %v2270_v25, %s2496_s16  ;;  %1486 = vrot.lane.b32.xlu2 %v2272_v27, %s2511_s2 }
 0x216   :  { %1472 = vrot.lane.b32.xlu0 %v2271_v26, %s2510_s15 }
 0x21b   :  { %1511 = vrot.lane.b32.xlu1 %v2273_v30, %s2512_s17  ;;  %1518 = vrot.lane.b32.xlu2 %v2275_v32, %s2514_s3 }
 0x21e   :  { %1504 = vrot.lane.b32.xlu0 %v2274_v31, %s2513_s18 }
 0x223   :  { %1449 = vrot.lane.b32.xlu1 %v1446_v34, %s2515_s19  ;;  %1411 = vrot.lane.b32.xlu2 %v2276_v36, %s2516_s7  ;;  %v2906_v36 = vadd.s32 8, %v2869_v21 }
 0x225   :  { %vm1756_vm3 = vcmp.gt.s32.totalorder %v2906_v36, %v2875_v18  ;;  %vm1765_vm4 = vcmp.ge.s32.totalorder %v2875_v18, %v2906_v36  ;;  %vm1753_vm5 = vcmp.eq.s32.totalorder %v2906_v36, %v2875_v18 }
 0x226   :  { %1447 = vrot.lane.b32.xlu0 %v1445_v35, %s2515_s19 }
 0x22b   :  { %1425 = vrot.lane.b32.xlu1 %v2277_v39, %s2517_s11  ;;  %1432 = vrot.lane.b32.xlu2 %v2279_v20, %s2519_s6 }
 0x22e   :  { %1418 = vrot.lane.b32.xlu0 %v2278_v40, %s2518_s20 }
 0x233   :  { %1458 = vrot.lane.b32.xlu1 %v2280_v41, %s2520_s21  ;;  %1732 = vrot.lane.b32.xlu2 %v2310_v43, %s2516_s7 }
 0x236   :  { %1439 = vrot.lane.b32.xlu0 %v2281_v42, %s2521_s22 }
 0x23b   :  { %1685 = vrot.lane.b32.xlu1 %v1683_v45, %s2515_s19  ;;  %1687 = vrot.lane.b32.xlu2 %v1684_v47, %s2515_s19 }
 0x23e   :  { %1565 = vrot.lane.b32.xlu0 %v2282_v46, %s2522_s23 }
 0x243   :  { %1695 = vrot.lane.b32.xlu1 %v2283_v48, %s2520_s21  ;;  %1702 = vrot.lane.b32.xlu2 %v2285_v50, %s2509_s0 }
 0x246   :  { %1716 = vrot.lane.b32.xlu0 %v2284_v49, %s2496_s16  ;;  %s2525_s16 = smov 12   ;;  %v1727_v49 = vld [vmem:[%s3226_s1] sm:$0xff] }
 0x24b   :  { %1633 = vrot.lane.b32.xlu1 %v2286_v51, %s2523_s24  ;;  %1640 = vrot.lane.b32.xlu2 %v2288_v53, %s2524_s4 }
 0x24e   :  { %1709 = vrot.lane.b32.xlu0 %v2287_v52, %s2510_s15 }
 0x253   :  { %1656 = vrot.lane.b32.xlu1 %v2289_v54, %s2518_s20  ;;  %1663 = vrot.lane.b32.xlu2 %v2291_v59, %s2517_s11 }
 0x255   :  { %v1533_v56 = vpop.permute.xlu2 %1532 }
 0x256   :  { %1649 = vrot.lane.b32.xlu0 %v2290_v55, %s2516_s7  ;;  %1535 = vst.msk [vmem:[#allocation3 + $0x11] sm:$0x1] %vm1406_vm11, %v1533_v56 }
 0x25b   :  { %1677 = vrot.lane.b32.xlu1 %v2292_v58, %s2521_s22  ;;  %1594 = vrot.lane.b32.xlu2 %v1592_v61, %s2525_s16 }
 0x25d   :  { %v1540_v0 = vpop.permute.xlu2 %1539 }
 0x25e   :  { %1670 = vrot.lane.b32.xlu0 %v2293_v60, %s2519_s6  ;;  %1542 = vst.msk [vmem:[#allocation3 + $0x12] sm:$0x1] %vm1406_vm11, %v1540_v0 }
 0x263   :  { %1572 = vrot.lane.b32.xlu1 %v2294_v2, %s2526_s25  ;;  %1579 = vrot.lane.b32.xlu2 %v2295_v1, %s2527_s5 }
 0x265   :  { %v1466_v3 = vpop.permute.xlu2 %1465 }
 0x266   :  { %1596 = vrot.lane.b32.xlu0 %v1593_v4, %s2525_s16  ;;  %1468 = vst.msk [vmem:[#allocation3 + $0x8] sm:$0x1] %vm1406_vm11, %v1466_v3 }
 0x26b   :  { %1605 = vrot.lane.b32.xlu1 %v2296_v6, %s2528_s26  ;;  %1612 = vrot.lane.b32.xlu2 %v2298_v63, %s2529_s27 }
 0x26d   :  { %v1559_v8 = vpop.permute.xlu1 %1558  ;;  %v1487_v10 = vpop.permute.xlu2 %1486 }
 0x26e   :  { %1586 = vrot.lane.b32.xlu0 %v2297_v7, %s2493_s30  ;;  %1561 = vst.msk [vmem:[#allocation3 + $0x14] sm:$0x1] %vm1406_vm11, %v1559_v8 }
 0x26f   :  { %1489 = vst.msk [vmem:[#allocation3 + $0xb] sm:$0x1] %vm1406_vm11, %v1487_v10 }
 0x270   :  { %v1548_v9 = vpop.permute.xlu0 %1547 }
 0x273   :  { %1626 = vrot.lane.b32.xlu1 %v2299_v12, %s2530_s9  ;;  %1723 = vrot.lane.b32.xlu2 %v2301_v14, %s2511_s2 }
 0x275   :  { %v1526_v62 = vpop.permute.xlu1 %1525  ;;  %v1519_v17 = vpop.permute.xlu2 %1518  ;;  %v2302_v26 = vld [vmem:[#allocation3 + $0x14] ss:$0 sm:$0xff] }
 0x276   :  { %1619 = vrot.lane.b32.xlu0 %v2300_v13, %s2531_s28  ;;  %1528 = vst.msk [vmem:[#allocation3 + $0x10] sm:$0x1] %vm1406_vm11, %v1526_v62 }
 0x277   :  { %1521 = vst.msk [vmem:[#allocation3 + $0xf] sm:$0x1] %vm1406_vm11, %v1519_v17 }
 0x278   :  { %v1550_v15 = vpop.permute.xlu0 %1549 }
 0x279   :  { %v1552_v16 = vsel %vm1551_vm12, %v1548_v9, %v1550_v15  ;;  %vm2176_vm12 = vcmask 1048384  }
 0x27a   :  { %1554 = vst.msk [vmem:[#allocation3 + $0x13] sm:$0x1] %vm1406_vm11, %v1552_v16 }
 0x27d   :  { %v1497_v22 = vpop.permute.xlu1 %1496  ;;  %v1412_v24 = vpop.permute.xlu2 %1411 }
 0x27e   :  { %1414 = vst.msk [vmem:[#allocation3 + $0x1] sm:$0x1] %vm1406_vm11, %v1412_v24 }
 0x280   :  { %v1495_v23 = vpop.permute.xlu0 %1494 }
 0x281   :  { %v1498_v25 = vsel %vm325_vm1, %v1495_v23, %v1497_v22  ;;  %v1748_v5 = vld [vmem:[#allocation3 + $0x10] sm:$0xf] }
 0x282   :  { %1500 = vst.msk [vmem:[#allocation3 + $0xc] sm:$0x1] %vm1406_vm11, %v1498_v25  ;;  %v1760_v27 = vsel %vm1757_vm13, %v1748_v5, 0.0  ;;  %v1769_v28 = vsel %vm1766_vm14, %v1748_v5, 0.0 }
 0x283   :  { %2203 = vmatpush.msk.msrb.mxu1 %vm1397_vm9, %v1769_v28  ;;  %v1763_v29 = vsel %vm1754_vm15, %v2302_v26, %v1760_v27 }
 0x284   :  { %2199 = vmatpush.xpose.msk.msrb.mxu3 %vm1771_vm0, %v1763_v29 }
 0x285   :  { %v1480_v30 = vpop.permute.xlu1 %1479  ;;  %v1433_v32 = vpop.permute.xlu2 %1432 }
 0x286   :  { %1482 = vst.msk [vmem:[#allocation3 + $0xa] sm:$0x1] %vm1406_vm11, %v1480_v30 }
 0x287   :  { %1435 = vst.msk [vmem:[#allocation3 + $0x4] sm:$0x1] %vm1406_vm11, %v1433_v32 }
 0x288   :  { %v1473_v31 = vpop.permute.xlu0 %1472 }
 0x289   :  { %1475 = vst.msk [vmem:[#allocation3 + $0x9] sm:$0x1] %vm1406_vm11, %v1473_v31 }
 0x28d   :  { %v1512_v33 = vpop.permute.xlu1 %1511  ;;  %v1733_v35 = vpop.permute.xlu2 %1732 }
 0x28e   :  { %1514 = vst.msk [vmem:[#allocation3 + $0xe] sm:$0x1] %vm1406_vm11, %v1512_v33  ;;  %v1735_v51 = vmul.f32 %v1733_v35, %v1727_v49  ;;  %v1910_v49 = vld [vmem:[%s3233_s8] sm:$0xff] }
 0x290   :  { %v1505_v34 = vpop.permute.xlu0 %1504  ;;  %v2956_v57 = vadd.f32 %v1735_v51, %v2816_v11  ;;  %v1913_v51 = vld [vmem:[%s3233_s8 + $0x18] sm:$0xff] }
 0x291   :  { %1507 = vst.msk [vmem:[#allocation3 + $0xd] sm:$0x1] %vm1406_vm11, %v1505_v34  ;;  %v2532_v34 = vmov 0.0  }
 0x295   :  { %v1450_v37 = vpop.permute.xlu1 %1449  ;;  %v1688_v39 = vpop.permute.xlu2 %1687 }
 0x298   :  { %v1448_v38 = vpop.permute.xlu0 %1447  ;;  %v1747_v40 = vld [vmem:[#allocation3 + $0x8] sm:$0xff] }
 0x299   :  { %v1452_v20 = vsel %vm1451_vm2, %v1448_v38, %v1450_v37  ;;  %v1759_v41 = vsel %vm1756_vm3, %v1747_v40, 0.0  ;;  %2204 = vmatpush.msk.msrb.mxu1 %vm1765_vm4, %v1747_v40  ;;  %v1919_v38 = vld [vmem:[%s3233_s8 + $0x48] sm:$0xf] }
 0x29a   :  { %1454 = vst.msk [vmem:[#allocation3 + $0x6] sm:$0x1] %vm1406_vm11, %v1452_v20  ;;  %v1762_v42 = vsel %vm1753_vm5, %v2302_v26, %v1759_v41  ;;  %v1918_v41 = vld [vmem:[%s3233_s8 + $0x40] sm:$0xf] }
 0x29b   :  { %2200 = vmatpush.xpose.msk.msrb.mxu3 %vm1771_vm0, %v1762_v42  ;;  %v1915_v42 = vld [vmem:[%s3233_s8 + $0x28] sm:$0xff] }
 0x29d   :  { %v1426_v43 = vpop.permute.xlu1 %1425  ;;  %v1703_v45 = vpop.permute.xlu2 %1702 }
 0x29e   :  { %1428 = vst.msk [vmem:[#allocation3 + $0x3] sm:$0x1] %vm1406_vm11, %v1426_v43  ;;  %v1920_v43 = vld [vmem:[%s3233_s8 + $0x50] sm:$0xf] }
 0x29f   :  { %1705 = vst.msk [vmem:[#allocation3 + $0x2a] sm:$0x1] %vm1406_vm11, %v1703_v45  ;;  %v1914_v45 = vld [vmem:[%s3233_s8 + $0x20] sm:$0xff]  ;;  %2217 = vmatpush.msk.msrb.mxu0 %vm1397_vm9, %v1920_v43 }
 0x2a0   :  { %v1419_v44 = vpop.permute.xlu0 %1418 }
 0x2a1   :  { %1421 = vst.msk [vmem:[#allocation3 + $0x2] sm:$0x1] %vm1406_vm11, %v1419_v44  ;;  %v1921_v44 = vld [vmem:[%s3233_s8 + $0x58] sm:$0xf] }
 0x2a5   :  { %v1459_v46 = vpop.permute.xlu1 %1458  ;;  %v1641_v48 = vpop.permute.xlu2 %1640 }
 0x2a6   :  { %1461 = vst.msk [vmem:[#allocation3 + $0x7] sm:$0x1] %vm1406_vm11, %v1459_v46  ;;  %v1916_v46 = vld [vmem:[%s3233_s8 + $0x30] sm:$0xff] }
 0x2a7   :  { %1643 = vst.msk [vmem:[#allocation3 + $0x21] sm:$0x1] %vm1406_vm11, %v1641_v48  ;;  %v1911_v48 = vld [vmem:[%s3233_s8 + $0x8] sm:$0xff]  ;;  %2001 = vmatpush.msrb.mxu0 %v1916_v46 }
 0x2a8   :  { %v1440_v47 = vpop.permute.xlu0 %1439 }
 0x2a9   :  { %1442 = vst.msk [vmem:[#allocation3 + $0x5] sm:$0x1] %vm1406_vm11, %v1440_v47  ;;  %v1917_v47 = vld [vmem:[%s3233_s8 + $0x38] sm:$0xff] }
 0x2ad   :  { %v1686_v50 = vpop.permute.xlu1 %1685  ;;  %v1664_v54 = vpop.permute.xlu2 %1663 }
 0x2ae   :  { %v1689_v52 = vsel %vm1451_vm2, %v1686_v50, %v1688_v39  ;;  %1666 = vst.msk [vmem:[#allocation3 + $0x25] sm:$0x1] %vm1406_vm11, %v1664_v54  ;;  %v1912_v50 = vld [vmem:[%s3233_s8 + $0x10] sm:$0xff] }
 0x2af   :  { %1691 = vst.msk [vmem:[#allocation3 + $0x28] sm:$0x1] %vm1406_vm11, %v1689_v52  ;;  %v2046_v52 = vld [vmem:[%s3235_s10 + $0x78] sm:$0xff]  ;;  %2002 = vmatpush.msrb.mxu0 %v1912_v50  ;;  %v2045_v54 = vld [vmem:[%s3235_s10 + $0x70] sm:$0xff] }
 0x2b0   :  { %v1566_v53 = vpop.permute.xlu0 %1565  ;;  %v1746_v55 = vld [vmem:[#allocation3] sm:$0xff] }
 0x2b1   :  { %v1758_v59 = vsel %vm1755_vm6, %v1746_v55, 0.0  ;;  %2205 = vmatpush.msk.msrb.mxu1 %vm1764_vm7, %v1746_v55  ;;  %1568 = vst.msk [vmem:[#allocation3 + $0x15] sm:$0x1] %vm1406_vm11, %v1566_v53  ;;  %v2078_v53 = vld [vmem:[%s3235_s10 + $0x178] sm:$0xff]  ;;  %v2077_v55 = vld [vmem:[%s3235_s10 + $0x170] sm:$0xff] }
 0x2b2   :  { %v1761_v56 = vsel %vm1752_vm8, %v2302_v26, %v1758_v59  ;;  %v2062_v59 = vld [vmem:[%s3235_s10 + $0xf8] sm:$0xff]  ;;  %2128 = vmatpush.msra.mxu0 %v2078_v53 }
 0x2b3   :  { %2201 = vmatpush.xpose.msk.msrb.mxu3 %vm1771_vm0, %v1761_v56  ;;  %2213 = vmatpush.msk.msra.mxu1 %vm1397_vm9, %v1918_v41  ;;  %v2061_v56 = vld [vmem:[%s3235_s10 + $0xf0] sm:$0xff]  ;;  %v2047_v41 = vld [vmem:[%s3235_s10 + $0x80] sm:$0xff] }
 0x2b4   :  { %2129 = vmatpush.msra.mxu0 %v2077_v55 }
 0x2b5   :  { %v1696_v58 = vpop.permute.xlu1 %1695  ;;  %v1595_v61 = vpop.permute.xlu2 %1594  ;;  %1961 = vmatpush.msra.mxu1 %v1914_v45 }
 0x2b6   :  { %2202 = vmatmul.msk.f32.vlgmr.msrb.gmra.mxu3 %vm1771_vm0, %v2956_v57  ;;  %1698 = vst.msk [vmem:[#allocation3 + $0x29] sm:$0x1] %vm1406_vm11, %v1696_v58  ;;  %v2076_v58 = vld [vmem:[%s3235_s10 + $0x168] sm:$0xff] }
 0x2b7   :  { %1962 = vmatpush.msra.mxu1 %v1910_v49  ;;  %2130 = vmatpush.msra.mxu0 %v2076_v58  ;;  %v2306_v58 = vld [vmem:[#allocation14] ss:$0 sm:$0xff] }
 0x2b8   :  { %v1717_v60 = vpop.permute.xlu0 %1716  ;;  %v2304_v30 = vld [vmem:[#allocation3 + $0x15] ss:$0 sm:$0xff] }
 0x2b9   :  { %1719 = vst.msk [vmem:[#allocation3 + $0x2c] sm:$0x1] %vm1406_vm11, %v1717_v60  ;;  %v2060_v60 = vld [vmem:[%s3235_s10 + $0xe8] sm:$0xff] }
 0x2bd   :  { %v1634_v0 = vpop.permute.xlu1 %1633  ;;  %v1580_v4 = vpop.permute.xlu2 %1579 }
 0x2be   :  { %1636 = vst.msk [vmem:[#allocation3 + $0x20] sm:$0x1] %vm1406_vm11, %v1634_v0  ;;  %v2075_v0 = vld [vmem:[%s3235_s10 + $0x160] sm:$0xff] }
 0x2bf   :  { %1582 = vst.msk [vmem:[#allocation3 + $0x19] sm:$0x1] %vm1406_vm11, %v1580_v4  ;;  %v2042_v4 = vld [vmem:[%s3235_s10 + $0x58] sm:$0xff]  ;;  %2131 = vmatpush.msra.mxu0 %v2075_v0 }
 0x2c0   :  { %v1710_v2 = vpop.permute.xlu0 %1709  ;;  %v2303_v7 = vld [vmem:[#allocation3 + $0x2c] ss:$0 sm:$0xff] }
 0x2c1   :  { %1712 = vst.msk [vmem:[#allocation3 + $0x2b] sm:$0x1] %vm1406_vm11, %v1710_v2  ;;  %v2059_v2 = vld [vmem:[%s3235_s10 + $0xe0] sm:$0xff] }
 0x2c5   :  { %v1657_v11 = vpop.permute.xlu1 %1656  ;;  %v1613_v3 = vpop.permute.xlu2 %1612 }
 0x2c6   :  { %1659 = vst.msk [vmem:[#allocation3 + $0x24] sm:$0x1] %vm1406_vm11, %v1657_v11  ;;  %v2074_v11 = vld [vmem:[%s3235_s10 + $0x158] sm:$0xff] }
 0x2c7   :  { %1615 = vst.msk [vmem:[#allocation3 + $0x1d] sm:$0x1] %vm1406_vm11, %v1613_v3  ;;  %v2041_v3 = vld [vmem:[%s3235_s10 + $0x50] sm:$0xff]  ;;  %2132 = vmatpush.msra.mxu0 %v2074_v11 }
 0x2c8   :  { %v1650_v1 = vpop.permute.xlu0 %1649  ;;  %v1835_v6 = vld [vmem:[#allocation3 + $0x28] sm:$0xf] }
 0x2c9   :  { %1652 = vst.msk [vmem:[#allocation3 + $0x23] sm:$0x1] %vm1406_vm11, %v1650_v1  ;;  %v1841_v63 = vsel %vm1757_vm13, %v1835_v6, 0.0  ;;  %v1847_v8 = vsel %vm1766_vm14, %v1835_v6, 0.0  ;;  %v2058_v1 = vld [vmem:[%s3235_s10 + $0xd8] sm:$0xff]  ;;  %v2073_v6 = vld [vmem:[%s3235_s10 + $0x150] sm:$0xff] }
 0x2ca   :  { %2209 = vmatpush.xpose.msk.msra.mxu3 %vm1771_vm0, %v1847_v8  ;;  %v1844_v9 = vsel %vm1754_vm15, %v2303_v7, %v1841_v63  ;;  %v2040_v63 = vld [vmem:[%s3235_s10 + $0x48] sm:$0xff]  ;;  %2133 = vmatpush.msra.mxu0 %v2073_v6 }
 0x2cb   :  { %2207 = vmatpush.msk.msrb.mxu2 %vm1397_vm9, %v1844_v9  ;;  %v2072_v8 = vld [vmem:[%s3235_s10 + $0x148] sm:$0xff] }
 0x2cc   :  { %v2056_v9 = vld [vmem:[%s3235_s10 + $0xc8] sm:$0xff]  ;;  %2134 = vmatpush.msra.mxu0 %v2072_v8 }
 0x2cd   :  { %v1678_v10 = vpop.permute.xlu1 %1677  ;;  %v1724_v13 = vpop.permute.xlu2 %1723 }
 0x2ce   :  { %1680 = vst.msk [vmem:[#allocation3 + $0x27] sm:$0x1] %vm1406_vm11, %v1678_v10  ;;  %v2039_v10 = vld [vmem:[%s3235_s10 + $0x40] sm:$0xff] }
 0x2cf   :  { %1726 = vst.msk [vmem:[#allocation3 + $0x2d] sm:$0x1] %vm1406_vm11, %v1724_v13  ;;  %v2055_v13 = vld [vmem:[%s3235_s10 + $0xc0] sm:$0xff] }
 0x2d0   :  { %v1671_v12 = vpop.permute.xlu0 %1670 }
 0x2d1   :  { %1673 = vst.msk [vmem:[#allocation3 + $0x26] sm:$0x1] %vm1406_vm11, %v1671_v12  ;;  %v2071_v12 = vld [vmem:[%s3235_s10 + $0x140] sm:$0xff] }
 0x2d2   :  { %2135 = vmatpush.msra.mxu0 %v2071_v12 }
 0x2d5   :  { %v1573_v14 = vpop.permute.xlu1 %1572 }
 0x2d6   :  { %1575 = vst.msk [vmem:[#allocation3 + $0x18] sm:$0x1] %vm1406_vm11, %v1573_v14  ;;  %v2038_v14 = vld [vmem:[%s3235_s10 + $0x38] sm:$0xff] }
 0x2d8   :  { %v1597_v62 = vpop.permute.xlu0 %1596  ;;  %v1834_v15 = vld [vmem:[#allocation3 + $0x20] sm:$0xff] }
 0x2d9   :  { %v1599_v17 = vsel %vm1598_vm10, %v1595_v61, %v1597_v62  ;;  %v1846_v16 = vsel %vm1765_vm4, %v1834_v15, 0.0  ;;  %v1840_v19 = vsel %vm1756_vm3, %v1834_v15, 0.0  ;;  %v2043_v61 = vld [vmem:[%s3235_s10 + $0x60] sm:$0xff]  ;;  %v2070_v62 = vld [vmem:[%s3235_s10 + $0x138] sm:$0xff] }
 0x2da   :  { %1601 = vst.msk [vmem:[#allocation3 + $0x1b] sm:$0x1] %vm1406_vm11, %v1599_v17  ;;  %2210 = vmatpush.xpose.msk.msra.mxu3 %vm1771_vm0, %v1846_v16  ;;  %v1843_v22 = vsel %vm1753_vm5, %v2303_v7, %v1840_v19  ;;  %v2054_v15 = vld [vmem:[%s3235_s10 + $0xb8] sm:$0xff]  ;;  %v2037_v17 = vld [vmem:[%s3235_s10 + $0x30] sm:$0xff]  ;;  %2136 = vmatpush.msra.mxu0 %v2070_v62 }
 0x2db   :  { %1869 = vmatpush.msrb.mxu2 %v1843_v22  ;;  %v2069_v16 = vld [vmem:[%s3235_s10 + $0x130] sm:$0xff]  ;;  %v2036_v22 = vld [vmem:[%s3235_s10 + $0x28] sm:$0xff] }
 0x2dc   :  { %v2053_v19 = vld [vmem:[%s3235_s10 + $0xb0] sm:$0xff]  ;;  %2137 = vmatpush.msra.mxu0 %v2069_v16 }
 0x2dd   :  { %v1606_v23 = vpop.permute.xlu1 %1605 }
 0x2de   :  { %1608 = vst.msk [vmem:[#allocation3 + $0x1c] sm:$0x1] %vm1406_vm11, %v1606_v23  ;;  %v2068_v23 = vld [vmem:[%s3235_s10 + $0x128] sm:$0xff] }
 0x2df   :  { %2138 = vmatpush.msra.mxu0 %v2068_v23 }
 0x2e0   :  { %v1587_v24 = vpop.permute.xlu0 %1586 }
 0x2e1   :  { %1589 = vst.msk [vmem:[#allocation3 + $0x1a] sm:$0x1] %vm1406_vm11, %v1587_v24  ;;  %v2035_v24 = vld [vmem:[%s3235_s10 + $0x20] sm:$0xff] }
 0x2e5   :  { %v1627_v25 = vpop.permute.xlu1 %1626 }
 0x2e6   :  { %1629 = vst.msk [vmem:[#allocation3 + $0x1f] sm:$0x1] %vm1406_vm11, %v1627_v25  ;;  %v2067_v25 = vld [vmem:[%s3235_s10 + $0x120] sm:$0xff] }
 0x2e7   :  { %2139 = vmatpush.msra.mxu0 %v2067_v25 }
 0x2e8   :  { %v1620_v5 = vpop.permute.xlu0 %1619 }
 0x2e9   :  { %1622 = vst.msk [vmem:[#allocation3 + $0x1e] sm:$0x1] %vm1406_vm11, %v1620_v5  ;;  %vm1743_vm11 = vcmp.lt.s32.totalorder %v2875_v18, 16  ;;  %v2305_v18 = vld [vmem:[#allocation3 + $0x2d] ss:$0 sm:$0xff]  ;;  %v2034_v5 = vld [vmem:[%s3235_s10 + $0x18] sm:$0xff] }
 0x2ea   :  { %v3011_v35 = vsel %vm1743_vm11, 1.0, %v2532_v34 }
 0x2f0   :  { %v1833_v26 = vld [vmem:[#allocation3 + $0x18] sm:$0xff] }
 0x2f1   :  { %v1845_v27 = vsel %vm1764_vm7, %v1833_v26, 0.0  ;;  %v1839_v28 = vsel %vm1755_vm6, %v1833_v26, 0.0  ;;  %v2066_v26 = vld [vmem:[%s3235_s10 + $0x118] sm:$0xff] }
 0x2f2   :  { %2211 = vmatpush.xpose.msk.msra.mxu3 %vm1771_vm0, %v1845_v27  ;;  %v1842_v29 = vsel %vm1752_vm8, %v2303_v7, %v1839_v28  ;;  %v2057_v7 = vld [vmem:[%s3235_s10 + $0xd0] sm:$0xff]  ;;  %2140 = vmatpush.msra.mxu0 %v2066_v26 }
 0x2f3   :  { %1870 = vmatpush.msrb.mxu2 %v1842_v29 }
 0x2f5   :  { %2215 = vmatpush.msk.msra.mxu2 %vm1397_vm9, %v1919_v38  ;;  %v2063_v38 = vld [vmem:[%s3235_s10 + $0x100] sm:$0xff] }
 0x2f6   :  { %2219 = vmatpush.msk.msrb.mxu3 %vm1397_vm9, %v1921_v44  ;;  %vm2174_vm9 = vcmask 851264  }
 0x2f7   :  { %1981 = vmatpush.msra.mxu2 %v1915_v42  ;;  %v1922_v42 = vld [vmem:[#allocation12] sm:$0xf] }
 0x2f8   :  { %2021 = vmatpush.msrb.mxu3 %v1917_v47  ;;  %v1924_v43 = vperm.slane %v1922_v42, 0  ;;  %v1926_v44 = vperm.slane %v1922_v42, 2  ;;  %v1925_v50 = vperm.slane %v1922_v42, 1 }
 0x2f9   :  { %1982 = vmatpush.msra.mxu2 %v1911_v48 }
 0x2fa   :  { %2022 = vmatpush.msrb.mxu3 %v1913_v51 }
 0x339   :  { %v1801_v31 = vpop.f32.mrf.mxu3 }
 0x33a   :  { %v1802_v32 = vadd.f32 %v2304_v30, %v1801_v31  ;;  %v2033_v30 = vld [vmem:[%s3235_s10 + $0x10] sm:$0xff]  ;;  %v2052_v31 = vld [vmem:[%s3235_s10 + $0xa8] sm:$0xff] }
 0x33c   :  { %2311 = vtanh.f32 %v1802_v32  ;;  %v2065_v32 = vld [vmem:[%s3235_s10 + $0x110] sm:$0xff] }
 0x33d   :  { %2141 = vmatpush.msra.mxu0 %v2065_v32 }
 0x342   :  { %v2312_v33 = vpop.eup %2311 }
 0x343   :  { %2206 = vmatmul.msk.f32.vlgmr.msrb.gmra.mxu1 %vm1771_vm0, %v2312_v33  ;;  %v2032_v33 = vld [vmem:[%s3235_s10 + $0x8] sm:$0xff] }
 0x344   :  { %2088 = vmatpush.msrb.mxu1 %v2046_v52  ;;  %v1927_v52 = vperm.slane %v1922_v42, 3 }
 0x346   :  { %2089 = vmatpush.msrb.mxu1 %v2045_v54 }
 0x3c0   :  { %v1828_v36 = vpop.f32.mrf.mxu1 }
 0x3c1   :  { %v1831_v37 = vmul.f32 %v3011_v35, %v1828_v36  ;;  %v2064_v36 = vld [vmem:[%s3235_s10 + $0x108] sm:$0xff] }
 0x3c2   :  { %2142 = vmatpush.msra.mxu0 %v2064_v36 }
 0x3c3   :  { %v3015_v21 = vadd.f32 %v1831_v37, %v2956_v57  ;;  %v2044_v57 = vld [vmem:[%s3235_s10 + $0x68] sm:$0xff]  ;;  %v2031_v37 = vld [vmem:[%s3235_s10] sm:$0xff] }
 0x3c4   :  { %2090 = vmatpush.msrb.mxu1 %v2044_v57  ;;  %2143 = vmatpush.msra.mxu0 %v2063_v38 }
 0x3c5   :  { %2208 = vmatmul.msk.f32.vlgmr.msrb.gmra.mxu2 %vm1771_vm0, %v3015_v21 }
 0x3c6   :  { %2108 = vmatpush.msrb.mxu2 %v2062_v59  ;;  %2091 = vmatpush.msrb.mxu1 %v2043_v61 }
 0x3c8   :  { %2109 = vmatpush.msrb.mxu2 %v2061_v56  ;;  %2092 = vmatpush.msrb.mxu1 %v2042_v4 }
 0x3ca   :  { %2110 = vmatpush.msrb.mxu2 %v2060_v60  ;;  %2093 = vmatpush.msrb.mxu1 %v2041_v3 }
 0x3cc   :  { %2111 = vmatpush.msrb.mxu2 %v2059_v2  ;;  %2094 = vmatpush.msrb.mxu1 %v2040_v63 }
 0x3ce   :  { %2112 = vmatpush.msrb.mxu2 %v2058_v1  ;;  %2095 = vmatpush.msrb.mxu1 %v2039_v10 }
 0x3d0   :  { %2113 = vmatpush.msrb.mxu2 %v2057_v7  ;;  %2096 = vmatpush.msrb.mxu1 %v2038_v14 }
 0x3d2   :  { %2114 = vmatpush.msrb.mxu2 %v2056_v9  ;;  %2097 = vmatpush.msrb.mxu1 %v2037_v17 }
 0x3d4   :  { %2115 = vmatpush.msrb.mxu2 %v2055_v13  ;;  %2098 = vmatpush.msrb.mxu1 %v2036_v22 }
 0x3d6   :  { %2116 = vmatpush.msrb.mxu2 %v2054_v15  ;;  %2099 = vmatpush.msrb.mxu1 %v2035_v24 }
 0x3d8   :  { %2117 = vmatpush.msrb.mxu2 %v2053_v19  ;;  %2100 = vmatpush.msrb.mxu1 %v2034_v5 }
 0x3da   :  { %2101 = vmatpush.msrb.mxu1 %v2033_v30  ;;  %2118 = vmatpush.msrb.mxu2 %v2052_v31 }
 0x3dc   :  { %2102 = vmatpush.msrb.mxu1 %v2032_v33 }
 0x3de   :  { %2103 = vmatpush.msrb.mxu1 %v2031_v37 }
 0x448   :  { %v1872_v39 = vpop.f32.mrf.mxu2 }
 0x449   :  { %v1873_v40 = vadd.f32 %v2305_v18, %v1872_v39  ;;  %v2049_v18 = vld [vmem:[%s3235_s10 + $0x90] sm:$0xff]  ;;  %v2080_v39 = vld [vmem:[%s3235_s10 + $0x188] sm:$0xff] }
 0x44b   :  { %2313 = vtanh.f32 %v1873_v40  ;;  %v2048_v40 = vld [vmem:[%s3235_s10 + $0x88] sm:$0xff] }
 0x451   :  { %v2314_v20 = vpop.eup %2313 }
 0x452   :  { %2212 = vmatmul.msk.f32.vlgmr.msra.gmra.mxu3 %vm1771_vm0, %v2314_v20  ;;  %v2079_v20 = vld [vmem:[%s3235_s10 + $0x180] sm:$0xff] }
 0x453   :  { %2162 = vmatpush.msra.mxu3 %v2080_v39 }
 0x455   :  { %2163 = vmatpush.msra.mxu3 %v2079_v20 }
 0x4d5   :  { %v1905_v27 = vpop.f32.mrf.mxu3 }
 0x4d6   :  { %v1908_v28 = vmul.f32 %v3011_v35, %v1905_v27  ;;  %v2051_v35 = vld [vmem:[%s3235_s10 + $0xa0] sm:$0xff] }
 0x4d7   :  { %2119 = vmatpush.msrb.mxu2 %v2051_v35 }
 0x4d8   :  { %v1909_v29 = vadd.f32 %v1908_v28, %v3015_v21  ;;  %v2050_v21 = vld [vmem:[%s3235_s10 + $0x98] sm:$0xff] }
 0x4d9   :  { %2120 = vmatpush.msrb.mxu2 %v2050_v21 }
 0x4da   :  { %2214 = vmatmul.msk.f32.vlgmr.msra.gmra.mxu1 %vm1771_vm0, %v1909_v29  ;;  %2216 = vmatmul.msk.f32.vlgmr.msra.gmra.mxu2 %vm1771_vm0, %v1909_v29 }
 0x4db   :  { %2218 = vmatmul.msk.f32.vlgmr.msrb.gmra.mxu0 %vm1771_vm0, %v1909_v29  ;;  %2220 = vmatmul.msk.f32.vlgmr.msrb.gmra.mxu3 %vm1771_vm0, %v1909_v29 }
 0x4dc   :  { %2121 = vmatpush.msrb.mxu2 %v2049_v18 }
 0x4de   :  { %2122 = vmatpush.msrb.mxu2 %v2048_v40 }
 0x4e0   :  { %2123 = vmatpush.msrb.mxu2 %v2047_v41 }
 0x557   :  { %v1964_v45 = vpop.f32.mrf.mxu1 }
 0x558   :  { %v1965_v46 = vadd.f32 %v1964_v45, %v1924_v43  ;;  %v2004_v47 = vpop.f32.mrf.mxu0 }
 0x559   :  { %v2005_v48 = vadd.f32 %v2004_v47, %v1926_v44 }
 0x55a   :  { %v2027_v49 = vmax.f32 %v1965_v46, 0.0 }
 0x55b   :  { %v2029_v51 = vmax.f32 %v2005_v48, 0.0 }
 0x55c   :  { %2104 = vmatmul.f32.vlgmr.msrb.gmra.mxu1 %v2027_v49 }
 0x55d   :  { %2144 = vmatmul.f32.vlgmr.msra.gmra.mxu0 %v2029_v51  ;;  %v1984_v53 = vpop.f32.mrf.mxu2 }
 0x55e   :  { %v1985_v54 = vadd.f32 %v1984_v53, %v1925_v50  ;;  %v2024_v55 = vpop.f32.mrf.mxu3 }
 0x55f   :  { %v2025_v59 = vadd.f32 %v2024_v55, %v1927_v52 }
 0x560   :  { %v2028_v56 = vmax.f32 %v1985_v54, 0.0 }
 0x561   :  { %v2030_v57 = vmax.f32 %v2025_v59, 0.0 }
 0x562   :  { %2124 = vmatmul.f32.vlgmr.msrb.gmra.mxu2 %v2028_v56 }
 0x563   :  { %2221 = vmatmul.msk.f32.vlgmr.msra.gmra.mxu3 %vm325_vm1, %v2030_v57 }
 0x5d9   :  { %v2105_v60 = vpop.f32.mrf.mxu1 }
 0x5da   :  { %v2106_v61 = vadd.f32 %v2306_v58, %v2105_v60  ;;  %v2145_v4 = vpop.f32.mrf.mxu0 }
 0x5e5   :  { %v2125_v0 = vpop.f32.mrf.mxu2 }
 0x5e6   :  { %v2126_v2 = vadd.f32 %v2125_v0, %v2106_v61  ;;  %v2165_v1 = vpop.f32.mrf.mxu3 }
 0x5e8   :  { %v2146_v11 = vadd.f32 %v2145_v4, %v2126_v2 }
 0x5ea   :  { %v2166_v3 = vadd.f32 %v2165_v1, %v2146_v11 }
 0x5ec   :  { %2171 = vrot.lane.b32.xlu0 %v2166_v3, %s2523_s24 }
 0x65e   :  { %v2172_v6 = vpop.permute.xlu0 %2171 }
 0x65f   :  { %2175 = vst.msk [vmem:[%s3237_s12] sm:$0xff] %vm2174_vm9, %v2172_v6 }
 0x660   :  { %2177 = vst.msk [vmem:[%s3237_s12] sm:$0xff] %vm2176_vm12, %v2532_v34 }
 0x661   :  { %2182 = vsyncpa [#allocation5], 1 }
 0x662   :  { %2183 = vsyncpa [#allocation7], 1 }
 0x663   :  { %2184 = vsyncpa [#allocation10], 1 }
 0x664   :  { %2185 = vsyncpa [#allocation13], 1 }

</bundles_post_ra>
